<compile_context>
chip_gen: v5e
topology: v5e:2x2
jax: 0.10.0
libtpu: 0.0.40
codegen_flags: <defaults>
</compile_context>

<pallas_src>
import functools

import jax
import jax.numpy as jnp
from jax import lax
from jax.experimental import pallas as pl
from jax.experimental.pallas import tpu as pltpu

K = 21                      # conv kernel size (all three layers)
PAD = 10                    # "same" padding = (K - 1) // 2
C0, C1, C2, C3 = 1, 16, 32, 64
BN_EPS = 1e-5


# ---------------------------------------------------------------------------
# In-kernel helpers (all operate on VMEM-resident values / scratch refs).
# ---------------------------------------------------------------------------
def _pool_selectors(m):
    """(m//2, m) one-hot f32 matrices selecting even / odd source rows.

    Built once at the LARGEST pool size; smaller pools reuse the top-left block
    (sel_m'[r, c] == (c == 2r [+1]) is invariant under truncation).
    """
    r = lax.broadcasted_iota(jnp.int32, (m // 2, m), 0)
    c = lax.broadcasted_iota(jnp.int32, (m // 2, m), 1)
    sel_even = (c == 2 * r).astype(jnp.float32)
    sel_odd = (c == 2 * r + 1).astype(jnp.float32)
    return sel_even, sel_odd


def _maxpool2(y, sel_even_full, sel_odd_full):
    """MaxPool1d(kernel=2, stride=2) along rows, in-register via selection matmuls."""
    m = y.shape[0]
    se = sel_even_full[: m // 2, :m]          # aligned static value slices
    so = sel_odd_full[: m // 2, :m]
    lo = jnp.dot(se, y, preferred_element_type=jnp.float32)   # rows 0,2,4,...
    hi = jnp.dot(so, y, preferred_element_type=jnp.float32)   # rows 1,3,5,...
    return jnp.maximum(lo, hi)


def _batch_norm(h, gamma, beta):
    """BatchNorm1d training-mode forward: biased stats over all (batch*length) rows."""
    m = h.shape[0]
    mean = jnp.sum(h, axis=0, keepdims=True) * (1.0 / m)
    xc = h - mean
    var = jnp.sum(xc * xc, axis=0, keepdims=True) * (1.0 / m)
    scale = gamma * lax.rsqrt(var + BN_EPS)   # per-channel fold: one (1,C) mul
    return xc * scale + beta


def _fill_im2col(cols_ref, h, n, l):
    """Stage the (n*l, K*cin) im2col patch slab for a stride-1 'same' conv.

    h is the (n*l, cin) channels-last activation stack (batch elements stacked
    along rows, each of length l).  Zero padding at the sequence boundaries is
    realised by zero-initialising the scratch and writing only in-range rows.
    All indices are static Python ints, so every store lowers to a static
    (masked) VMEM store — no dynamic addressing on the scalar core.
    """
    cin = h.shape[1]
    cols_ref[...] = jnp.zeros(cols_ref.shape, cols_ref.dtype)
    for k in range(K):                       # static, fully unrolled (K = 21)
        lo = max(0, PAD - k)                 # first output row fed by this tap
        hi = min(l, l + PAD - k)             # one past the last such row
        src = lo + k - PAD                   # matching first source row
        rows = hi - lo
        for i in range(n):                   # static unroll over batch elements
            cols_ref[i * l + lo: i * l + hi, k * cin: (k + 1) * cin] = (
                h[i * l + src: i * l + src + rows, :])
    return cols_ref[...]


# ---------------------------------------------------------------------------
# Fused kernel: conv1+pool -> conv2+pool -> bn1 -> conv3+pool -> bn2
# ---------------------------------------------------------------------------
def fused_cnn_kernel(n, l1,
                     cols1_ref, w1_ref, b1_ref,
                     w2_ref, b2_ref, g1_ref, be1_ref,
                     w3_ref, b3_ref, g2_ref, be2_ref,
                     o_ref, cols2_ref, cols3_ref):
    # Pooling selectors generated once at the largest size (n*l1 rows) and
    # re-sliced for the two smaller pools.
    sel_even, sel_odd = _pool_selectors(n * l1)

    # ---- conv1 (im2col slab built in the wrapper) + bias + maxpool(2) ----
    h = jnp.dot(cols1_ref[...], w1_ref[...],
                preferred_element_type=jnp.float32) + b1_ref[...]    # (n*l1, 16)
    h = _maxpool2(h, sel_even, sel_odd)                              # (n*l1/2, 16)

    # ---- conv2 + bias + maxpool(2) ----
    l2 = l1 // 2
    cols2 = _fill_im2col(cols2_ref, h, n, l2)                        # (n*l2, 336)
    h = jnp.dot(cols2, w2_ref[...],
                preferred_element_type=jnp.float32) + b2_ref[...]    # (n*l2, 32)
    h = _maxpool2(h, sel_even, sel_odd)                              # (n*l2/2, 32)

    # ---- batch_norm1 (training-mode batch stats over (batch, length)) ----
    h = _batch_norm(h, g1_ref[...], be1_ref[...])

    # ---- conv3 + bias + maxpool(2) ----
    l3 = l2 // 2
    cols3 = _fill_im2col(cols3_ref, h, n, l3)                        # (n*l3, 672)
    h = jnp.dot(cols3, w3_ref[...],
                preferred_element_type=jnp.float32) + b3_ref[...]    # (n*l3, 64)
    h = _maxpool2(h, sel_even, sel_odd)                              # (n*l3/2, 64)

    # ---- batch_norm2 ----
    h = _batch_norm(h, g2_ref[...], be2_ref[...])

    o_ref[...] = h.astype(o_ref.dtype)


# ---------------------------------------------------------------------------
# Wrapper: one tiny im2col for conv1 in XLA, one fused pallas_call, one reshape.
# ---------------------------------------------------------------------------
def cnn_forward(x_ncl, params):
    """x_ncl: (N, 1, L) float32 in PyTorch NCL layout. Returns (N, 64, L//8)."""
    N, cin, L1 = x_ncl.shape
    assert cin == C0
    assert L1 % 8 == 0, "three MaxPool1d(2) stages assume the length stays even"
    L_out = L1 // 8

    # conv1 im2col slab built in the wrapper (Cin=1): (N*L1, K), ~N*L1*84 bytes.
    xpad = jnp.pad(x_ncl[:, 0, :], ((0, 0), (PAD, PAD)))             # (N, L1+K-1)
    cols1 = jnp.stack([xpad[:, k:k + L1] for k in range(K)], axis=-1)
    cols1 = cols1.reshape(N * L1, K).astype(jnp.float32)

    def full(shape):
        return pl.BlockSpec(shape, lambda i, _s=shape: (0,) * len(_s))

    out = pl.pallas_call(
        functools.partial(fused_cnn_kernel, N, L1),
        out_shape=jax.ShapeDtypeStruct((N * L_out, C3), jnp.float32),
        grid=(1,),
        in_specs=[
            full((N * L1, K)),        # cols1
            full((K * C0, C1)),       # w1
            full((1, C1)),            # b1
            full((K * C1, C2)),       # w2
            full((1, C2)),            # b2
            full((1, C2)),            # gamma1
            full((1, C2)),            # beta1
            full((K * C2, C3)),       # w3
            full((1, C3)),            # b3
            full((1, C3)),            # gamma2
            full((1, C3)),            # beta2
        ],
        out_specs=full((N * L_out, C3)),
        scratch_shapes=[
            pltpu.VMEM((N * (L1 // 2), K * C1), jnp.float32),        # conv2 im2col
            pltpu.VMEM((N * (L1 // 4), K * C2), jnp.float32),        # conv3 im2col
        ],
        compiler_params=pltpu.CompilerParams(
            dimension_semantics=("arbitrary",)),
    )(cols1,
      params["w1"], params["b1"],
      params["w2"], params["b2"], params["g1"], params["beta1"],
      params["w3"], params["b3"], params["g2"], params["beta2"])

    # (N*L_out, C3) channels-last stack -> (N, C3, L_out) to match PyTorch NCL.
    return out.reshape(N, L_out, C3).transpose(0, 2, 1)


# ---------------------------------------------------------------------------
# Pure-JAX reference (lax.conv) used only for an in-script correctness check.
# ---------------------------------------------------------------------------
def cnn_forward_reference(x_ncl, params):
    def conv(x, w2d, b, cin, cout):
        # Stored layout (K*cin, cout)  <->  PyTorch (cout, cin, K) via permute(2,1,0).
        w = w2d.reshape(K, cin, cout).transpose(2, 1, 0)             # (cout, cin, K)
        y = lax.conv_general_dilated(
            x, w, window_strides=(1,), padding=[(PAD, PAD)],
            dimension_numbers=("NCH", "OIH", "NCH"),
            precision=lax.Precision.HIGHEST)
        return y + b.reshape(1, cout, 1)

    def pool(x):
        n, c, l = x.shape
        return jnp.max(x.reshape(n, c, l // 2, 2), axis=-1)

    def bn(x, g, b):
        mean = jnp.mean(x, axis=(0, 2), keepdims=True)
        var = jnp.mean((x - mean) ** 2, axis=(0, 2), keepdims=True)
        return (x - mean) * lax.rsqrt(var + BN_EPS) * g.reshape(1, -1, 1) + b.reshape(1, -1, 1)

    h = pool(conv(x_ncl, params["w1"], params["b1"], C0, C1))
    h = pool(conv(h, params["w2"], params["b2"], C1, C2))
    h = bn(h, params["g1"], params["beta1"])
    h = pool(conv(h, params["w3"], params["b3"], C2, C3))
    h = bn(h, params["g2"], params["beta2"])
    return h


def init_params(key):
    ks = jax.random.split(key, 10)
    f32 = jnp.float32

    def nrm(k, shape, scale):
        return (jax.random.normal(k, shape, f32) * scale).astype(f32)

    # Conv weights stored as (K*Cin, Cout); a PyTorch Conv1d weight (Cout, Cin, K)
    # maps to this via w.permute(2, 1, 0).reshape(K*Cin, Cout) (cross-correlation,
    # no kernel flip needed).
    return {
        "w1": nrm(ks[0], (K * C0, C1), 0.2),
        "b1": nrm(ks[1], (1, C1), 0.1),
        "w2": nrm(ks[2], (K * C1, C2), 0.05),
        "b2": nrm(ks[3], (1, C2), 0.1),
        "g1": 1.0 + 0.1 * jax.random.normal(ks[4], (1, C2), f32),
        "beta1": nrm(ks[5], (1, C2), 0.1),
        "w3": nrm(ks[6], (K * C2, C3), 0.05),
        "b3": nrm(ks[7], (1, C3), 0.1),
        "g2": 1.0 + 0.1 * jax.random.normal(ks[8], (1, C3), f32),
        "beta2": nrm(ks[9], (1, C3), 0.1),
    }


if __name__ == "__main__":
    key = jax.random.PRNGKey(0)
    pkey, xkey = jax.random.split(key)
    params = init_params(pkey)

    # Small deterministic input consistent with the module: (batch=2, channels=1, length=128).
    x = jax.random.normal(xkey, (2, 1, 128), jnp.float32)

    out = jax.jit(cnn_forward)(x, params)
    out = jax.block_until_ready(out)

    assert out.shape == (2, C3, 128 // 8), out.shape
    assert bool(jnp.all(jnp.isfinite(out)))

    ref = cnn_forward_reference(x, params)
    max_err = float(jnp.max(jnp.abs(out - ref)))
    assert bool(jnp.allclose(out, ref, rtol=5e-3, atol=5e-3)), max_err

    print("KERNEL_OK")
</pallas_src>

<mosaic_0001>
module attributes {stable_mosaic.version = 11 : i64} {
  func.func @fused_cnn_kernel(%arg0: i32, %arg1: memref<256x21xf32, #tpu.memory_space<vmem>>, %arg2: memref<21x16xf32, #tpu.memory_space<vmem>>, %arg3: memref<1x16xf32, #tpu.memory_space<vmem>>, %arg4: memref<336x32xf32, #tpu.memory_space<vmem>>, %arg5: memref<1x32xf32, #tpu.memory_space<vmem>>, %arg6: memref<1x32xf32, #tpu.memory_space<vmem>>, %arg7: memref<1x32xf32, #tpu.memory_space<vmem>>, %arg8: memref<672x64xf32, #tpu.memory_space<vmem>>, %arg9: memref<1x64xf32, #tpu.memory_space<vmem>>, %arg10: memref<1x64xf32, #tpu.memory_space<vmem>>, %arg11: memref<1x64xf32, #tpu.memory_space<vmem>>, %arg12: memref<32x64xf32, #tpu.memory_space<vmem>>, %arg13: memref<128x336xf32, #tpu.memory_space<vmem>>, %arg14: memref<64x672xf32, #tpu.memory_space<vmem>>) attributes {dimension_semantics = [#tpu.dimension_semantics<arbitrary>], iteration_bounds = array<i64: 1>, scalar_prefetch = 0 : i64, scratch_operands = 2 : i64, tpu.core_type = #tpu.core_type<tc>, window_params = [{pipeline_mode = #tpu.pipeline_mode<synchronous>, transform_indices = @transform_0, window_bounds = array<i64: 256, 21>}, {pipeline_mode = #tpu.pipeline_mode<synchronous>, transform_indices = @transform_1, window_bounds = array<i64: 21, 16>}, {pipeline_mode = #tpu.pipeline_mode<synchronous>, transform_indices = @transform_2, window_bounds = array<i64: 1, 16>}, {pipeline_mode = #tpu.pipeline_mode<synchronous>, transform_indices = @transform_3, window_bounds = array<i64: 336, 32>}, {pipeline_mode = #tpu.pipeline_mode<synchronous>, transform_indices = @transform_4, window_bounds = array<i64: 1, 32>}, {pipeline_mode = #tpu.pipeline_mode<synchronous>, transform_indices = @transform_5, window_bounds = array<i64: 1, 32>}, {pipeline_mode = #tpu.pipeline_mode<synchronous>, transform_indices = @transform_6, window_bounds = array<i64: 1, 32>}, {pipeline_mode = #tpu.pipeline_mode<synchronous>, transform_indices = @transform_7, window_bounds = array<i64: 672, 64>}, {pipeline_mode = #tpu.pipeline_mode<synchronous>, transform_indices = @transform_8, window_bounds = array<i64: 1, 64>}, {pipeline_mode = #tpu.pipeline_mode<synchronous>, transform_indices = @transform_9, window_bounds = array<i64: 1, 64>}, {pipeline_mode = #tpu.pipeline_mode<synchronous>, transform_indices = @transform_10, window_bounds = array<i64: 1, 64>}, {pipeline_mode = #tpu.pipeline_mode<synchronous>, transform_indices = @transform_11, window_bounds = array<i64: 32, 64>}]} {
    %0 = tpu.iota {dimensions = array<i32: 0>} : vector<128x256xi32>
    %1 = tpu.iota {dimensions = array<i32: 1>} : vector<128x256xi32>
    %c2_i32 = arith.constant 2 : i32
    %2 = vector.broadcast %c2_i32 : i32 to vector<128x256xi32>
    %3 = arith.muli %2, %0 : vector<128x256xi32>
    %4 = arith.cmpi eq, %1, %3 : vector<128x256xi32>
    %5 = arith.extui %4 : vector<128x256xi1> to vector<128x256xi32>
    %6 = arith.sitofp %5 : vector<128x256xi32> to vector<128x256xf32>
    %c2_i32_0 = arith.constant 2 : i32
    %7 = vector.broadcast %c2_i32_0 : i32 to vector<128x256xi32>
    %8 = arith.muli %7, %0 : vector<128x256xi32>
    %c1_i32 = arith.constant 1 : i32
    %9 = vector.broadcast %c1_i32 : i32 to vector<128x256xi32>
    %10 = arith.addi %8, %9 : vector<128x256xi32>
    %11 = arith.cmpi eq, %1, %10 : vector<128x256xi32>
    %12 = arith.extui %11 : vector<128x256xi1> to vector<128x256xi32>
    %13 = arith.sitofp %12 : vector<128x256xi32> to vector<128x256xf32>
    %c0 = arith.constant 0 : index
    %c0_1 = arith.constant 0 : index
    %14 = vector.load %arg1[%c0, %c0_1] : memref<256x21xf32, #tpu.memory_space<vmem>>, vector<256x21xf32>
    %c0_2 = arith.constant 0 : index
    %c0_3 = arith.constant 0 : index
    %15 = vector.load %arg2[%c0_2, %c0_3] : memref<21x16xf32, #tpu.memory_space<vmem>>, vector<21x16xf32>
    %cst = arith.constant dense<0.000000e+00> : vector<256x16xf32>
    %16 = tpu.matmul %14, %15, %cst {dimension_numbers = #tpu.dot_dimension_numbers<[1], [0], [0], [1], [0, 0, 1, 1], [], []>} : vector<256x21xf32>, vector<21x16xf32>, vector<256x16xf32> -> vector<256x16xf32>
    %c0_4 = arith.constant 0 : index
    %c0_5 = arith.constant 0 : index
    %17 = vector.load %arg3[%c0_4, %c0_5] : memref<1x16xf32, #tpu.memory_space<vmem>>, vector<1x16xf32>
    %18 = vector.broadcast %17 : vector<1x16xf32> to vector<256x16xf32>
    %19 = arith.addf %16, %18 : vector<256x16xf32>
    %cst_6 = arith.constant dense<0.000000e+00> : vector<128x16xf32>
    %20 = tpu.matmul %6, %19, %cst_6 {dimension_numbers = #tpu.dot_dimension_numbers<[1], [0], [0], [1], [0, 0, 1, 1], [], []>} : vector<128x256xf32>, vector<256x16xf32>, vector<128x16xf32> -> vector<128x16xf32>
    %cst_7 = arith.constant dense<0.000000e+00> : vector<128x16xf32>
    %21 = tpu.matmul %13, %19, %cst_7 {dimension_numbers = #tpu.dot_dimension_numbers<[1], [0], [0], [1], [0, 0, 1, 1], [], []>} : vector<128x256xf32>, vector<256x16xf32>, vector<128x16xf32> -> vector<128x16xf32>
    %22 = arith.maximumf %20, %21 : vector<128x16xf32>
    %cst_8 = arith.constant 0.000000e+00 : f32
    %23 = vector.broadcast %cst_8 : f32 to vector<128x336xf32>
    %c0_9 = arith.constant 0 : index
    %c0_10 = arith.constant 0 : index
    %24 = vector.load %arg13[%c0_9, %c0_10] : memref<128x336xf32, #tpu.memory_space<vmem>>, vector<128x336xf32>
    tpu.vector_store %arg13[%c0_9, %c0_10], %23 {strides = array<i32>} : memref<128x336xf32, #tpu.memory_space<vmem>>, vector<128x336xf32>,
    %25 = vector.extract_strided_slice %22 {offsets = [0, 0], sizes = [54, 16], strides = [1, 1]} : vector<128x16xf32> to vector<54x16xf32>
    %c10 = arith.constant 10 : index
    %c0_11 = arith.constant 0 : index
    %26 = vector.load %arg13[%c10, %c0_11] : memref<128x336xf32, #tpu.memory_space<vmem>>, vector<54x16xf32>
    tpu.vector_store %arg13[%c10, %c0_11], %25 {strides = array<i32>} : memref<128x336xf32, #tpu.memory_space<vmem>>, vector<54x16xf32>,
    %27 = vector.extract_strided_slice %22 {offsets = [64, 0], sizes = [54, 16], strides = [1, 1]} : vector<128x16xf32> to vector<54x16xf32>
    %c74 = arith.constant 74 : index
    %c0_12 = arith.constant 0 : index
    %28 = vector.load %arg13[%c74, %c0_12] : memref<128x336xf32, #tpu.memory_space<vmem>>, vector<54x16xf32>
    tpu.vector_store %arg13[%c74, %c0_12], %27 {strides = array<i32>} : memref<128x336xf32, #tpu.memory_space<vmem>>, vector<54x16xf32>,
    %29 = vector.extract_strided_slice %22 {offsets = [0, 0], sizes = [55, 16], strides = [1, 1]} : vector<128x16xf32> to vector<55x16xf32>
    %c9 = arith.constant 9 : index
    %c16 = arith.constant 16 : index
    %30 = vector.load %arg13[%c9, %c16] : memref<128x336xf32, #tpu.memory_space<vmem>>, vector<55x16xf32>
    tpu.vector_store %arg13[%c9, %c16], %29 {strides = array<i32>} : memref<128x336xf32, #tpu.memory_space<vmem>>, vector<55x16xf32>,
    %31 = vector.extract_strided_slice %22 {offsets = [64, 0], sizes = [55, 16], strides = [1, 1]} : vector<128x16xf32> to vector<55x16xf32>
    %c73 = arith.constant 73 : index
    %c16_13 = arith.constant 16 : index
    %32 = vector.load %arg13[%c73, %c16_13] : memref<128x336xf32, #tpu.memory_space<vmem>>, vector<55x16xf32>
    tpu.vector_store %arg13[%c73, %c16_13], %31 {strides = array<i32>} : memref<128x336xf32, #tpu.memory_space<vmem>>, vector<55x16xf32>,
    %33 = vector.extract_strided_slice %22 {offsets = [0, 0], sizes = [56, 16], strides = [1, 1]} : vector<128x16xf32> to vector<56x16xf32>
    %c8 = arith.constant 8 : index
    %c32 = arith.constant 32 : index
    %34 = vector.load %arg13[%c8, %c32] : memref<128x336xf32, #tpu.memory_space<vmem>>, vector<56x16xf32>
    tpu.vector_store %arg13[%c8, %c32], %33 {strides = array<i32>} : memref<128x336xf32, #tpu.memory_space<vmem>>, vector<56x16xf32>,
    %35 = vector.extract_strided_slice %22 {offsets = [64, 0], sizes = [56, 16], strides = [1, 1]} : vector<128x16xf32> to vector<56x16xf32>
    %c72 = arith.constant 72 : index
    %c32_14 = arith.constant 32 : index
    %36 = vector.load %arg13[%c72, %c32_14] : memref<128x336xf32, #tpu.memory_space<vmem>>, vector<56x16xf32>
    tpu.vector_store %arg13[%c72, %c32_14], %35 {strides = array<i32>} : memref<128x336xf32, #tpu.memory_space<vmem>>, vector<56x16xf32>,
    %37 = vector.extract_strided_slice %22 {offsets = [0, 0], sizes = [57, 16], strides = [1, 1]} : vector<128x16xf32> to vector<57x16xf32>
    %c7 = arith.constant 7 : index
    %c48 = arith.constant 48 : index
    %38 = vector.load %arg13[%c7, %c48] : memref<128x336xf32, #tpu.memory_space<vmem>>, vector<57x16xf32>
    tpu.vector_store %arg13[%c7, %c48], %37 {strides = array<i32>} : memref<128x336xf32, #tpu.memory_space<vmem>>, vector<57x16xf32>,
    %39 = vector.extract_strided_slice %22 {offsets = [64, 0], sizes = [57, 16], strides = [1, 1]} : vector<128x16xf32> to vector<57x16xf32>
    %c71 = arith.constant 71 : index
    %c48_15 = arith.constant 48 : index
    %40 = vector.load %arg13[%c71, %c48_15] : memref<128x336xf32, #tpu.memory_space<vmem>>, vector<57x16xf32>
    tpu.vector_store %arg13[%c71, %c48_15], %39 {strides = array<i32>} : memref<128x336xf32, #tpu.memory_space<vmem>>, vector<57x16xf32>,
    %41 = vector.extract_strided_slice %22 {offsets = [0, 0], sizes = [58, 16], strides = [1, 1]} : vector<128x16xf32> to vector<58x16xf32>
    %c6 = arith.constant 6 : index
    %c64 = arith.constant 64 : index
    %42 = vector.load %arg13[%c6, %c64] : memref<128x336xf32, #tpu.memory_space<vmem>>, vector<58x16xf32>
    tpu.vector_store %arg13[%c6, %c64], %41 {strides = array<i32>} : memref<128x336xf32, #tpu.memory_space<vmem>>, vector<58x16xf32>,
    %43 = vector.extract_strided_slice %22 {offsets = [64, 0], sizes = [58, 16], strides = [1, 1]} : vector<128x16xf32> to vector<58x16xf32>
    %c70 = arith.constant 70 : index
    %c64_16 = arith.constant 64 : index
    %44 = vector.load %arg13[%c70, %c64_16] : memref<128x336xf32, #tpu.memory_space<vmem>>, vector<58x16xf32>
    tpu.vector_store %arg13[%c70, %c64_16], %43 {strides = array<i32>} : memref<128x336xf32, #tpu.memory_space<vmem>>, vector<58x16xf32>,
    %45 = vector.extract_strided_slice %22 {offsets = [0, 0], sizes = [59, 16], strides = [1, 1]} : vector<128x16xf32> to vector<59x16xf32>
    %c5 = arith.constant 5 : index
    %c80 = arith.constant 80 : index
    %46 = vector.load %arg13[%c5, %c80] : memref<128x336xf32, #tpu.memory_space<vmem>>, vector<59x16xf32>
    tpu.vector_store %arg13[%c5, %c80], %45 {strides = array<i32>} : memref<128x336xf32, #tpu.memory_space<vmem>>, vector<59x16xf32>,
    %47 = vector.extract_strided_slice %22 {offsets = [64, 0], sizes = [59, 16], strides = [1, 1]} : vector<128x16xf32> to vector<59x16xf32>
    %c69 = arith.constant 69 : index
    %c80_17 = arith.constant 80 : index
    %48 = vector.load %arg13[%c69, %c80_17] : memref<128x336xf32, #tpu.memory_space<vmem>>, vector<59x16xf32>
    tpu.vector_store %arg13[%c69, %c80_17], %47 {strides = array<i32>} : memref<128x336xf32, #tpu.memory_space<vmem>>, vector<59x16xf32>,
    %49 = vector.extract_strided_slice %22 {offsets = [0, 0], sizes = [60, 16], strides = [1, 1]} : vector<128x16xf32> to vector<60x16xf32>
    %c4 = arith.constant 4 : index
    %c96 = arith.constant 96 : index
    %50 = vector.load %arg13[%c4, %c96] : memref<128x336xf32, #tpu.memory_space<vmem>>, vector<60x16xf32>
    tpu.vector_store %arg13[%c4, %c96], %49 {strides = array<i32>} : memref<128x336xf32, #tpu.memory_space<vmem>>, vector<60x16xf32>,
    %51 = vector.extract_strided_slice %22 {offsets = [64, 0], sizes = [60, 16], strides = [1, 1]} : vector<128x16xf32> to vector<60x16xf32>
    %c68 = arith.constant 68 : index
    %c96_18 = arith.constant 96 : index
    %52 = vector.load %arg13[%c68, %c96_18] : memref<128x336xf32, #tpu.memory_space<vmem>>, vector<60x16xf32>
    tpu.vector_store %arg13[%c68, %c96_18], %51 {strides = array<i32>} : memref<128x336xf32, #tpu.memory_space<vmem>>, vector<60x16xf32>,
    %53 = vector.extract_strided_slice %22 {offsets = [0, 0], sizes = [61, 16], strides = [1, 1]} : vector<128x16xf32> to vector<61x16xf32>
    %c3 = arith.constant 3 : index
    %c112 = arith.constant 112 : index
    %54 = vector.load %arg13[%c3, %c112] : memref<128x336xf32, #tpu.memory_space<vmem>>, vector<61x16xf32>
    tpu.vector_store %arg13[%c3, %c112], %53 {strides = array<i32>} : memref<128x336xf32, #tpu.memory_space<vmem>>, vector<61x16xf32>,
    %55 = vector.extract_strided_slice %22 {offsets = [64, 0], sizes = [61, 16], strides = [1, 1]} : vector<128x16xf32> to vector<61x16xf32>
    %c67 = arith.constant 67 : index
    %c112_19 = arith.constant 112 : index
    %56 = vector.load %arg13[%c67, %c112_19] : memref<128x336xf32, #tpu.memory_space<vmem>>, vector<61x16xf32>
    tpu.vector_store %arg13[%c67, %c112_19], %55 {strides = array<i32>} : memref<128x336xf32, #tpu.memory_space<vmem>>, vector<61x16xf32>,
    %57 = vector.extract_strided_slice %22 {offsets = [0, 0], sizes = [62, 16], strides = [1, 1]} : vector<128x16xf32> to vector<62x16xf32>
    %c2 = arith.constant 2 : index
    %c128 = arith.constant 128 : index
    %58 = vector.load %arg13[%c2, %c128] : memref<128x336xf32, #tpu.memory_space<vmem>>, vector<62x16xf32>
    tpu.vector_store %arg13[%c2, %c128], %57 {strides = array<i32>} : memref<128x336xf32, #tpu.memory_space<vmem>>, vector<62x16xf32>,
    %59 = vector.extract_strided_slice %22 {offsets = [64, 0], sizes = [62, 16], strides = [1, 1]} : vector<128x16xf32> to vector<62x16xf32>
    %c66 = arith.constant 66 : index
    %c128_20 = arith.constant 128 : index
    %60 = vector.load %arg13[%c66, %c128_20] : memref<128x336xf32, #tpu.memory_space<vmem>>, vector<62x16xf32>
    tpu.vector_store %arg13[%c66, %c128_20], %59 {strides = array<i32>} : memref<128x336xf32, #tpu.memory_space<vmem>>, vector<62x16xf32>,
    %61 = vector.extract_strided_slice %22 {offsets = [0, 0], sizes = [63, 16], strides = [1, 1]} : vector<128x16xf32> to vector<63x16xf32>
    %c1 = arith.constant 1 : index
    %c144 = arith.constant 144 : index
    %62 = vector.load %arg13[%c1, %c144] : memref<128x336xf32, #tpu.memory_space<vmem>>, vector<63x16xf32>
    tpu.vector_store %arg13[%c1, %c144], %61 {strides = array<i32>} : memref<128x336xf32, #tpu.memory_space<vmem>>, vector<63x16xf32>,
    %63 = vector.extract_strided_slice %22 {offsets = [64, 0], sizes = [63, 16], strides = [1, 1]} : vector<128x16xf32> to vector<63x16xf32>
    %c65 = arith.constant 65 : index
    %c144_21 = arith.constant 144 : index
    %64 = vector.load %arg13[%c65, %c144_21] : memref<128x336xf32, #tpu.memory_space<vmem>>, vector<63x16xf32>
    tpu.vector_store %arg13[%c65, %c144_21], %63 {strides = array<i32>} : memref<128x336xf32, #tpu.memory_space<vmem>>, vector<63x16xf32>,
    %65 = vector.extract_strided_slice %22 {offsets = [0, 0], sizes = [64, 16], strides = [1, 1]} : vector<128x16xf32> to vector<64x16xf32>
    %c0_22 = arith.constant 0 : index
    %c160 = arith.constant 160 : index
    %66 = vector.load %arg13[%c0_22, %c160] : memref<128x336xf32, #tpu.memory_space<vmem>>, vector<64x16xf32>
    tpu.vector_store %arg13[%c0_22, %c160], %65 {strides = array<i32>} : memref<128x336xf32, #tpu.memory_space<vmem>>, vector<64x16xf32>,
    %67 = vector.extract_strided_slice %22 {offsets = [64, 0], sizes = [64, 16], strides = [1, 1]} : vector<128x16xf32> to vector<64x16xf32>
    %c64_23 = arith.constant 64 : index
    %c160_24 = arith.constant 160 : index
    %68 = vector.load %arg13[%c64_23, %c160_24] : memref<128x336xf32, #tpu.memory_space<vmem>>, vector<64x16xf32>
    tpu.vector_store %arg13[%c64_23, %c160_24], %67 {strides = array<i32>} : memref<128x336xf32, #tpu.memory_space<vmem>>, vector<64x16xf32>,
    %69 = vector.extract_strided_slice %22 {offsets = [1, 0], sizes = [63, 16], strides = [1, 1]} : vector<128x16xf32> to vector<63x16xf32>
    %c0_25 = arith.constant 0 : index
    %c176 = arith.constant 176 : index
    %70 = vector.load %arg13[%c0_25, %c176] : memref<128x336xf32, #tpu.memory_space<vmem>>, vector<63x16xf32>
    tpu.vector_store %arg13[%c0_25, %c176], %69 {strides = array<i32>} : memref<128x336xf32, #tpu.memory_space<vmem>>, vector<63x16xf32>,
    %71 = vector.extract_strided_slice %22 {offsets = [65, 0], sizes = [63, 16], strides = [1, 1]} : vector<128x16xf32> to vector<63x16xf32>
    %c64_26 = arith.constant 64 : index
    %c176_27 = arith.constant 176 : index
    %72 = vector.load %arg13[%c64_26, %c176_27] : memref<128x336xf32, #tpu.memory_space<vmem>>, vector<63x16xf32>
    tpu.vector_store %arg13[%c64_26, %c176_27], %71 {strides = array<i32>} : memref<128x336xf32, #tpu.memory_space<vmem>>, vector<63x16xf32>,
    %73 = vector.extract_strided_slice %22 {offsets = [2, 0], sizes = [62, 16], strides = [1, 1]} : vector<128x16xf32> to vector<62x16xf32>
    %c0_28 = arith.constant 0 : index
    %c192 = arith.constant 192 : index
    %74 = vector.load %arg13[%c0_28, %c192] : memref<128x336xf32, #tpu.memory_space<vmem>>, vector<62x16xf32>
    tpu.vector_store %arg13[%c0_28, %c192], %73 {strides = array<i32>} : memref<128x336xf32, #tpu.memory_space<vmem>>, vector<62x16xf32>,
    %75 = vector.extract_strided_slice %22 {offsets = [66, 0], sizes = [62, 16], strides = [1, 1]} : vector<128x16xf32> to vector<62x16xf32>
    %c64_29 = arith.constant 64 : index
    %c192_30 = arith.constant 192 : index
    %76 = vector.load %arg13[%c64_29, %c192_30] : memref<128x336xf32, #tpu.memory_space<vmem>>, vector<62x16xf32>
    tpu.vector_store %arg13[%c64_29, %c192_30], %75 {strides = array<i32>} : memref<128x336xf32, #tpu.memory_space<vmem>>, vector<62x16xf32>,
    %77 = vector.extract_strided_slice %22 {offsets = [3, 0], sizes = [61, 16], strides = [1, 1]} : vector<128x16xf32> to vector<61x16xf32>
    %c0_31 = arith.constant 0 : index
    %c208 = arith.constant 208 : index
    %78 = vector.load %arg13[%c0_31, %c208] : memref<128x336xf32, #tpu.memory_space<vmem>>, vector<61x16xf32>
    tpu.vector_store %arg13[%c0_31, %c208], %77 {strides = array<i32>} : memref<128x336xf32, #tpu.memory_space<vmem>>, vector<61x16xf32>,
    %79 = vector.extract_strided_slice %22 {offsets = [67, 0], sizes = [61, 16], strides = [1, 1]} : vector<128x16xf32> to vector<61x16xf32>
    %c64_32 = arith.constant 64 : index
    %c208_33 = arith.constant 208 : index
    %80 = vector.load %arg13[%c64_32, %c208_33] : memref<128x336xf32, #tpu.memory_space<vmem>>, vector<61x16xf32>
    tpu.vector_store %arg13[%c64_32, %c208_33], %79 {strides = array<i32>} : memref<128x336xf32, #tpu.memory_space<vmem>>, vector<61x16xf32>,
    %81 = vector.extract_strided_slice %22 {offsets = [4, 0], sizes = [60, 16], strides = [1, 1]} : vector<128x16xf32> to vector<60x16xf32>
    %c0_34 = arith.constant 0 : index
    %c224 = arith.constant 224 : index
    %82 = vector.load %arg13[%c0_34, %c224] : memref<128x336xf32, #tpu.memory_space<vmem>>, vector<60x16xf32>
    tpu.vector_store %arg13[%c0_34, %c224], %81 {strides = array<i32>} : memref<128x336xf32, #tpu.memory_space<vmem>>, vector<60x16xf32>,
    %83 = vector.extract_strided_slice %22 {offsets = [68, 0], sizes = [60, 16], strides = [1, 1]} : vector<128x16xf32> to vector<60x16xf32>
    %c64_35 = arith.constant 64 : index
    %c224_36 = arith.constant 224 : index
    %84 = vector.load %arg13[%c64_35, %c224_36] : memref<128x336xf32, #tpu.memory_space<vmem>>, vector<60x16xf32>
    tpu.vector_store %arg13[%c64_35, %c224_36], %83 {strides = array<i32>} : memref<128x336xf32, #tpu.memory_space<vmem>>, vector<60x16xf32>,
    %85 = vector.extract_strided_slice %22 {offsets = [5, 0], sizes = [59, 16], strides = [1, 1]} : vector<128x16xf32> to vector<59x16xf32>
    %c0_37 = arith.constant 0 : index
    %c240 = arith.constant 240 : index
    %86 = vector.load %arg13[%c0_37, %c240] : memref<128x336xf32, #tpu.memory_space<vmem>>, vector<59x16xf32>
    tpu.vector_store %arg13[%c0_37, %c240], %85 {strides = array<i32>} : memref<128x336xf32, #tpu.memory_space<vmem>>, vector<59x16xf32>,
    %87 = vector.extract_strided_slice %22 {offsets = [69, 0], sizes = [59, 16], strides = [1, 1]} : vector<128x16xf32> to vector<59x16xf32>
    %c64_38 = arith.constant 64 : index
    %c240_39 = arith.constant 240 : index
    %88 = vector.load %arg13[%c64_38, %c240_39] : memref<128x336xf32, #tpu.memory_space<vmem>>, vector<59x16xf32>
    tpu.vector_store %arg13[%c64_38, %c240_39], %87 {strides = array<i32>} : memref<128x336xf32, #tpu.memory_space<vmem>>, vector<59x16xf32>,
    %89 = vector.extract_strided_slice %22 {offsets = [6, 0], sizes = [58, 16], strides = [1, 1]} : vector<128x16xf32> to vector<58x16xf32>
    %c0_40 = arith.constant 0 : index
    %c256 = arith.constant 256 : index
    %90 = vector.load %arg13[%c0_40, %c256] : memref<128x336xf32, #tpu.memory_space<vmem>>, vector<58x16xf32>
    tpu.vector_store %arg13[%c0_40, %c256], %89 {strides = array<i32>} : memref<128x336xf32, #tpu.memory_space<vmem>>, vector<58x16xf32>,
    %91 = vector.extract_strided_slice %22 {offsets = [70, 0], sizes = [58, 16], strides = [1, 1]} : vector<128x16xf32> to vector<58x16xf32>
    %c64_41 = arith.constant 64 : index
    %c256_42 = arith.constant 256 : index
    %92 = vector.load %arg13[%c64_41, %c256_42] : memref<128x336xf32, #tpu.memory_space<vmem>>, vector<58x16xf32>
    tpu.vector_store %arg13[%c64_41, %c256_42], %91 {strides = array<i32>} : memref<128x336xf32, #tpu.memory_space<vmem>>, vector<58x16xf32>,
    %93 = vector.extract_strided_slice %22 {offsets = [7, 0], sizes = [57, 16], strides = [1, 1]} : vector<128x16xf32> to vector<57x16xf32>
    %c0_43 = arith.constant 0 : index
    %c272 = arith.constant 272 : index
    %94 = vector.load %arg13[%c0_43, %c272] : memref<128x336xf32, #tpu.memory_space<vmem>>, vector<57x16xf32>
    tpu.vector_store %arg13[%c0_43, %c272], %93 {strides = array<i32>} : memref<128x336xf32, #tpu.memory_space<vmem>>, vector<57x16xf32>,
    %95 = vector.extract_strided_slice %22 {offsets = [71, 0], sizes = [57, 16], strides = [1, 1]} : vector<128x16xf32> to vector<57x16xf32>
    %c64_44 = arith.constant 64 : index
    %c272_45 = arith.constant 272 : index
    %96 = vector.load %arg13[%c64_44, %c272_45] : memref<128x336xf32, #tpu.memory_space<vmem>>, vector<57x16xf32>
    tpu.vector_store %arg13[%c64_44, %c272_45], %95 {strides = array<i32>} : memref<128x336xf32, #tpu.memory_space<vmem>>, vector<57x16xf32>,
    %97 = vector.extract_strided_slice %22 {offsets = [8, 0], sizes = [56, 16], strides = [1, 1]} : vector<128x16xf32> to vector<56x16xf32>
    %c0_46 = arith.constant 0 : index
    %c288 = arith.constant 288 : index
    %98 = vector.load %arg13[%c0_46, %c288] : memref<128x336xf32, #tpu.memory_space<vmem>>, vector<56x16xf32>
    tpu.vector_store %arg13[%c0_46, %c288], %97 {strides = array<i32>} : memref<128x336xf32, #tpu.memory_space<vmem>>, vector<56x16xf32>,
    %99 = vector.extract_strided_slice %22 {offsets = [72, 0], sizes = [56, 16], strides = [1, 1]} : vector<128x16xf32> to vector<56x16xf32>
    %c64_47 = arith.constant 64 : index
    %c288_48 = arith.constant 288 : index
    %100 = vector.load %arg13[%c64_47, %c288_48] : memref<128x336xf32, #tpu.memory_space<vmem>>, vector<56x16xf32>
    tpu.vector_store %arg13[%c64_47, %c288_48], %99 {strides = array<i32>} : memref<128x336xf32, #tpu.memory_space<vmem>>, vector<56x16xf32>,
    %101 = vector.extract_strided_slice %22 {offsets = [9, 0], sizes = [55, 16], strides = [1, 1]} : vector<128x16xf32> to vector<55x16xf32>
    %c0_49 = arith.constant 0 : index
    %c304 = arith.constant 304 : index
    %102 = vector.load %arg13[%c0_49, %c304] : memref<128x336xf32, #tpu.memory_space<vmem>>, vector<55x16xf32>
    tpu.vector_store %arg13[%c0_49, %c304], %101 {strides = array<i32>} : memref<128x336xf32, #tpu.memory_space<vmem>>, vector<55x16xf32>,
    %103 = vector.extract_strided_slice %22 {offsets = [73, 0], sizes = [55, 16], strides = [1, 1]} : vector<128x16xf32> to vector<55x16xf32>
    %c64_50 = arith.constant 64 : index
    %c304_51 = arith.constant 304 : index
    %104 = vector.load %arg13[%c64_50, %c304_51] : memref<128x336xf32, #tpu.memory_space<vmem>>, vector<55x16xf32>
    tpu.vector_store %arg13[%c64_50, %c304_51], %103 {strides = array<i32>} : memref<128x336xf32, #tpu.memory_space<vmem>>, vector<55x16xf32>,
    %105 = vector.extract_strided_slice %22 {offsets = [10, 0], sizes = [54, 16], strides = [1, 1]} : vector<128x16xf32> to vector<54x16xf32>
    %c0_52 = arith.constant 0 : index
    %c320 = arith.constant 320 : index
    %106 = vector.load %arg13[%c0_52, %c320] : memref<128x336xf32, #tpu.memory_space<vmem>>, vector<54x16xf32>
    tpu.vector_store %arg13[%c0_52, %c320], %105 {strides = array<i32>} : memref<128x336xf32, #tpu.memory_space<vmem>>, vector<54x16xf32>,
    %107 = vector.extract_strided_slice %22 {offsets = [74, 0], sizes = [54, 16], strides = [1, 1]} : vector<128x16xf32> to vector<54x16xf32>
    %c64_53 = arith.constant 64 : index
    %c320_54 = arith.constant 320 : index
    %108 = vector.load %arg13[%c64_53, %c320_54] : memref<128x336xf32, #tpu.memory_space<vmem>>, vector<54x16xf32>
    tpu.vector_store %arg13[%c64_53, %c320_54], %107 {strides = array<i32>} : memref<128x336xf32, #tpu.memory_space<vmem>>, vector<54x16xf32>,
    %c0_55 = arith.constant 0 : index
    %c0_56 = arith.constant 0 : index
    %109 = vector.load %arg13[%c0_55, %c0_56] : memref<128x336xf32, #tpu.memory_space<vmem>>, vector<128x336xf32>
    %c0_57 = arith.constant 0 : index
    %c0_58 = arith.constant 0 : index
    %110 = vector.load %arg4[%c0_57, %c0_58] : memref<336x32xf32, #tpu.memory_space<vmem>>, vector<336x32xf32>
    %cst_59 = arith.constant dense<0.000000e+00> : vector<128x32xf32>
    %111 = tpu.matmul %109, %110, %cst_59 {dimension_numbers = #tpu.dot_dimension_numbers<[1], [0], [0], [1], [0, 0, 1, 1], [], []>} : vector<128x336xf32>, vector<336x32xf32>, vector<128x32xf32> -> vector<128x32xf32>
    %c0_60 = arith.constant 0 : index
    %c0_61 = arith.constant 0 : index
    %112 = vector.load %arg5[%c0_60, %c0_61] : memref<1x32xf32, #tpu.memory_space<vmem>>, vector<1x32xf32>
    %113 = vector.broadcast %112 : vector<1x32xf32> to vector<128x32xf32>
    %114 = arith.addf %111, %113 : vector<128x32xf32>
    %115 = vector.extract_strided_slice %6 {offsets = [0, 0], sizes = [64, 128], strides = [1, 1]} : vector<128x256xf32> to vector<64x128xf32>
    %116 = vector.extract_strided_slice %13 {offsets = [0, 0], sizes = [64, 128], strides = [1, 1]} : vector<128x256xf32> to vector<64x128xf32>
    %cst_62 = arith.constant dense<0.000000e+00> : vector<64x32xf32>
    %117 = tpu.matmul %115, %114, %cst_62 {dimension_numbers = #tpu.dot_dimension_numbers<[1], [0], [0], [1], [0, 0, 1, 1], [], []>} : vector<64x128xf32>, vector<128x32xf32>, vector<64x32xf32> -> vector<64x32xf32>
    %cst_63 = arith.constant dense<0.000000e+00> : vector<64x32xf32>
    %118 = tpu.matmul %116, %114, %cst_63 {dimension_numbers = #tpu.dot_dimension_numbers<[1], [0], [0], [1], [0, 0, 1, 1], [], []>} : vector<64x128xf32>, vector<128x32xf32>, vector<64x32xf32> -> vector<64x32xf32>
    %119 = arith.maximumf %117, %118 : vector<64x32xf32>
    %c0_64 = arith.constant 0 : index
    %c0_65 = arith.constant 0 : index
    %120 = vector.load %arg6[%c0_64, %c0_65] : memref<1x32xf32, #tpu.memory_space<vmem>>, vector<1x32xf32>
    %c0_66 = arith.constant 0 : index
    %c0_67 = arith.constant 0 : index
    %121 = vector.load %arg7[%c0_66, %c0_67] : memref<1x32xf32, #tpu.memory_space<vmem>>, vector<1x32xf32>
    %cst_68 = arith.constant dense<0.000000e+00> : vector<32xf32>
    %122 = vector.multi_reduction <add>, %119, %cst_68 [0] : vector<64x32xf32> to vector<32xf32>
    %123 = vector.shape_cast %122 : vector<32xf32> to vector<1x32xf32>
    %cst_69 = arith.constant 1.562500e-02 : f32
    %124 = vector.broadcast %cst_69 : f32 to vector<1x32xf32>
    %125 = arith.mulf %123, %124 : vector<1x32xf32>
    %126 = vector.broadcast %125 : vector<1x32xf32> to vector<64x32xf32>
    %127 = arith.subf %119, %126 : vector<64x32xf32>
    %128 = arith.mulf %127, %127 : vector<64x32xf32>
    %cst_70 = arith.constant dense<0.000000e+00> : vector<32xf32>
    %129 = vector.multi_reduction <add>, %128, %cst_70 [0] : vector<64x32xf32> to vector<32xf32>
    %130 = vector.shape_cast %129 : vector<32xf32> to vector<1x32xf32>
    %cst_71 = arith.constant 1.562500e-02 : f32
    %131 = vector.broadcast %cst_71 : f32 to vector<1x32xf32>
    %132 = arith.mulf %130, %131 : vector<1x32xf32>
    %cst_72 = arith.constant 9.99999974E-6 : f32
    %133 = vector.broadcast %cst_72 : f32 to vector<1x32xf32>
    %134 = arith.addf %132, %133 : vector<1x32xf32>
    %135 = math.rsqrt %134 : vector<1x32xf32>
    %136 = arith.mulf %120, %135 : vector<1x32xf32>
    %137 = vector.broadcast %136 : vector<1x32xf32> to vector<64x32xf32>
    %138 = arith.mulf %127, %137 : vector<64x32xf32>
    %139 = vector.broadcast %121 : vector<1x32xf32> to vector<64x32xf32>
    %140 = arith.addf %138, %139 : vector<64x32xf32>
    %cst_73 = arith.constant 0.000000e+00 : f32
    %141 = vector.broadcast %cst_73 : f32 to vector<64x672xf32>
    %c0_74 = arith.constant 0 : index
    %c0_75 = arith.constant 0 : index
    %142 = vector.load %arg14[%c0_74, %c0_75] : memref<64x672xf32, #tpu.memory_space<vmem>>, vector<64x672xf32>
    tpu.vector_store %arg14[%c0_74, %c0_75], %141 {strides = array<i32>} : memref<64x672xf32, #tpu.memory_space<vmem>>, vector<64x672xf32>,
    %143 = vector.extract_strided_slice %140 {offsets = [0, 0], sizes = [22, 32], strides = [1, 1]} : vector<64x32xf32> to vector<22x32xf32>
    %c10_76 = arith.constant 10 : index
    %c0_77 = arith.constant 0 : index
    %144 = vector.load %arg14[%c10_76, %c0_77] : memref<64x672xf32, #tpu.memory_space<vmem>>, vector<22x32xf32>
    tpu.vector_store %arg14[%c10_76, %c0_77], %143 {strides = array<i32>} : memref<64x672xf32, #tpu.memory_space<vmem>>, vector<22x32xf32>,
    %145 = vector.extract_strided_slice %140 {offsets = [32, 0], sizes = [22, 32], strides = [1, 1]} : vector<64x32xf32> to vector<22x32xf32>
    %c42 = arith.constant 42 : index
    %c0_78 = arith.constant 0 : index
    %146 = vector.load %arg14[%c42, %c0_78] : memref<64x672xf32, #tpu.memory_space<vmem>>, vector<22x32xf32>
    tpu.vector_store %arg14[%c42, %c0_78], %145 {strides = array<i32>} : memref<64x672xf32, #tpu.memory_space<vmem>>, vector<22x32xf32>,
    %147 = vector.extract_strided_slice %140 {offsets = [0, 0], sizes = [23, 32], strides = [1, 1]} : vector<64x32xf32> to vector<23x32xf32>
    %c9_79 = arith.constant 9 : index
    %c32_80 = arith.constant 32 : index
    %148 = vector.load %arg14[%c9_79, %c32_80] : memref<64x672xf32, #tpu.memory_space<vmem>>, vector<23x32xf32>
    tpu.vector_store %arg14[%c9_79, %c32_80], %147 {strides = array<i32>} : memref<64x672xf32, #tpu.memory_space<vmem>>, vector<23x32xf32>,
    %149 = vector.extract_strided_slice %140 {offsets = [32, 0], sizes = [23, 32], strides = [1, 1]} : vector<64x32xf32> to vector<23x32xf32>
    %c41 = arith.constant 41 : index
    %c32_81 = arith.constant 32 : index
    %150 = vector.load %arg14[%c41, %c32_81] : memref<64x672xf32, #tpu.memory_space<vmem>>, vector<23x32xf32>
    tpu.vector_store %arg14[%c41, %c32_81], %149 {strides = array<i32>} : memref<64x672xf32, #tpu.memory_space<vmem>>, vector<23x32xf32>,
    %151 = vector.extract_strided_slice %140 {offsets = [0, 0], sizes = [24, 32], strides = [1, 1]} : vector<64x32xf32> to vector<24x32xf32>
    %c8_82 = arith.constant 8 : index
    %c64_83 = arith.constant 64 : index
    %152 = vector.load %arg14[%c8_82, %c64_83] : memref<64x672xf32, #tpu.memory_space<vmem>>, vector<24x32xf32>
    tpu.vector_store %arg14[%c8_82, %c64_83], %151 {strides = array<i32>} : memref<64x672xf32, #tpu.memory_space<vmem>>, vector<24x32xf32>,
    %153 = vector.extract_strided_slice %140 {offsets = [32, 0], sizes = [24, 32], strides = [1, 1]} : vector<64x32xf32> to vector<24x32xf32>
    %c40 = arith.constant 40 : index
    %c64_84 = arith.constant 64 : index
    %154 = vector.load %arg14[%c40, %c64_84] : memref<64x672xf32, #tpu.memory_space<vmem>>, vector<24x32xf32>
    tpu.vector_store %arg14[%c40, %c64_84], %153 {strides = array<i32>} : memref<64x672xf32, #tpu.memory_space<vmem>>, vector<24x32xf32>,
    %155 = vector.extract_strided_slice %140 {offsets = [0, 0], sizes = [25, 32], strides = [1, 1]} : vector<64x32xf32> to vector<25x32xf32>
    %c7_85 = arith.constant 7 : index
    %c96_86 = arith.constant 96 : index
    %156 = vector.load %arg14[%c7_85, %c96_86] : memref<64x672xf32, #tpu.memory_space<vmem>>, vector<25x32xf32>
    tpu.vector_store %arg14[%c7_85, %c96_86], %155 {strides = array<i32>} : memref<64x672xf32, #tpu.memory_space<vmem>>, vector<25x32xf32>,
    %157 = vector.extract_strided_slice %140 {offsets = [32, 0], sizes = [25, 32], strides = [1, 1]} : vector<64x32xf32> to vector<25x32xf32>
    %c39 = arith.constant 39 : index
    %c96_87 = arith.constant 96 : index
    %158 = vector.load %arg14[%c39, %c96_87] : memref<64x672xf32, #tpu.memory_space<vmem>>, vector<25x32xf32>
    tpu.vector_store %arg14[%c39, %c96_87], %157 {strides = array<i32>} : memref<64x672xf32, #tpu.memory_space<vmem>>, vector<25x32xf32>,
    %159 = vector.extract_strided_slice %140 {offsets = [0, 0], sizes = [26, 32], strides = [1, 1]} : vector<64x32xf32> to vector<26x32xf32>
    %c6_88 = arith.constant 6 : index
    %c128_89 = arith.constant 128 : index
    %160 = vector.load %arg14[%c6_88, %c128_89] : memref<64x672xf32, #tpu.memory_space<vmem>>, vector<26x32xf32>
    tpu.vector_store %arg14[%c6_88, %c128_89], %159 {strides = array<i32>} : memref<64x672xf32, #tpu.memory_space<vmem>>, vector<26x32xf32>,
    %161 = vector.extract_strided_slice %140 {offsets = [32, 0], sizes = [26, 32], strides = [1, 1]} : vector<64x32xf32> to vector<26x32xf32>
    %c38 = arith.constant 38 : index
    %c128_90 = arith.constant 128 : index
    %162 = vector.load %arg14[%c38, %c128_90] : memref<64x672xf32, #tpu.memory_space<vmem>>, vector<26x32xf32>
    tpu.vector_store %arg14[%c38, %c128_90], %161 {strides = array<i32>} : memref<64x672xf32, #tpu.memory_space<vmem>>, vector<26x32xf32>,
    %163 = vector.extract_strided_slice %140 {offsets = [0, 0], sizes = [27, 32], strides = [1, 1]} : vector<64x32xf32> to vector<27x32xf32>
    %c5_91 = arith.constant 5 : index
    %c160_92 = arith.constant 160 : index
    %164 = vector.load %arg14[%c5_91, %c160_92] : memref<64x672xf32, #tpu.memory_space<vmem>>, vector<27x32xf32>
    tpu.vector_store %arg14[%c5_91, %c160_92], %163 {strides = array<i32>} : memref<64x672xf32, #tpu.memory_space<vmem>>, vector<27x32xf32>,
    %165 = vector.extract_strided_slice %140 {offsets = [32, 0], sizes = [27, 32], strides = [1, 1]} : vector<64x32xf32> to vector<27x32xf32>
    %c37 = arith.constant 37 : index
    %c160_93 = arith.constant 160 : index
    %166 = vector.load %arg14[%c37, %c160_93] : memref<64x672xf32, #tpu.memory_space<vmem>>, vector<27x32xf32>
    tpu.vector_store %arg14[%c37, %c160_93], %165 {strides = array<i32>} : memref<64x672xf32, #tpu.memory_space<vmem>>, vector<27x32xf32>,
    %167 = vector.extract_strided_slice %140 {offsets = [0, 0], sizes = [28, 32], strides = [1, 1]} : vector<64x32xf32> to vector<28x32xf32>
    %c4_94 = arith.constant 4 : index
    %c192_95 = arith.constant 192 : index
    %168 = vector.load %arg14[%c4_94, %c192_95] : memref<64x672xf32, #tpu.memory_space<vmem>>, vector<28x32xf32>
    tpu.vector_store %arg14[%c4_94, %c192_95], %167 {strides = array<i32>} : memref<64x672xf32, #tpu.memory_space<vmem>>, vector<28x32xf32>,
    %169 = vector.extract_strided_slice %140 {offsets = [32, 0], sizes = [28, 32], strides = [1, 1]} : vector<64x32xf32> to vector<28x32xf32>
    %c36 = arith.constant 36 : index
    %c192_96 = arith.constant 192 : index
    %170 = vector.load %arg14[%c36, %c192_96] : memref<64x672xf32, #tpu.memory_space<vmem>>, vector<28x32xf32>
    tpu.vector_store %arg14[%c36, %c192_96], %169 {strides = array<i32>} : memref<64x672xf32, #tpu.memory_space<vmem>>, vector<28x32xf32>,
    %171 = vector.extract_strided_slice %140 {offsets = [0, 0], sizes = [29, 32], strides = [1, 1]} : vector<64x32xf32> to vector<29x32xf32>
    %c3_97 = arith.constant 3 : index
    %c224_98 = arith.constant 224 : index
    %172 = vector.load %arg14[%c3_97, %c224_98] : memref<64x672xf32, #tpu.memory_space<vmem>>, vector<29x32xf32>
    tpu.vector_store %arg14[%c3_97, %c224_98], %171 {strides = array<i32>} : memref<64x672xf32, #tpu.memory_space<vmem>>, vector<29x32xf32>,
    %173 = vector.extract_strided_slice %140 {offsets = [32, 0], sizes = [29, 32], strides = [1, 1]} : vector<64x32xf32> to vector<29x32xf32>
    %c35 = arith.constant 35 : index
    %c224_99 = arith.constant 224 : index
    %174 = vector.load %arg14[%c35, %c224_99] : memref<64x672xf32, #tpu.memory_space<vmem>>, vector<29x32xf32>
    tpu.vector_store %arg14[%c35, %c224_99], %173 {strides = array<i32>} : memref<64x672xf32, #tpu.memory_space<vmem>>, vector<29x32xf32>,
    %175 = vector.extract_strided_slice %140 {offsets = [0, 0], sizes = [30, 32], strides = [1, 1]} : vector<64x32xf32> to vector<30x32xf32>
    %c2_100 = arith.constant 2 : index
    %c256_101 = arith.constant 256 : index
    %176 = vector.load %arg14[%c2_100, %c256_101] : memref<64x672xf32, #tpu.memory_space<vmem>>, vector<30x32xf32>
    tpu.vector_store %arg14[%c2_100, %c256_101], %175 {strides = array<i32>} : memref<64x672xf32, #tpu.memory_space<vmem>>, vector<30x32xf32>,
    %177 = vector.extract_strided_slice %140 {offsets = [32, 0], sizes = [30, 32], strides = [1, 1]} : vector<64x32xf32> to vector<30x32xf32>
    %c34 = arith.constant 34 : index
    %c256_102 = arith.constant 256 : index
    %178 = vector.load %arg14[%c34, %c256_102] : memref<64x672xf32, #tpu.memory_space<vmem>>, vector<30x32xf32>
    tpu.vector_store %arg14[%c34, %c256_102], %177 {strides = array<i32>} : memref<64x672xf32, #tpu.memory_space<vmem>>, vector<30x32xf32>,
    %179 = vector.extract_strided_slice %140 {offsets = [0, 0], sizes = [31, 32], strides = [1, 1]} : vector<64x32xf32> to vector<31x32xf32>
    %c1_103 = arith.constant 1 : index
    %c288_104 = arith.constant 288 : index
    %180 = vector.load %arg14[%c1_103, %c288_104] : memref<64x672xf32, #tpu.memory_space<vmem>>, vector<31x32xf32>
    tpu.vector_store %arg14[%c1_103, %c288_104], %179 {strides = array<i32>} : memref<64x672xf32, #tpu.memory_space<vmem>>, vector<31x32xf32>,
    %181 = vector.extract_strided_slice %140 {offsets = [32, 0], sizes = [31, 32], strides = [1, 1]} : vector<64x32xf32> to vector<31x32xf32>
    %c33 = arith.constant 33 : index
    %c288_105 = arith.constant 288 : index
    %182 = vector.load %arg14[%c33, %c288_105] : memref<64x672xf32, #tpu.memory_space<vmem>>, vector<31x32xf32>
    tpu.vector_store %arg14[%c33, %c288_105], %181 {strides = array<i32>} : memref<64x672xf32, #tpu.memory_space<vmem>>, vector<31x32xf32>,
    %183 = vector.extract_strided_slice %140 {offsets = [0, 0], sizes = [32, 32], strides = [1, 1]} : vector<64x32xf32> to vector<32x32xf32>
    %c0_106 = arith.constant 0 : index
    %c320_107 = arith.constant 320 : index
    %184 = vector.load %arg14[%c0_106, %c320_107] : memref<64x672xf32, #tpu.memory_space<vmem>>, vector<32x32xf32>
    tpu.vector_store %arg14[%c0_106, %c320_107], %183 {strides = array<i32>} : memref<64x672xf32, #tpu.memory_space<vmem>>, vector<32x32xf32>,
    %185 = vector.extract_strided_slice %140 {offsets = [32, 0], sizes = [32, 32], strides = [1, 1]} : vector<64x32xf32> to vector<32x32xf32>
    %c32_108 = arith.constant 32 : index
    %c320_109 = arith.constant 320 : index
    %186 = vector.load %arg14[%c32_108, %c320_109] : memref<64x672xf32, #tpu.memory_space<vmem>>, vector<32x32xf32>
    tpu.vector_store %arg14[%c32_108, %c320_109], %185 {strides = array<i32>} : memref<64x672xf32, #tpu.memory_space<vmem>>, vector<32x32xf32>,
    %187 = vector.extract_strided_slice %140 {offsets = [1, 0], sizes = [31, 32], strides = [1, 1]} : vector<64x32xf32> to vector<31x32xf32>
    %c0_110 = arith.constant 0 : index
    %c352 = arith.constant 352 : index
    %188 = vector.load %arg14[%c0_110, %c352] : memref<64x672xf32, #tpu.memory_space<vmem>>, vector<31x32xf32>
    tpu.vector_store %arg14[%c0_110, %c352], %187 {strides = array<i32>} : memref<64x672xf32, #tpu.memory_space<vmem>>, vector<31x32xf32>,
    %189 = vector.extract_strided_slice %140 {offsets = [33, 0], sizes = [31, 32], strides = [1, 1]} : vector<64x32xf32> to vector<31x32xf32>
    %c32_111 = arith.constant 32 : index
    %c352_112 = arith.constant 352 : index
    %190 = vector.load %arg14[%c32_111, %c352_112] : memref<64x672xf32, #tpu.memory_space<vmem>>, vector<31x32xf32>
    tpu.vector_store %arg14[%c32_111, %c352_112], %189 {strides = array<i32>} : memref<64x672xf32, #tpu.memory_space<vmem>>, vector<31x32xf32>,
    %191 = vector.extract_strided_slice %140 {offsets = [2, 0], sizes = [30, 32], strides = [1, 1]} : vector<64x32xf32> to vector<30x32xf32>
    %c0_113 = arith.constant 0 : index
    %c384 = arith.constant 384 : index
    %192 = vector.load %arg14[%c0_113, %c384] : memref<64x672xf32, #tpu.memory_space<vmem>>, vector<30x32xf32>
    tpu.vector_store %arg14[%c0_113, %c384], %191 {strides = array<i32>} : memref<64x672xf32, #tpu.memory_space<vmem>>, vector<30x32xf32>,
    %193 = vector.extract_strided_slice %140 {offsets = [34, 0], sizes = [30, 32], strides = [1, 1]} : vector<64x32xf32> to vector<30x32xf32>
    %c32_114 = arith.constant 32 : index
    %c384_115 = arith.constant 384 : index
    %194 = vector.load %arg14[%c32_114, %c384_115] : memref<64x672xf32, #tpu.memory_space<vmem>>, vector<30x32xf32>
    tpu.vector_store %arg14[%c32_114, %c384_115], %193 {strides = array<i32>} : memref<64x672xf32, #tpu.memory_space<vmem>>, vector<30x32xf32>,
    %195 = vector.extract_strided_slice %140 {offsets = [3, 0], sizes = [29, 32], strides = [1, 1]} : vector<64x32xf32> to vector<29x32xf32>
    %c0_116 = arith.constant 0 : index
    %c416 = arith.constant 416 : index
    %196 = vector.load %arg14[%c0_116, %c416] : memref<64x672xf32, #tpu.memory_space<vmem>>, vector<29x32xf32>
    tpu.vector_store %arg14[%c0_116, %c416], %195 {strides = array<i32>} : memref<64x672xf32, #tpu.memory_space<vmem>>, vector<29x32xf32>,
    %197 = vector.extract_strided_slice %140 {offsets = [35, 0], sizes = [29, 32], strides = [1, 1]} : vector<64x32xf32> to vector<29x32xf32>
    %c32_117 = arith.constant 32 : index
    %c416_118 = arith.constant 416 : index
    %198 = vector.load %arg14[%c32_117, %c416_118] : memref<64x672xf32, #tpu.memory_space<vmem>>, vector<29x32xf32>
    tpu.vector_store %arg14[%c32_117, %c416_118], %197 {strides = array<i32>} : memref<64x672xf32, #tpu.memory_space<vmem>>, vector<29x32xf32>,
    %199 = vector.extract_strided_slice %140 {offsets = [4, 0], sizes = [28, 32], strides = [1, 1]} : vector<64x32xf32> to vector<28x32xf32>
    %c0_119 = arith.constant 0 : index
    %c448 = arith.constant 448 : index
    %200 = vector.load %arg14[%c0_119, %c448] : memref<64x672xf32, #tpu.memory_space<vmem>>, vector<28x32xf32>
    tpu.vector_store %arg14[%c0_119, %c448], %199 {strides = array<i32>} : memref<64x672xf32, #tpu.memory_space<vmem>>, vector<28x32xf32>,
    %201 = vector.extract_strided_slice %140 {offsets = [36, 0], sizes = [28, 32], strides = [1, 1]} : vector<64x32xf32> to vector<28x32xf32>
    %c32_120 = arith.constant 32 : index
    %c448_121 = arith.constant 448 : index
    %202 = vector.load %arg14[%c32_120, %c448_121] : memref<64x672xf32, #tpu.memory_space<vmem>>, vector<28x32xf32>
    tpu.vector_store %arg14[%c32_120, %c448_121], %201 {strides = array<i32>} : memref<64x672xf32, #tpu.memory_space<vmem>>, vector<28x32xf32>,
    %203 = vector.extract_strided_slice %140 {offsets = [5, 0], sizes = [27, 32], strides = [1, 1]} : vector<64x32xf32> to vector<27x32xf32>
    %c0_122 = arith.constant 0 : index
    %c480 = arith.constant 480 : index
    %204 = vector.load %arg14[%c0_122, %c480] : memref<64x672xf32, #tpu.memory_space<vmem>>, vector<27x32xf32>
    tpu.vector_store %arg14[%c0_122, %c480], %203 {strides = array<i32>} : memref<64x672xf32, #tpu.memory_space<vmem>>, vector<27x32xf32>,
    %205 = vector.extract_strided_slice %140 {offsets = [37, 0], sizes = [27, 32], strides = [1, 1]} : vector<64x32xf32> to vector<27x32xf32>
    %c32_123 = arith.constant 32 : index
    %c480_124 = arith.constant 480 : index
    %206 = vector.load %arg14[%c32_123, %c480_124] : memref<64x672xf32, #tpu.memory_space<vmem>>, vector<27x32xf32>
    tpu.vector_store %arg14[%c32_123, %c480_124], %205 {strides = array<i32>} : memref<64x672xf32, #tpu.memory_space<vmem>>, vector<27x32xf32>,
    %207 = vector.extract_strided_slice %140 {offsets = [6, 0], sizes = [26, 32], strides = [1, 1]} : vector<64x32xf32> to vector<26x32xf32>
    %c0_125 = arith.constant 0 : index
    %c512 = arith.constant 512 : index
    %208 = vector.load %arg14[%c0_125, %c512] : memref<64x672xf32, #tpu.memory_space<vmem>>, vector<26x32xf32>
    tpu.vector_store %arg14[%c0_125, %c512], %207 {strides = array<i32>} : memref<64x672xf32, #tpu.memory_space<vmem>>, vector<26x32xf32>,
    %209 = vector.extract_strided_slice %140 {offsets = [38, 0], sizes = [26, 32], strides = [1, 1]} : vector<64x32xf32> to vector<26x32xf32>
    %c32_126 = arith.constant 32 : index
    %c512_127 = arith.constant 512 : index
    %210 = vector.load %arg14[%c32_126, %c512_127] : memref<64x672xf32, #tpu.memory_space<vmem>>, vector<26x32xf32>
    tpu.vector_store %arg14[%c32_126, %c512_127], %209 {strides = array<i32>} : memref<64x672xf32, #tpu.memory_space<vmem>>, vector<26x32xf32>,
    %211 = vector.extract_strided_slice %140 {offsets = [7, 0], sizes = [25, 32], strides = [1, 1]} : vector<64x32xf32> to vector<25x32xf32>
    %c0_128 = arith.constant 0 : index
    %c544 = arith.constant 544 : index
    %212 = vector.load %arg14[%c0_128, %c544] : memref<64x672xf32, #tpu.memory_space<vmem>>, vector<25x32xf32>
    tpu.vector_store %arg14[%c0_128, %c544], %211 {strides = array<i32>} : memref<64x672xf32, #tpu.memory_space<vmem>>, vector<25x32xf32>,
    %213 = vector.extract_strided_slice %140 {offsets = [39, 0], sizes = [25, 32], strides = [1, 1]} : vector<64x32xf32> to vector<25x32xf32>
    %c32_129 = arith.constant 32 : index
    %c544_130 = arith.constant 544 : index
    %214 = vector.load %arg14[%c32_129, %c544_130] : memref<64x672xf32, #tpu.memory_space<vmem>>, vector<25x32xf32>
    tpu.vector_store %arg14[%c32_129, %c544_130], %213 {strides = array<i32>} : memref<64x672xf32, #tpu.memory_space<vmem>>, vector<25x32xf32>,
    %215 = vector.extract_strided_slice %140 {offsets = [8, 0], sizes = [24, 32], strides = [1, 1]} : vector<64x32xf32> to vector<24x32xf32>
    %c0_131 = arith.constant 0 : index
    %c576 = arith.constant 576 : index
    %216 = vector.load %arg14[%c0_131, %c576] : memref<64x672xf32, #tpu.memory_space<vmem>>, vector<24x32xf32>
    tpu.vector_store %arg14[%c0_131, %c576], %215 {strides = array<i32>} : memref<64x672xf32, #tpu.memory_space<vmem>>, vector<24x32xf32>,
    %217 = vector.extract_strided_slice %140 {offsets = [40, 0], sizes = [24, 32], strides = [1, 1]} : vector<64x32xf32> to vector<24x32xf32>
    %c32_132 = arith.constant 32 : index
    %c576_133 = arith.constant 576 : index
    %218 = vector.load %arg14[%c32_132, %c576_133] : memref<64x672xf32, #tpu.memory_space<vmem>>, vector<24x32xf32>
    tpu.vector_store %arg14[%c32_132, %c576_133], %217 {strides = array<i32>} : memref<64x672xf32, #tpu.memory_space<vmem>>, vector<24x32xf32>,
    %219 = vector.extract_strided_slice %140 {offsets = [9, 0], sizes = [23, 32], strides = [1, 1]} : vector<64x32xf32> to vector<23x32xf32>
    %c0_134 = arith.constant 0 : index
    %c608 = arith.constant 608 : index
    %220 = vector.load %arg14[%c0_134, %c608] : memref<64x672xf32, #tpu.memory_space<vmem>>, vector<23x32xf32>
    tpu.vector_store %arg14[%c0_134, %c608], %219 {strides = array<i32>} : memref<64x672xf32, #tpu.memory_space<vmem>>, vector<23x32xf32>,
    %221 = vector.extract_strided_slice %140 {offsets = [41, 0], sizes = [23, 32], strides = [1, 1]} : vector<64x32xf32> to vector<23x32xf32>
    %c32_135 = arith.constant 32 : index
    %c608_136 = arith.constant 608 : index
    %222 = vector.load %arg14[%c32_135, %c608_136] : memref<64x672xf32, #tpu.memory_space<vmem>>, vector<23x32xf32>
    tpu.vector_store %arg14[%c32_135, %c608_136], %221 {strides = array<i32>} : memref<64x672xf32, #tpu.memory_space<vmem>>, vector<23x32xf32>,
    %223 = vector.extract_strided_slice %140 {offsets = [10, 0], sizes = [22, 32], strides = [1, 1]} : vector<64x32xf32> to vector<22x32xf32>
    %c0_137 = arith.constant 0 : index
    %c640 = arith.constant 640 : index
    %224 = vector.load %arg14[%c0_137, %c640] : memref<64x672xf32, #tpu.memory_space<vmem>>, vector<22x32xf32>
    tpu.vector_store %arg14[%c0_137, %c640], %223 {strides = array<i32>} : memref<64x672xf32, #tpu.memory_space<vmem>>, vector<22x32xf32>,
    %225 = vector.extract_strided_slice %140 {offsets = [42, 0], sizes = [22, 32], strides = [1, 1]} : vector<64x32xf32> to vector<22x32xf32>
    %c32_138 = arith.constant 32 : index
    %c640_139 = arith.constant 640 : index
    %226 = vector.load %arg14[%c32_138, %c640_139] : memref<64x672xf32, #tpu.memory_space<vmem>>, vector<22x32xf32>
    tpu.vector_store %arg14[%c32_138, %c640_139], %225 {strides = array<i32>} : memref<64x672xf32, #tpu.memory_space<vmem>>, vector<22x32xf32>,
    %c0_140 = arith.constant 0 : index
    %c0_141 = arith.constant 0 : index
    %227 = vector.load %arg14[%c0_140, %c0_141] : memref<64x672xf32, #tpu.memory_space<vmem>>, vector<64x672xf32>
    %c0_142 = arith.constant 0 : index
    %c0_143 = arith.constant 0 : index
    %228 = vector.load %arg8[%c0_142, %c0_143] : memref<672x64xf32, #tpu.memory_space<vmem>>, vector<672x64xf32>
    %cst_144 = arith.constant dense<0.000000e+00> : vector<64x64xf32>
    %229 = tpu.matmul %227, %228, %cst_144 {dimension_numbers = #tpu.dot_dimension_numbers<[1], [0], [0], [1], [0, 0, 1, 1], [], []>} : vector<64x672xf32>, vector<672x64xf32>, vector<64x64xf32> -> vector<64x64xf32>
    %c0_145 = arith.constant 0 : index
    %c0_146 = arith.constant 0 : index
    %230 = vector.load %arg9[%c0_145, %c0_146] : memref<1x64xf32, #tpu.memory_space<vmem>>, vector<1x64xf32>
    %231 = vector.broadcast %230 : vector<1x64xf32> to vector<64x64xf32>
    %232 = arith.addf %229, %231 : vector<64x64xf32>
    %233 = vector.extract_strided_slice %6 {offsets = [0, 0], sizes = [32, 64], strides = [1, 1]} : vector<128x256xf32> to vector<32x64xf32>
    %234 = vector.extract_strided_slice %13 {offsets = [0, 0], sizes = [32, 64], strides = [1, 1]} : vector<128x256xf32> to vector<32x64xf32>
    %cst_147 = arith.constant dense<0.000000e+00> : vector<32x64xf32>
    %235 = tpu.matmul %233, %232, %cst_147 {dimension_numbers = #tpu.dot_dimension_numbers<[1], [0], [0], [1], [0, 0, 1, 1], [], []>} : vector<32x64xf32>, vector<64x64xf32>, vector<32x64xf32> -> vector<32x64xf32>
    %cst_148 = arith.constant dense<0.000000e+00> : vector<32x64xf32>
    %236 = tpu.matmul %234, %232, %cst_148 {dimension_numbers = #tpu.dot_dimension_numbers<[1], [0], [0], [1], [0, 0, 1, 1], [], []>} : vector<32x64xf32>, vector<64x64xf32>, vector<32x64xf32> -> vector<32x64xf32>
    %237 = arith.maximumf %235, %236 : vector<32x64xf32>
    %c0_149 = arith.constant 0 : index
    %c0_150 = arith.constant 0 : index
    %238 = vector.load %arg10[%c0_149, %c0_150] : memref<1x64xf32, #tpu.memory_space<vmem>>, vector<1x64xf32>
    %c0_151 = arith.constant 0 : index
    %c0_152 = arith.constant 0 : index
    %239 = vector.load %arg11[%c0_151, %c0_152] : memref<1x64xf32, #tpu.memory_space<vmem>>, vector<1x64xf32>
    %cst_153 = arith.constant dense<0.000000e+00> : vector<64xf32>
    %240 = vector.multi_reduction <add>, %237, %cst_153 [0] : vector<32x64xf32> to vector<64xf32>
    %241 = vector.shape_cast %240 : vector<64xf32> to vector<1x64xf32>
    %cst_154 = arith.constant 3.125000e-02 : f32
    %242 = vector.broadcast %cst_154 : f32 to vector<1x64xf32>
    %243 = arith.mulf %241, %242 : vector<1x64xf32>
    %244 = vector.broadcast %243 : vector<1x64xf32> to vector<32x64xf32>
    %245 = arith.subf %237, %244 : vector<32x64xf32>
    %246 = arith.mulf %245, %245 : vector<32x64xf32>
    %cst_155 = arith.constant dense<0.000000e+00> : vector<64xf32>
    %247 = vector.multi_reduction <add>, %246, %cst_155 [0] : vector<32x64xf32> to vector<64xf32>
    %248 = vector.shape_cast %247 : vector<64xf32> to vector<1x64xf32>
    %cst_156 = arith.constant 3.125000e-02 : f32
    %249 = vector.broadcast %cst_156 : f32 to vector<1x64xf32>
    %250 = arith.mulf %248, %249 : vector<1x64xf32>
    %cst_157 = arith.constant 9.99999974E-6 : f32
    %251 = vector.broadcast %cst_157 : f32 to vector<1x64xf32>
    %252 = arith.addf %250, %251 : vector<1x64xf32>
    %253 = math.rsqrt %252 : vector<1x64xf32>
    %254 = arith.mulf %238, %253 : vector<1x64xf32>
    %255 = vector.broadcast %254 : vector<1x64xf32> to vector<32x64xf32>
    %256 = arith.mulf %245, %255 : vector<32x64xf32>
    %257 = vector.broadcast %239 : vector<1x64xf32> to vector<32x64xf32>
    %258 = arith.addf %256, %257 : vector<32x64xf32>
    %c0_158 = arith.constant 0 : index
    %c0_159 = arith.constant 0 : index
    %259 = vector.load %arg12[%c0_158, %c0_159] : memref<32x64xf32, #tpu.memory_space<vmem>>, vector<32x64xf32>
    tpu.vector_store %arg12[%c0_158, %c0_159], %258 {strides = array<i32>} : memref<32x64xf32, #tpu.memory_space<vmem>>, vector<32x64xf32>,
    return
  }
  func.func @transform_0(%arg0: i32) -> (i32, i32) {
    %c0_i32 = arith.constant 0 : i32
    %c0_i32_0 = arith.constant 0 : i32
    %c0_i32_1 = arith.constant 0 : i32
    return %c0_i32, %c0_i32_0 : i32, i32
  }
  func.func @transform_1(%arg0: i32) -> (i32, i32) {
    %c0_i32 = arith.constant 0 : i32
    %c0_i32_0 = arith.constant 0 : i32
    %c0_i32_1 = arith.constant 0 : i32
    return %c0_i32, %c0_i32_0 : i32, i32
  }
  func.func @transform_2(%arg0: i32) -> (i32, i32) {
    %c0_i32 = arith.constant 0 : i32
    %c0_i32_0 = arith.constant 0 : i32
    %c0_i32_1 = arith.constant 0 : i32
    return %c0_i32, %c0_i32_0 : i32, i32
  }
  func.func @transform_3(%arg0: i32) -> (i32, i32) {
    %c0_i32 = arith.constant 0 : i32
    %c0_i32_0 = arith.constant 0 : i32
    %c0_i32_1 = arith.constant 0 : i32
    return %c0_i32, %c0_i32_0 : i32, i32
  }
  func.func @transform_4(%arg0: i32) -> (i32, i32) {
    %c0_i32 = arith.constant 0 : i32
    %c0_i32_0 = arith.constant 0 : i32
    %c0_i32_1 = arith.constant 0 : i32
    return %c0_i32, %c0_i32_0 : i32, i32
  }
  func.func @transform_5(%arg0: i32) -> (i32, i32) {
    %c0_i32 = arith.constant 0 : i32
    %c0_i32_0 = arith.constant 0 : i32
    %c0_i32_1 = arith.constant 0 : i32
    return %c0_i32, %c0_i32_0 : i32, i32
  }
  func.func @transform_6(%arg0: i32) -> (i32, i32) {
    %c0_i32 = arith.constant 0 : i32
    %c0_i32_0 = arith.constant 0 : i32
    %c0_i32_1 = arith.constant 0 : i32
    return %c0_i32, %c0_i32_0 : i32, i32
  }
  func.func @transform_7(%arg0: i32) -> (i32, i32) {
    %c0_i32 = arith.constant 0 : i32
    %c0_i32_0 = arith.constant 0 : i32
    %c0_i32_1 = arith.constant 0 : i32
    return %c0_i32, %c0_i32_0 : i32, i32
  }
  func.func @transform_8(%arg0: i32) -> (i32, i32) {
    %c0_i32 = arith.constant 0 : i32
    %c0_i32_0 = arith.constant 0 : i32
    %c0_i32_1 = arith.constant 0 : i32
    return %c0_i32, %c0_i32_0 : i32, i32
  }
  func.func @transform_9(%arg0: i32) -> (i32, i32) {
    %c0_i32 = arith.constant 0 : i32
    %c0_i32_0 = arith.constant 0 : i32
    %c0_i32_1 = arith.constant 0 : i32
    return %c0_i32, %c0_i32_0 : i32, i32
  }
  func.func @transform_10(%arg0: i32) -> (i32, i32) {
    %c0_i32 = arith.constant 0 : i32
    %c0_i32_0 = arith.constant 0 : i32
    %c0_i32_1 = arith.constant 0 : i32
    return %c0_i32, %c0_i32_0 : i32, i32
  }
  func.func @transform_11(%arg0: i32) -> (i32, i32) {
    %c0_i32 = arith.constant 0 : i32
    %c0_i32_0 = arith.constant 0 : i32
    %c0_i32_1 = arith.constant 0 : i32
    return %c0_i32, %c0_i32_0 : i32, i32
  }
}

</mosaic_0001>

<bundles_post_ra>
// kernel: cnn_forward.1
= control target key start
LH: loop header
LB: loop body
LE: loop exit
PB: predicated region body
PF: predicated region fallthrough
CT: control target
= control target key end

     0   :  { %vm419_vm0 = vcmask 1044480   ;;  %vm322_vm1 = vcmask 171008   ;;  %s6696_s0 = inlined_call_operand.vmem [shape: f32[256,21], index: 0, kind: input, shape index: {}]   ;;  %s6697_s1 = inlined_call_operand.vmem [shape: f32[21,16], index: 1, kind: input, shape index: {}]   ;;  %s6698_s2 = inlined_call_operand.vmem [shape: f32[1,16], index: 2, kind: input, shape index: {}]   ;;  %s6699_s3 = inlined_call_operand.vmem [shape: f32[336,32], index: 3, kind: input, shape index: {}]   ;;  %s6700_s4 = inlined_call_operand.vmem [shape: f32[1,32], index: 4, kind: input, shape index: {}]   ;;  %s6701_s5 = inlined_call_operand.vmem [shape: f32[1,32], index: 5, kind: input, shape index: {}]   ;;  %s6702_s6 = inlined_call_operand.vmem [shape: f32[1,32], index: 6, kind: input, shape index: {}]   ;;  %s6703_s7 = inlined_call_operand.vmem [shape: f32[672,64], index: 7, kind: input, shape index: {}]   ;;  %s6704_s8 = inlined_call_operand.vmem [shape: f32[1,64], index: 8, kind: input, shape index: {}]   ;;  %s6705_s9 = inlined_call_operand.vmem [shape: f32[1,64], index: 9, kind: input, shape index: {}]   ;;  %s6706_s10 = inlined_call_operand.vmem [shape: f32[1,64], index: 10, kind: input, shape index: {}]   ;;  %s6707_s11 = inlined_call_operand.hbm [shape: f32[32,64], index: 11, kind: output, shape index: {}]  }
   0x1   :  { %v317_v0 = vld [vmem:[%s6697_s1 + $0x10] sm:$0x1f]  ;;  %v316_v1 = vld [vmem:[%s6697_s1 + $0x8] sm:$0xff]  ;;  %v315_v2 = vld [vmem:[%s6697_s1] sm:$0xff] }
   0x2   :  { %3517 = vmatpush.msk.msra.mxu0 %vm419_vm0, %v317_v0  ;;  %v283_v3 = vld [vmem:[%s6696_s0] sm:$0xff] }
   0x4   :  { %437 = vmatpush.msra.mxu0 %v316_v1 }
   0x5   :  { %16 = vsyncpa [#allocation5], 0  ;;  %v284_v4 = vld [vmem:[%s6696_s0 + $0x8] sm:$0xff]  ;;  %v285_v5 = vld [vmem:[%s6696_s0 + $0x10] sm:$0xff]  ;;  %v3714_v58 = vmov 0.0   ;;  %v39_v1 = vlaneseq  ;;  %s3718_s1 = smov 16  }
   0x6   :  { %438 = vmatpush.msra.mxu0 %v315_v2  ;;  %v286_v6 = vld [vmem:[%s6696_s0 + $0x18] sm:$0xff]  ;;  %v287_v7 = vld [vmem:[%s6696_s0 + $0x20] sm:$0xff]  ;;  %v288_v8 = vld [vmem:[%s6696_s0 + $0x28] sm:$0xff]  ;;  %812 = vst [vmem:[#allocation2] sm:$0xff] %v3714_v58  ;;  %s3719_s29 = smov 64   ;;  %s3720_s30 = smov 48  }
   0x7   :  { %3518 = vmatmul.msk.f32.vlgmr.msra.gmra.mxu0 %vm322_vm1, %v283_v3  ;;  %v289_v9 = vld [vmem:[%s6696_s0 + $0x30] sm:$0xff]  ;;  %v290_v10 = vld [vmem:[%s6696_s0 + $0x38] sm:$0xff]  ;;  %v291_v11 = vld [vmem:[%s6696_s0 + $0x40] sm:$0xff]  ;;  %813 = vst [vmem:[#allocation2 + $0x8] sm:$0xff] %v3714_v58  ;;  %s3721_s12 = smov 96   ;;  %s3722_s13 = smov 112  }
   0x8   :  { %v292_v12 = vld [vmem:[%s6696_s0 + $0x48] sm:$0xff]  ;;  %v293_v13 = vld [vmem:[%s6696_s0 + $0x50] sm:$0xff]  ;;  %v294_v14 = vld [vmem:[%s6696_s0 + $0x58] sm:$0xff]  ;;  %816 = vst [vmem:[#allocation2 + $0x18] sm:$0xff] %v3714_v58  ;;  %s3723_s26 = smov [#allocation4]   ;;  %s3725_s14 = smov 8  }
   0x9   :  { %v295_v15 = vld [vmem:[%s6696_s0 + $0x60] sm:$0xff]  ;;  %v296_v16 = vld [vmem:[%s6696_s0 + $0x68] sm:$0xff]  ;;  %v297_v17 = vld [vmem:[%s6696_s0 + $0x70] sm:$0xff]  ;;  %817 = vst [vmem:[#allocation2 + $0x20] sm:$0xff] %v3714_v58  ;;  %s3439_s27 = sshll.u32 %s3723_s26, 4  ;;  %s3440_s27 = int_to_ptr.vmem [resolvable:$true] %s3439_s27 }
   0xa   :  { %v298_v18 = vld [vmem:[%s6696_s0 + $0x78] sm:$0xff]  ;;  %v299_v20 = vld [vmem:[%s6696_s0 + $0x80] sm:$0xff]  ;;  %v300_v22 = vld [vmem:[%s6696_s0 + $0x88] sm:$0xff]  ;;  %819 = vst [vmem:[#allocation2 + $0x30] sm:$0xff] %v3714_v58 }
   0xb   :  { %v301_v24 = vld [vmem:[%s6696_s0 + $0x90] sm:$0xff]  ;;  %v302_v26 = vld [vmem:[%s6696_s0 + $0x98] sm:$0xff]  ;;  %v303_v28 = vld [vmem:[%s6696_s0 + $0xa0] sm:$0xff]  ;;  %820 = vst [vmem:[#allocation2 + $0x38] sm:$0xff] %v3714_v58 }
   0xc   :  { %v304_v30 = vld [vmem:[%s6696_s0 + $0xa8] sm:$0xff]  ;;  %v305_v32 = vld [vmem:[%s6696_s0 + $0xb0] sm:$0xff]  ;;  %v306_v34 = vld [vmem:[%s6696_s0 + $0xb8] sm:$0xff]  ;;  %822 = vst [vmem:[#allocation2 + $0x48] sm:$0xff] %v3714_v58 }
   0xd   :  { %v307_v36 = vld [vmem:[%s6696_s0 + $0xc0] sm:$0xff]  ;;  %v308_v38 = vld [vmem:[%s6696_s0 + $0xc8] sm:$0xff]  ;;  %v309_v40 = vld [vmem:[%s6696_s0 + $0xd0] sm:$0xff]  ;;  %823 = vst [vmem:[#allocation2 + $0x50] sm:$0xff] %v3714_v58 }
   0xe   :  { %v310_v42 = vld [vmem:[%s6696_s0 + $0xd8] sm:$0xff]  ;;  %v311_v44 = vld [vmem:[%s6696_s0 + $0xe0] sm:$0xff]  ;;  %v312_v46 = vld [vmem:[%s6696_s0 + $0xe8] sm:$0xff]  ;;  %825 = vst [vmem:[#allocation2 + $0x60] sm:$0xff] %v3714_v58 }
   0xf   :  { %3519 = vmatmul.msk.f32.gmra.mxu0 %vm322_vm1, %v284_v4  ;;  %v313_v48 = vld [vmem:[%s6696_s0 + $0xf0] sm:$0xff]  ;;  %v3937_v49 = vld [vmem:[%s6698_s2] ss:$0 sm:$0xff]  ;;  %v314_v51 = vld [vmem:[%s6696_s0 + $0xf8] sm:$0xff]  ;;  %826 = vst [vmem:[#allocation2 + $0x68] sm:$0xff] %v3714_v58  ;;  %v3976_v4 = vshrl.u32 %v39_v1, 7 }
  0x10   :  { %828 = vst [vmem:[#allocation2 + $0x78] sm:$0xff] %v3714_v58  ;;  %s3716_s0 = smov 32   ;;  %s3717_s2 = smov 80  }
  0x11   :  { %829 = vst [vmem:[#allocation2 + $0x80] sm:$0xff] %v3714_v58 }
  0x12   :  { %831 = vst [vmem:[#allocation2 + $0x90] sm:$0xff] %v3714_v58 }
  0x13   :  { %832 = vst [vmem:[#allocation2 + $0x98] sm:$0xff] %v3714_v58 }
  0x14   :  { %834 = vst [vmem:[#allocation2 + $0xa8] sm:$0xff] %v3714_v58 }
  0x15   :  { %835 = vst [vmem:[#allocation2 + $0xb0] sm:$0xff] %v3714_v58 }
  0x16   :  { %837 = vst [vmem:[#allocation2 + $0xc0] sm:$0xff] %v3714_v58 }
  0x17   :  { %3520 = vmatmul.msk.f32.gmra.mxu0 %vm322_vm1, %v285_v5  ;;  %838 = vst [vmem:[#allocation2 + $0xc8] sm:$0xff] %v3714_v58 }
  0x18   :  { %840 = vst [vmem:[#allocation2 + $0xd8] sm:$0xff] %v3714_v58 }
  0x19   :  { %841 = vst [vmem:[#allocation2 + $0xe0] sm:$0xff] %v3714_v58 }
  0x1a   :  { %843 = vst [vmem:[#allocation2 + $0xf0] sm:$0xff] %v3714_v58 }
  0x1b   :  { %844 = vst [vmem:[#allocation2 + $0xf8] sm:$0xff] %v3714_v58 }
  0x1c   :  { %846 = vst [vmem:[#allocation2 + $0x108] sm:$0xff] %v3714_v58 }
  0x1d   :  { %847 = vst [vmem:[#allocation2 + $0x110] sm:$0xff] %v3714_v58 }
  0x1e   :  { %849 = vst [vmem:[#allocation2 + $0x120] sm:$0xff] %v3714_v58 }
  0x1f   :  { %3521 = vmatmul.msk.f32.gmra.mxu0 %vm322_vm1, %v286_v6  ;;  %850 = vst [vmem:[#allocation2 + $0x128] sm:$0xff] %v3714_v58 }
  0x20   :  { %852 = vst [vmem:[#allocation2 + $0x138] sm:$0xff] %v3714_v58 }
  0x21   :  { %853 = vst [vmem:[#allocation2 + $0x140] sm:$0xff] %v3714_v58 }
  0x22   :  { %855 = vst [vmem:[#allocation2 + $0x150] sm:$0xff] %v3714_v58 }
  0x23   :  { %856 = vst [vmem:[#allocation2 + $0x158] sm:$0xff] %v3714_v58 }
  0x24   :  { %858 = vst [vmem:[#allocation2 + $0x168] sm:$0xff] %v3714_v58 }
  0x25   :  { %859 = vst [vmem:[#allocation2 + $0x170] sm:$0xff] %v3714_v58 }
  0x26   :  { %2353 = vst [vmem:[#allocation3] sm:$0xff] %v3714_v58 }
  0x27   :  { %3522 = vmatmul.msk.f32.gmra.mxu0 %vm322_vm1, %v287_v7  ;;  %2354 = vst [vmem:[#allocation3 + $0x8] sm:$0xff] %v3714_v58 }
  0x28   :  { %2355 = vst [vmem:[#allocation3 + $0x10] sm:$0xff] %v3714_v58 }
  0x29   :  { %2356 = vst [vmem:[#allocation3 + $0x18] sm:$0xff] %v3714_v58 }
  0x2a   :  { %2357 = vst [vmem:[#allocation3 + $0x20] sm:$0xff] %v3714_v58 }
  0x2b   :  { %2359 = vst [vmem:[#allocation3 + $0x30] sm:$0xff] %v3714_v58 }
  0x2c   :  { %2360 = vst [vmem:[#allocation3 + $0x38] sm:$0xff] %v3714_v58 }
  0x2d   :  { %2361 = vst [vmem:[#allocation3 + $0x40] sm:$0xff] %v3714_v58 }
  0x2e   :  { %2362 = vst [vmem:[#allocation3 + $0x48] sm:$0xff] %v3714_v58 }
  0x2f   :  { %3523 = vmatmul.msk.f32.gmra.mxu0 %vm322_vm1, %v288_v8  ;;  %v3988_v8 = vand.u32 127, %v39_v1  ;;  %2363 = vst [vmem:[#allocation3 + $0x50] sm:$0xff] %v3714_v58 }
  0x30   :  { %2365 = vst [vmem:[#allocation3 + $0x60] sm:$0xff] %v3714_v58 }
  0x31   :  { %2366 = vst [vmem:[#allocation3 + $0x68] sm:$0xff] %v3714_v58 }
  0x32   :  { %2367 = vst [vmem:[#allocation3 + $0x70] sm:$0xff] %v3714_v58 }
  0x33   :  { %2368 = vst [vmem:[#allocation3 + $0x78] sm:$0xff] %v3714_v58 }
  0x34   :  { %2369 = vst [vmem:[#allocation3 + $0x80] sm:$0xff] %v3714_v58 }
  0x35   :  { %2371 = vst [vmem:[#allocation3 + $0x90] sm:$0xff] %v3714_v58 }
  0x36   :  { %2372 = vst [vmem:[#allocation3 + $0x98] sm:$0xff] %v3714_v58 }
  0x37   :  { %3524 = vmatmul.msk.f32.gmra.mxu0 %vm322_vm1, %v289_v9  ;;  %v3991_v9 = vmul.u32 2, %v3976_v4  ;;  %2373 = vst [vmem:[#allocation3 + $0xa0] sm:$0xff] %v3714_v58 }
  0x38   :  { %2374 = vst [vmem:[#allocation3 + $0xa8] sm:$0xff] %v3714_v58 }
  0x39   :  { %vm6722_vm2 = vcmp.eq.s32.totalorder %v3988_v8, %v3991_v9  ;;  %2375 = vst [vmem:[#allocation3 + $0xb0] sm:$0xff] %v3714_v58 }
  0x3a   :  { %2377 = vst [vmem:[#allocation3 + $0xc0] sm:$0xff] %v3714_v58 }
  0x3b   :  { %2378 = vst [vmem:[#allocation3 + $0xc8] sm:$0xff] %v3714_v58 }
  0x3c   :  { %2379 = vst [vmem:[#allocation3 + $0xd0] sm:$0xff] %v3714_v58 }
  0x3d   :  { %2380 = vst [vmem:[#allocation3 + $0xd8] sm:$0xff] %v3714_v58 }
  0x3e   :  { %2381 = vst [vmem:[#allocation3 + $0xe0] sm:$0xff] %v3714_v58 }
  0x3f   :  { %3525 = vmatmul.msk.f32.gmra.mxu0 %vm322_vm1, %v290_v10  ;;  %2383 = vst [vmem:[#allocation3 + $0xf0] sm:$0xff] %v3714_v58 }
  0x40   :  { %2384 = vst [vmem:[#allocation3 + $0xf8] sm:$0xff] %v3714_v58 }
  0x41   :  { %2385 = vst [vmem:[#allocation3 + $0x100] sm:$0xff] %v3714_v58 }
  0x42   :  { %2386 = vst [vmem:[#allocation3 + $0x108] sm:$0xff] %v3714_v58 }
  0x43   :  { %2387 = vst [vmem:[#allocation3 + $0x110] sm:$0xff] %v3714_v58 }
  0x44   :  { %2389 = vst [vmem:[#allocation3 + $0x120] sm:$0xff] %v3714_v58 }
  0x45   :  { %2390 = vst [vmem:[#allocation3 + $0x128] sm:$0xff] %v3714_v58 }
  0x46   :  { %2391 = vst [vmem:[#allocation3 + $0x130] sm:$0xff] %v3714_v58 }
  0x47   :  { %3526 = vmatmul.msk.f32.gmra.mxu0 %vm322_vm1, %v291_v11  ;;  %2392 = vst [vmem:[#allocation3 + $0x138] sm:$0xff] %v3714_v58 }
  0x48   :  { %2393 = vst [vmem:[#allocation3 + $0x140] sm:$0xff] %v3714_v58 }
  0x49   :  { %2395 = vst [vmem:[#allocation3 + $0x150] sm:$0xff] %v3714_v58 }
  0x4a   :  { %2396 = vst [vmem:[#allocation3 + $0x158] sm:$0xff] %v3714_v58 }
  0x4b   :  { %2397 = vst [vmem:[#allocation3 + $0x160] sm:$0xff] %v3714_v58 }
  0x4c   :  { %2398 = vst [vmem:[#allocation3 + $0x168] sm:$0xff] %v3714_v58 }
  0x4d   :  { %2399 = vst [vmem:[#allocation3 + $0x170] sm:$0xff] %v3714_v58 }
  0x4f   :  { %3527 = vmatmul.msk.f32.gmra.mxu0 %vm322_vm1, %v292_v12  ;;  %v41_v12 = vadd.s32 8, %v3976_v4 }
  0x57   :  { %3528 = vmatmul.msk.f32.gmra.mxu0 %vm322_vm1, %v293_v13 }
  0x5f   :  { %3529 = vmatmul.msk.f32.gmra.mxu0 %vm322_vm1, %v294_v14  ;;  %v6740_v14 = vmov 1.0  }
  0x67   :  { %3530 = vmatmul.msk.f32.gmra.mxu0 %vm322_vm1, %v295_v15  ;;  %v4015_v15 = vmul.u32 2, %v41_v12 }
  0x69   :  { %6763 = vst [vmem:[#allocation7_spill] sm:$0xff] %v4015_v15  ;;  %vm6720_vm3 = vcmp.eq.s32.totalorder %v3988_v8, %v4015_v15 }
  0x6f   :  { %3531 = vmatmul.msk.f32.gmra.mxu0 %vm322_vm1, %v296_v16  ;;  %v42_v16 = vadd.s32 16, %v3976_v4 }
  0x77   :  { %3532 = vmatmul.msk.f32.gmra.mxu0 %vm322_vm1, %v297_v17 }
  0x7f   :  { %3533 = vmatmul.msk.f32.gmra.mxu0 %vm322_vm1, %v298_v18  ;;  %v4034_v18 = vmul.u32 2, %v42_v16 }
  0x81   :  { %6764 = vst [vmem:[#allocation8_spill] sm:$0xff] %v4034_v18  ;;  %vm6718_vm4 = vcmp.eq.s32.totalorder %v3988_v8, %v4034_v18 }
  0x84   :  { %v3860_v19 = vpop.f32.mrf.mxu0 }
  0x85   :  { %v441_v11 = vadd.f32 %v3937_v49, %v3860_v19  ;;  %v43_v19 = vadd.s32 24, %v3976_v4 }
  0x87   :  { %3534 = vmatmul.msk.f32.gmra.mxu0 %vm322_vm1, %v299_v20 }
  0x8c   :  { %v3866_v21 = vpop.f32.mrf.mxu0 }
  0x8d   :  { %v444_v10 = vadd.f32 %v3937_v49, %v3866_v21  ;;  %v4053_v21 = vmul.u32 2, %v43_v19 }
  0x8f   :  { %3535 = vmatmul.msk.f32.gmra.mxu0 %vm322_vm1, %v300_v22  ;;  %6765 = vst [vmem:[#allocation9_spill] sm:$0xff] %v4053_v21  ;;  %vm6716_vm5 = vcmp.eq.s32.totalorder %v3988_v8, %v4053_v21  ;;  %v44_v22 = vadd.s32 32, %v3976_v4  ;;  %v4224_v19 = vadd.s32 1, %v4053_v21 }
  0x91   :  { %6772 = vst [vmem:[#allocation16_spill] sm:$0xff] %v4224_v19 }
  0x94   :  { %v3872_v23 = vpop.f32.mrf.mxu0 }
  0x95   :  { %v447_v7 = vadd.f32 %v3937_v49, %v3872_v23 }
  0x97   :  { %3536 = vmatmul.msk.f32.gmra.mxu0 %vm322_vm1, %v301_v24  ;;  %v4072_v24 = vmul.u32 2, %v44_v22 }
  0x99   :  { %6766 = vst [vmem:[#allocation10_spill] sm:$0xff] %v4072_v24  ;;  %vm6714_vm6 = vcmp.eq.s32.totalorder %v3988_v8, %v4072_v24 }
  0x9c   :  { %v3878_v25 = vpop.f32.mrf.mxu0 }
  0x9d   :  { %v450_v6 = vadd.f32 %v3937_v49, %v3878_v25  ;;  %v45_v25 = vadd.s32 40, %v3976_v4 }
  0x9f   :  { %3537 = vmatmul.msk.f32.gmra.mxu0 %vm322_vm1, %v302_v26 }
  0xa4   :  { %v3884_v27 = vpop.f32.mrf.mxu0 }
  0xa5   :  { %v453_v3 = vadd.f32 %v3937_v49, %v3884_v27  ;;  %v4091_v27 = vmul.u32 2, %v45_v25  ;;  %v4251_v25 = vadd.s32 1, %v4072_v24 }
  0xa7   :  { %3538 = vmatmul.msk.f32.gmra.mxu0 %vm322_vm1, %v303_v28  ;;  %6767 = vst [vmem:[#allocation11_spill] sm:$0xff] %v4091_v27  ;;  %vm6710_vm7 = vcmp.eq.s32.totalorder %v3988_v8, %v4091_v27  ;;  %v46_v28 = vadd.s32 48, %v3976_v4 }
  0xa8   :  { %6773 = vst [vmem:[#allocation17_spill] sm:$0xff] %v4251_v25 }
  0xac   :  { %v3890_v29 = vpop.f32.mrf.mxu0 }
  0xad   :  { %v456_v2 = vadd.f32 %v3937_v49, %v3890_v29 }
  0xaf   :  { %3539 = vmatmul.msk.f32.gmra.mxu0 %vm322_vm1, %v304_v30  ;;  %v4110_v30 = vmul.u32 2, %v46_v28 }
  0xb1   :  { %6768 = vst [vmem:[#allocation12_spill] sm:$0xff] %v4110_v30  ;;  %vm6709_vm8 = vcmp.eq.s32.totalorder %v3988_v8, %v4110_v30 }
  0xb4   :  { %v3896_v31 = vpop.f32.mrf.mxu0 }
  0xb5   :  { %v459_v0 = vadd.f32 %v3937_v49, %v3896_v31  ;;  %v47_v31 = vadd.s32 56, %v3976_v4 }
  0xb7   :  { %3540 = vmatmul.msk.f32.gmra.mxu0 %vm322_vm1, %v305_v32 }
  0xbc   :  { %v461_v33 = vpop.f32.mrf.mxu0 }
  0xbd   :  { %v462_v63 = vadd.f32 %v3937_v49, %v461_v33  ;;  %v4124_v33 = vmul.u32 2, %v47_v31 }
  0xbf   :  { %3541 = vmatmul.msk.f32.gmra.mxu0 %vm322_vm1, %v306_v34  ;;  %6769 = vst [vmem:[#allocation13_spill] sm:$0xff] %v4124_v33  ;;  %vm6708_vm9 = vcmp.eq.s32.totalorder %v3988_v8, %v4124_v33  ;;  %v48_v34 = vadd.s32 64, %v3976_v4 }
  0xc4   :  { %v464_v35 = vpop.f32.mrf.mxu0 }
  0xc5   :  { %v465_v61 = vadd.f32 %v3937_v49, %v464_v35 }
  0xc7   :  { %3542 = vmatmul.msk.f32.gmra.mxu0 %vm322_vm1, %v307_v36  ;;  %v4133_v36 = vmul.u32 2, %v48_v34 }
  0xc9   :  { %vm91_vm10 = vcmp.eq.s32.totalorder %v3988_v8, %v4133_v36 }
  0xcc   :  { %v467_v37 = vpop.f32.mrf.mxu0 }
  0xcd   :  { %v468_v60 = vadd.f32 %v3937_v49, %v467_v37  ;;  %v49_v37 = vadd.s32 72, %v3976_v4 }
  0xcf   :  { %3543 = vmatmul.msk.f32.gmra.mxu0 %vm322_vm1, %v308_v38 }
  0xd4   :  { %v470_v39 = vpop.f32.mrf.mxu0 }
  0xd5   :  { %v471_v59 = vadd.f32 %v3937_v49, %v470_v39  ;;  %v4139_v39 = vmul.u32 2, %v49_v37 }
  0xd7   :  { %3544 = vmatmul.msk.f32.gmra.mxu0 %vm322_vm1, %v309_v40  ;;  %vm93_vm11 = vcmp.eq.s32.totalorder %v3988_v8, %v4139_v39  ;;  %v50_v40 = vadd.s32 80, %v3976_v4 }
  0xdc   :  { %v473_v41 = vpop.f32.mrf.mxu0 }
  0xdd   :  { %v474_v57 = vadd.f32 %v3937_v49, %v473_v41 }
  0xdf   :  { %3545 = vmatmul.msk.f32.gmra.mxu0 %vm322_vm1, %v310_v42  ;;  %v4145_v42 = vmul.u32 2, %v50_v40 }
  0xe1   :  { %vm95_vm12 = vcmp.eq.s32.totalorder %v3988_v8, %v4145_v42 }
  0xe4   :  { %v476_v43 = vpop.f32.mrf.mxu0 }
  0xe5   :  { %v477_v55 = vadd.f32 %v3937_v49, %v476_v43  ;;  %v51_v43 = vadd.s32 88, %v3976_v4 }
  0xe7   :  { %3546 = vmatmul.msk.f32.gmra.mxu0 %vm322_vm1, %v311_v44 }
  0xec   :  { %v479_v45 = vpop.f32.mrf.mxu0 }
  0xed   :  { %v480_v54 = vadd.f32 %v3937_v49, %v479_v45  ;;  %v4151_v45 = vmul.u32 2, %v51_v43 }
  0xef   :  { %3547 = vmatmul.msk.f32.gmra.mxu0 %vm322_vm1, %v312_v46  ;;  %vm97_vm13 = vcmp.eq.s32.totalorder %v3988_v8, %v4151_v45  ;;  %v52_v46 = vadd.s32 96, %v3976_v4 }
  0xf4   :  { %v482_v47 = vpop.f32.mrf.mxu0 }
  0xf5   :  { %v483_v53 = vadd.f32 %v3937_v49, %v482_v47 }
  0xf7   :  { %3548 = vmatmul.msk.f32.gmra.mxu0 %vm322_vm1, %v313_v48  ;;  %v4157_v48 = vmul.u32 2, %v52_v46 }
  0xf9   :  { %vm99_vm14 = vcmp.eq.s32.totalorder %v3988_v8, %v4157_v48 }
  0xfc   :  { %v485_v50 = vpop.f32.mrf.mxu0 }
  0xfd   :  { %v486_v52 = vadd.f32 %v3937_v49, %v485_v50  ;;  %v53_v50 = vadd.s32 104, %v3976_v4 }
  0xff   :  { %3549 = vmatmul.msk.f32.gmra.mxu0 %vm322_vm1, %v314_v51  ;;  %536 = vmatpush.msra.mxu1 %v486_v52 }
 0x100   :  { %666 = vmatpush.msra.mxu3 %v486_v52  ;;  %v4163_v52 = vadd.s32 1, %v3991_v9 }
 0x101   :  { %537 = vmatpush.msra.mxu1 %v483_v53 }
 0x102   :  { %667 = vmatpush.msra.mxu3 %v483_v53  ;;  %vm6723_vm15 = vcmp.eq.s32.totalorder %v3988_v8, %v4163_v52 }
 0x103   :  { %538 = vmatpush.msra.mxu1 %v480_v54 }
 0x104   :  { %668 = vmatpush.msra.mxu3 %v480_v54  ;;  %v3947_v56 = vpop.f32.mrf.mxu0 }
 0x105   :  { %539 = vmatpush.msra.mxu1 %v477_v55 }
 0x106   :  { %669 = vmatpush.msra.mxu3 %v477_v55  ;;  %v4170_v55 = vmul.u32 2, %v53_v50 }
 0x107   :  { %540 = vmatpush.msra.mxu1 %v474_v57 }
 0x108   :  { %670 = vmatpush.msra.mxu3 %v474_v57  ;;  %vm101_vm1 = vcmp.eq.s32.totalorder %v3988_v8, %v4170_v55 }
 0x109   :  { %541 = vmatpush.msra.mxu1 %v471_v59 }
 0x10a   :  { %671 = vmatpush.msra.mxu3 %v471_v59 }
 0x10b   :  { %542 = vmatpush.msra.mxu1 %v468_v60 }
 0x10c   :  { %672 = vmatpush.msra.mxu3 %v468_v60  ;;  %v3960_v62 = vpop.f32.mrf.mxu0  ;;  %v54_v60 = vadd.s32 112, %v3976_v4 }
 0x10d   :  { %543 = vmatpush.msra.mxu1 %v465_v61 }
 0x10e   :  { %673 = vmatpush.msra.mxu3 %v465_v61  ;;  %v4182_v61 = vadd.s32 1, %v4015_v15  ;;  %v4189_v1 = vmul.u32 2, %v54_v60 }
 0x10f   :  { %544 = vmatpush.msra.mxu1 %v462_v63 }
 0x110   :  { %674 = vmatpush.msra.mxu3 %v462_v63  ;;  %6770 = vst [vmem:[#allocation14_spill] sm:$0xff] %v4182_v61 }
 0x111   :  { %545 = vmatpush.msra.mxu1 %v459_v0 }
 0x112   :  { %675 = vmatpush.msra.mxu3 %v459_v0 }
 0x113   :  { %546 = vmatpush.msra.mxu1 %v456_v2 }
 0x114   :  { %676 = vmatpush.msra.mxu3 %v456_v2  ;;  %v3979_v5 = vpop.f32.mrf.mxu0 }
 0x115   :  { %547 = vmatpush.msra.mxu1 %v453_v3 }
 0x116   :  { %677 = vmatpush.msra.mxu3 %v453_v3 }
 0x117   :  { %548 = vmatpush.msra.mxu1 %v450_v6 }
 0x118   :  { %678 = vmatpush.msra.mxu3 %v450_v6  ;;  %v55_v6 = vadd.s32 120, %v3976_v4 }
 0x119   :  { %549 = vmatpush.msra.mxu1 %v447_v7 }
 0x11a   :  { %679 = vmatpush.msra.mxu3 %v447_v7  ;;  %v4202_v7 = vadd.s32 1, %v4034_v18  ;;  %v4211_v12 = vmul.u32 2, %v55_v6 }
 0x11b   :  { %550 = vmatpush.msra.mxu1 %v444_v10 }
 0x11c   :  { %680 = vmatpush.msra.mxu3 %v444_v10  ;;  %v4005_v13 = vpop.f32.mrf.mxu0  ;;  %6771 = vst [vmem:[#allocation15_spill] sm:$0xff] %v4202_v7 }
 0x11d   :  { %551 = vmatpush.msra.mxu1 %v441_v11  ;;  %v498_v22 = vadd.f32 %v3937_v49, %v4005_v13  ;;  %v492_v13 = vadd.f32 %v3937_v49, %v3960_v62 }
 0x11e   :  { %681 = vmatpush.msra.mxu3 %v441_v11  ;;  %3550 = vmatmul.msk.f32.vlgmr.msra.gmra.mxu1 %vm6722_vm2, %v6740_v14  ;;  %vm6728_vm2 = vcmask 654854  }
 0x11f   :  { %3582 = vmatmul.msk.f32.vlgmr.msra.gmra.mxu3 %vm6723_vm15, %v6740_v14  ;;  %vm6725_vm15 = vcmask 786053  }
 0x124   :  { %v4024_v17 = vpop.f32.mrf.mxu0 }
 0x125   :  { %v501_v16 = vadd.f32 %v3937_v49, %v4024_v17  ;;  %v495_v17 = vadd.f32 %v3937_v49, %v3979_v5 }
 0x126   :  { %3551 = vmatmul.msk.f32.gmra.mxu1 %vm6720_vm3, %v6740_v14  ;;  %vm1117_vm3 = vcmask 523648  }
 0x12c   :  { %v4044_v20 = vpop.f32.mrf.mxu0 }
 0x12d   :  { %v504_v4 = vadd.f32 %v3937_v49, %v4044_v20  ;;  %v4234_v20 = vadd.s32 128, %v3988_v8 }
 0x12e   :  { %3552 = vmatmul.msk.f32.gmra.mxu1 %vm6718_vm4, %v6740_v14  ;;  %vm1753_vm4 = vcmask 123904  }
 0x134   :  { %v4063_v23 = vpop.f32.mrf.mxu0 }
 0x135   :  { %v507_v11 = vadd.f32 %v3937_v49, %v4063_v23  ;;  %v489_v23 = vadd.f32 %v3937_v49, %v3947_v56  ;;  %v4268_v56 = vadd.s32 1, %v4091_v27 }
 0x136   :  { %3553 = vmatmul.msk.f32.gmra.mxu1 %vm6716_vm5, %v6740_v14  ;;  %vm6739_vm5 = vcmask 1043456  }
 0x137   :  { %6774 = vst [vmem:[#allocation18_spill] sm:$0xff] %v4268_v56 }
 0x13c   :  { %v4082_v26 = vpop.f32.mrf.mxu0 }
 0x13d   :  { %v510_v10 = vadd.f32 %v3937_v49, %v4082_v26  ;;  %v4285_v26 = vadd.s32 1, %v4110_v30 }
 0x13e   :  { %3554 = vmatmul.msk.f32.gmra.mxu1 %vm6714_vm6, %v6740_v14  ;;  %vm106_vm6 = vcmp.eq.s32.totalorder %v4234_v20, %v4211_v12 }
 0x13f   :  { %6775 = vst [vmem:[#allocation19_spill] sm:$0xff] %v4285_v26 }
 0x144   :  { %v4101_v29 = vpop.f32.mrf.mxu0 }
 0x145   :  { %v513_v3 = vadd.f32 %v3937_v49, %v4101_v29  ;;  %v4302_v29 = vadd.s32 1, %v4124_v33 }
 0x146   :  { %3555 = vmatmul.msk.f32.gmra.mxu1 %vm6710_vm7, %v6740_v14  ;;  %vm192_vm7 = vcmp.eq.s32.totalorder %v4234_v20, %v4202_v7 }
 0x147   :  { %6776 = vst [vmem:[#allocation20_spill] sm:$0xff] %v4302_v29 }
 0x14c   :  { %v515_v32 = vpop.f32.mrf.mxu0 }
 0x14d   :  { %v516_v2 = vadd.f32 %v3937_v49, %v515_v32  ;;  %v179_v32 = vadd.s32 1, %v4133_v36 }
 0x14e   :  { %3556 = vmatmul.msk.f32.gmra.mxu1 %vm6709_vm8, %v6740_v14  ;;  %vm190_vm8 = vcmp.eq.s32.totalorder %v4234_v20, %v4182_v61 }
 0x154   :  { %v518_v35 = vpop.f32.mrf.mxu0 }
 0x155   :  { %v519_v0 = vadd.f32 %v3937_v49, %v518_v35  ;;  %v180_v35 = vadd.s32 1, %v4139_v39 }
 0x156   :  { %3557 = vmatmul.msk.f32.gmra.mxu1 %vm6708_vm9, %v6740_v14  ;;  %vm78_vm9 = vcmp.eq.s32.totalorder %v4234_v20, %v4015_v15 }
 0x15c   :  { %v521_v38 = vpop.f32.mrf.mxu0 }
 0x15d   :  { %v522_v63 = vadd.f32 %v3937_v49, %v521_v38  ;;  %v181_v38 = vadd.s32 1, %v4145_v42 }
 0x15e   :  { %3558 = vmatmul.msk.f32.gmra.mxu1 %vm91_vm10, %v6740_v14  ;;  %vm6721_vm10 = vcmp.eq.s32.totalorder %v3988_v8, %v4182_v61 }
 0x15f   :  { %3583 = vmatmul.msk.f32.gmra.mxu3 %vm6721_vm10, %v6740_v14  ;;  %vm1115_vm10 = vcmask 523655  }
 0x164   :  { %v524_v41 = vpop.f32.mrf.mxu0 }
 0x165   :  { %v525_v59 = vadd.f32 %v3937_v49, %v524_v41  ;;  %v182_v41 = vadd.s32 1, %v4151_v45 }
 0x166   :  { %3559 = vmatmul.msk.f32.gmra.mxu1 %vm93_vm11, %v6740_v14  ;;  %vm103_vm11 = vcmp.eq.s32.totalorder %v3988_v8, %v4189_v1 }
 0x16c   :  { %v527_v44 = vpop.f32.mrf.mxu0 }
 0x16d   :  { %v528_v57 = vadd.f32 %v3937_v49, %v527_v44  ;;  %v183_v44 = vadd.s32 1, %v4157_v48 }
 0x16e   :  { %3560 = vmatmul.msk.f32.gmra.mxu1 %vm95_vm12, %v6740_v14  ;;  %vm6719_vm12 = vcmp.eq.s32.totalorder %v3988_v8, %v4202_v7 }
 0x16f   :  { %3584 = vmatmul.msk.f32.gmra.mxu3 %vm6719_vm12, %v6740_v14  ;;  %vm1038_vm12 = vcmask 392448  }
 0x174   :  { %v530_v47 = vpop.f32.mrf.mxu0 }
 0x175   :  { %v531_v54 = vadd.f32 %v3937_v49, %v530_v47 }
 0x176   :  { %3561 = vmatmul.msk.f32.gmra.mxu1 %vm97_vm13, %v6740_v14  ;;  %vm105_vm13 = vcmp.eq.s32.totalorder %v3988_v8, %v4211_v12 }
 0x17c   :  { %v533_v51 = vpop.f32.mrf.mxu0 }
 0x17d   :  { %v534_v53 = vadd.f32 %v3937_v49, %v533_v51 }
 0x17e   :  { %3562 = vmatmul.msk.f32.gmra.mxu1 %vm99_vm14, %v6740_v14  ;;  %vm6717_vm14 = vcmp.eq.s32.totalorder %v3988_v8, %v4224_v19 }
 0x17f   :  { %601 = vmatpush.msra.mxu2 %v534_v53  ;;  %731 = vmatpush.msrb.mxu1 %v534_v53 }
 0x180   :  { %3585 = vmatmul.msk.f32.gmra.mxu3 %vm6717_vm14, %v6740_v14  ;;  %vm932_vm14 = vcmask 1040384  }
 0x181   :  { %602 = vmatpush.msra.mxu2 %v531_v54  ;;  %732 = vmatpush.msrb.mxu1 %v531_v54 }
 0x183   :  { %603 = vmatpush.msra.mxu2 %v528_v57  ;;  %733 = vmatpush.msrb.mxu1 %v528_v57 }
 0x185   :  { %604 = vmatpush.msra.mxu2 %v525_v59  ;;  %734 = vmatpush.msrb.mxu1 %v525_v59 }
 0x186   :  { %3563 = vmatmul.msk.f32.gmra.mxu1 %vm101_vm1, %v6740_v14  ;;  %vm76_vm1 = vcmp.eq.s32.totalorder %v4234_v20, %v3991_v9 }
 0x187   :  { %605 = vmatpush.msra.mxu2 %v522_v63  ;;  %735 = vmatpush.msrb.mxu1 %v522_v63 }
 0x189   :  { %606 = vmatpush.msra.mxu2 %v519_v0  ;;  %736 = vmatpush.msrb.mxu1 %v519_v0 }
 0x18b   :  { %607 = vmatpush.msra.mxu2 %v516_v2  ;;  %737 = vmatpush.msrb.mxu1 %v516_v2 }
 0x18d   :  { %608 = vmatpush.msra.mxu2 %v513_v3  ;;  %738 = vmatpush.msrb.mxu1 %v513_v3 }
 0x18e   :  { %3564 = vmatmul.msk.f32.gmra.mxu1 %vm103_vm11, %v6740_v14  ;;  %vm188_vm11 = vcmp.eq.s32.totalorder %v4234_v20, %v4163_v52 }
 0x18f   :  { %609 = vmatpush.msra.mxu2 %v510_v10  ;;  %739 = vmatpush.msrb.mxu1 %v510_v10 }
 0x191   :  { %610 = vmatpush.msra.mxu2 %v507_v11  ;;  %740 = vmatpush.msrb.mxu1 %v507_v11 }
 0x193   :  { %611 = vmatpush.msra.mxu2 %v504_v4  ;;  %741 = vmatpush.msrb.mxu1 %v504_v4 }
 0x195   :  { %612 = vmatpush.msra.mxu2 %v501_v16  ;;  %742 = vmatpush.msrb.mxu1 %v501_v16 }
 0x196   :  { %3565 = vmatmul.msk.f32.gmra.mxu1 %vm105_vm13, %v6740_v14  ;;  %vm6715_vm13 = vcmp.eq.s32.totalorder %v3988_v8, %v4251_v25 }
 0x197   :  { %613 = vmatpush.msra.mxu2 %v498_v22  ;;  %743 = vmatpush.msrb.mxu1 %v498_v22 }
 0x198   :  { %3586 = vmatmul.msk.f32.gmra.mxu3 %vm6715_vm13, %v6740_v14  ;;  %vm1463_vm13 = vcmask 1042432  }
 0x199   :  { %614 = vmatpush.msra.mxu2 %v495_v17  ;;  %744 = vmatpush.msrb.mxu1 %v495_v17 }
 0x19b   :  { %615 = vmatpush.msra.mxu2 %v492_v13  ;;  %745 = vmatpush.msrb.mxu1 %v492_v13  ;;  %v4246_v5 = vpop.f32.mrf.mxu1 }
 0x19d   :  { %616 = vmatpush.msra.mxu2 %v489_v23  ;;  %746 = vmatpush.msrb.mxu1 %v489_v23 }
 0x19e   :  { %3566 = vmatmul.msk.f32.vlgmr.msra.gmra.mxu2 %vm76_vm1, %v6740_v14  ;;  %3598 = vmatmul.msk.f32.vlgmr.msrb.gmra.mxu1 %vm188_vm11, %v6740_v14  ;;  %vm6711_vm1 = vcmp.eq.s32.totalorder %v3988_v8, %v4268_v56  ;;  %vm80_vm11 = vcmp.eq.s32.totalorder %v4234_v20, %v4034_v18 }
 0x1a0   :  { %3587 = vmatmul.msk.f32.gmra.mxu3 %vm6711_vm1, %v6740_v14  ;;  %vm194_vm1 = vcmp.eq.s32.totalorder %v4234_v20, %v4224_v19 }
 0x1a2   :  { %v683_v53 = vpop.f32.mrf.mxu3 }
 0x1a3   :  { %v4263_v49 = vpop.f32.mrf.mxu1 }
 0x1a6   :  { %3567 = vmatmul.msk.f32.gmra.mxu2 %vm78_vm9, %v6740_v14  ;;  %3599 = vmatmul.msk.f32.gmra.mxu1 %vm190_vm8, %v6740_v14  ;;  %vm6712_vm8 = vcmp.eq.s32.totalorder %v3988_v8, %v4285_v26  ;;  %vm82_vm9 = vcmp.eq.s32.totalorder %v4234_v20, %v4053_v21 }
 0x1a8   :  { %3588 = vmatmul.msk.f32.gmra.mxu3 %vm6712_vm8, %v6740_v14  ;;  %vm196_vm8 = vcmp.eq.s32.totalorder %v4234_v20, %v4251_v25 }
 0x1ab   :  { %v4280_v62 = vpop.f32.mrf.mxu1 }
 0x1ae   :  { %3568 = vmatmul.msk.f32.gmra.mxu2 %vm80_vm11, %v6740_v14  ;;  %3600 = vmatmul.msk.f32.gmra.mxu1 %vm192_vm7, %v6740_v14  ;;  %vm6713_vm7 = vcmp.eq.s32.totalorder %v3988_v8, %v4302_v29  ;;  %vm84_vm11 = vcmp.eq.s32.totalorder %v4234_v20, %v4072_v24 }
 0x1b0   :  { %3589 = vmatmul.msk.f32.gmra.mxu3 %vm6713_vm7, %v6740_v14  ;;  %vm198_vm7 = vcmp.eq.s32.totalorder %v4234_v20, %v4268_v56 }
 0x1b3   :  { %v4297_v28 = vpop.f32.mrf.mxu1 }
 0x1b6   :  { %3569 = vmatmul.msk.f32.gmra.mxu2 %vm82_vm9, %v6740_v14  ;;  %3601 = vmatmul.msk.f32.gmra.mxu1 %vm194_vm1, %v6740_v14  ;;  %vm203_vm1 = vcmp.eq.s32.totalorder %v3988_v8, %v179_v32  ;;  %vm86_vm9 = vcmp.eq.s32.totalorder %v4234_v20, %v4091_v27 }
 0x1b8   :  { %3590 = vmatmul.msk.f32.gmra.mxu3 %vm203_vm1, %v6740_v14  ;;  %vm200_vm1 = vcmp.eq.s32.totalorder %v4234_v20, %v4285_v26 }
 0x1bb   :  { %v4314_v31 = vpop.f32.mrf.mxu1 }
 0x1be   :  { %3570 = vmatmul.msk.f32.gmra.mxu2 %vm84_vm11, %v6740_v14  ;;  %3602 = vmatmul.msk.f32.gmra.mxu1 %vm196_vm8, %v6740_v14  ;;  %vm205_vm8 = vcmp.eq.s32.totalorder %v3988_v8, %v180_v35  ;;  %vm88_vm11 = vcmp.eq.s32.totalorder %v4234_v20, %v4110_v30 }
 0x1c0   :  { %3591 = vmatmul.msk.f32.gmra.mxu3 %vm205_vm8, %v6740_v14  ;;  %vm202_vm8 = vcmp.eq.s32.totalorder %v4234_v20, %v4302_v29 }
 0x1c3   :  { %v4325_v34 = vpop.f32.mrf.mxu1 }
 0x1c6   :  { %3571 = vmatmul.msk.f32.gmra.mxu2 %vm86_vm9, %v6740_v14  ;;  %3603 = vmatmul.msk.f32.gmra.mxu1 %vm198_vm7, %v6740_v14  ;;  %vm207_vm7 = vcmp.eq.s32.totalorder %v3988_v8, %v181_v38  ;;  %vm90_vm9 = vcmp.eq.s32.totalorder %v4234_v20, %v4124_v33 }
 0x1c8   :  { %3592 = vmatmul.msk.f32.gmra.mxu3 %vm207_vm7, %v6740_v14  ;;  %vm204_vm7 = vcmp.eq.s32.totalorder %v4234_v20, %v179_v32 }
 0x1cb   :  { %v4336_v37 = vpop.f32.mrf.mxu1 }
 0x1ce   :  { %3572 = vmatmul.msk.f32.gmra.mxu2 %vm88_vm11, %v6740_v14  ;;  %3604 = vmatmul.msk.f32.gmra.mxu1 %vm200_vm1, %v6740_v14  ;;  %vm209_vm11 = vcmp.eq.s32.totalorder %v3988_v8, %v182_v41  ;;  %vm92_vm1 = vcmp.eq.s32.totalorder %v4234_v20, %v4133_v36  ;;  %v184_v36 = vadd.s32 1, %v4170_v55 }
 0x1d0   :  { %3593 = vmatmul.msk.f32.gmra.mxu3 %vm209_vm11, %v6740_v14  ;;  %vm206_vm11 = vcmp.eq.s32.totalorder %v4234_v20, %v180_v35 }
 0x1d3   :  { %v4347_v40 = vpop.f32.mrf.mxu1 }
 0x1d6   :  { %3573 = vmatmul.msk.f32.gmra.mxu2 %vm90_vm9, %v6740_v14  ;;  %3605 = vmatmul.msk.f32.gmra.mxu1 %vm202_vm8, %v6740_v14  ;;  %vm211_vm9 = vcmp.eq.s32.totalorder %v3988_v8, %v183_v44  ;;  %vm94_vm8 = vcmp.eq.s32.totalorder %v4234_v20, %v4139_v39  ;;  %v185_v39 = vadd.s32 1, %v4189_v1 }
 0x1d8   :  { %3594 = vmatmul.msk.f32.gmra.mxu3 %vm211_vm9, %v6740_v14  ;;  %vm208_vm9 = vcmp.eq.s32.totalorder %v4234_v20, %v181_v38 }
 0x1db   :  { %v4358_v43 = vpop.f32.mrf.mxu1 }
 0x1de   :  { %3574 = vmatmul.msk.f32.gmra.mxu2 %vm92_vm1, %v6740_v14  ;;  %3606 = vmatmul.msk.f32.gmra.mxu1 %vm204_vm7, %v6740_v14  ;;  %vm213_vm1 = vcmp.eq.s32.totalorder %v3988_v8, %v184_v36  ;;  %vm96_vm7 = vcmp.eq.s32.totalorder %v4234_v20, %v4145_v42  ;;  %v186_v42 = vadd.s32 1, %v4211_v12 }
 0x1e0   :  { %3595 = vmatmul.msk.f32.gmra.mxu3 %vm213_vm1, %v6740_v14  ;;  %vm210_vm1 = vcmp.eq.s32.totalorder %v4234_v20, %v182_v41 }
 0x1e2   :  { %v686_v54 = vpop.f32.mrf.mxu3 }
 0x1e3   :  { %v4368_v46 = vpop.f32.mrf.mxu1 }
 0x1e6   :  { %3575 = vmatmul.msk.f32.gmra.mxu2 %vm94_vm8, %v6740_v14  ;;  %3607 = vmatmul.msk.f32.gmra.mxu1 %vm206_vm11, %v6740_v14  ;;  %vm215_vm8 = vcmp.eq.s32.totalorder %v3988_v8, %v185_v39  ;;  %vm98_vm11 = vcmp.eq.s32.totalorder %v4234_v20, %v4151_v45 }
 0x1e8   :  { %3596 = vmatmul.msk.f32.gmra.mxu3 %vm215_vm8, %v6740_v14  ;;  %vm212_vm8 = vcmp.eq.s32.totalorder %v4234_v20, %v183_v44 }
 0x1eb   :  { %v4378_v47 = vpop.f32.mrf.mxu1 }
 0x1ee   :  { %3576 = vmatmul.msk.f32.gmra.mxu2 %vm96_vm7, %v6740_v14  ;;  %3608 = vmatmul.msk.f32.gmra.mxu1 %vm208_vm9, %v6740_v14  ;;  %vm217_vm7 = vcmp.eq.s32.totalorder %v3988_v8, %v186_v42  ;;  %vm100_vm9 = vcmp.eq.s32.totalorder %v4234_v20, %v4157_v48 }
 0x1f0   :  { %3597 = vmatmul.msk.f32.gmra.mxu3 %vm217_vm7, %v6740_v14  ;;  %vm104_vm7 = vcmp.eq.s32.totalorder %v4234_v20, %v4189_v1 }
 0x1f2   :  { %v689_v57 = vpop.f32.mrf.mxu3 }
 0x1f3   :  { %v4388_v50 = vpop.f32.mrf.mxu1 }
 0x1f6   :  { %3577 = vmatmul.msk.f32.gmra.mxu2 %vm98_vm11, %v6740_v14  ;;  %3609 = vmatmul.msk.f32.gmra.mxu1 %vm210_vm1, %v6740_v14  ;;  %vm102_vm11 = vcmp.eq.s32.totalorder %v4234_v20, %v4170_v55  ;;  %vm214_vm1 = vcmp.eq.s32.totalorder %v4234_v20, %v184_v36 }
 0x1fb   :  { %v4398_v51 = vpop.f32.mrf.mxu1 }
 0x1fe   :  { %3578 = vmatmul.msk.f32.gmra.mxu2 %vm100_vm9, %v6740_v14  ;;  %3610 = vmatmul.msk.f32.gmra.mxu1 %vm212_vm8, %v6740_v14  ;;  %vm216_vm9 = vcmp.eq.s32.totalorder %v4234_v20, %v185_v39  ;;  %vm814_vm8 = vcmask 654336  }
 0x1ff   :  { %815 = vst.msk [vmem:[#allocation2 + $0x10] sm:$0xff] %vm814_vm8, %v3714_v58 }
 0x200   :  { %818 = vst.msk [vmem:[#allocation2 + $0x28] sm:$0xff] %vm814_vm8, %v3714_v58 }
 0x201   :  { %821 = vst.msk [vmem:[#allocation2 + $0x40] sm:$0xff] %vm814_vm8, %v3714_v58 }
 0x202   :  { %824 = vst.msk [vmem:[#allocation2 + $0x58] sm:$0xff] %vm814_vm8, %v3714_v58 }
 0x203   :  { %v4405_v45 = vpop.f32.mrf.mxu1  ;;  %827 = vst.msk [vmem:[#allocation2 + $0x70] sm:$0xff] %vm814_vm8, %v3714_v58  ;;  %v692_v60 = vpop.f32.mrf.mxu3 }
 0x204   :  { %830 = vst.msk [vmem:[#allocation2 + $0x88] sm:$0xff] %vm814_vm8, %v3714_v58 }
 0x205   :  { %833 = vst.msk [vmem:[#allocation2 + $0xa0] sm:$0xff] %vm814_vm8, %v3714_v58 }
 0x206   :  { %3579 = vmatmul.msk.f32.gmra.mxu2 %vm102_vm11, %v6740_v14  ;;  %3611 = vmatmul.msk.f32.gmra.mxu1 %vm214_vm1, %v6740_v14  ;;  %vm218_vm11 = vcmp.eq.s32.totalorder %v4234_v20, %v186_v42  ;;  %836 = vst.msk [vmem:[#allocation2 + $0xb8] sm:$0xff] %vm814_vm8, %v3714_v58  ;;  %vm1075_vm1 = vcmask 1046528  }
 0x207   :  { %839 = vst.msk [vmem:[#allocation2 + $0xd0] sm:$0xff] %vm814_vm8, %v3714_v58 }
 0x208   :  { %842 = vst.msk [vmem:[#allocation2 + $0xe8] sm:$0xff] %vm814_vm8, %v3714_v58 }
 0x209   :  { %845 = vst.msk [vmem:[#allocation2 + $0x100] sm:$0xff] %vm814_vm8, %v3714_v58 }
 0x20a   :  { %848 = vst.msk [vmem:[#allocation2 + $0x118] sm:$0xff] %vm814_vm8, %v3714_v58 }
 0x20b   :  { %v4412_v48 = vpop.f32.mrf.mxu1  ;;  %851 = vst.msk [vmem:[#allocation2 + $0x130] sm:$0xff] %vm814_vm8, %v3714_v58 }
 0x20c   :  { %854 = vst.msk [vmem:[#allocation2 + $0x148] sm:$0xff] %vm814_vm8, %v3714_v58 }
 0x20d   :  { %857 = vst.msk [vmem:[#allocation2 + $0x160] sm:$0xff] %vm814_vm8, %v3714_v58 }
 0x20e   :  { %3580 = vmatmul.msk.f32.gmra.mxu2 %vm104_vm7, %v6740_v14  ;;  %3612 = vmatmul.msk.f32.gmra.mxu1 %vm216_vm9, %v6740_v14  ;;  %860 = vst.msk [vmem:[#allocation2 + $0x178] sm:$0xff] %vm814_vm8, %v3714_v58  ;;  %vm6724_vm7 = vcmask 1041408   ;;  %vm891_vm9 = vcmask 130048  }
 0x213   :  { %v4419_v55 = vpop.f32.mrf.mxu1 }
 0x216   :  { %3581 = vmatmul.msk.f32.gmra.mxu2 %vm106_vm6, %v6740_v14  ;;  %3613 = vmatmul.msk.f32.gmra.mxu1 %vm218_vm11, %v6740_v14  ;;  %vm889_vm6 = vcmask 130050   ;;  %vm6738_vm11 = vcmask 1045504   ;;  %v5656_v14 = vld [vmem:[%s6700_s4] ss:$0 sm:$0xff] }
 0x21b   :  { %v748_v59 = vpop.f32.mrf.mxu1  ;;  %v4463_v11 = vpop.f32.mrf.mxu3 }
 0x21c   :  { %v749_v63 = vadd.f32 %v748_v59, %v683_v53 }
 0x221   :  { %v618_v0 = vpop.f32.mrf.mxu2 }
 0x222   :  { %v619_v1 = vadd.f32 %v618_v0, %v4246_v5 }
 0x223   :  { %v751_v2 = vpop.f32.mrf.mxu1  ;;  %v698_v35 = vpop.f32.mrf.mxu3 }
 0x224   :  { %v4457_v3 = vmax.f32 %v619_v1, %v749_v63  ;;  %v752_v58 = vadd.f32 %v751_v2, %v686_v54 }
 0x226   :  { %1017 = vrot.lane.b32.xlu1 %v4457_v3, %s3716_s0  ;;  %v1270_v6 = vrot.slane %v4457_v3, 3  ;;  %v933_v10 = vrot.slane %v4457_v3, 7  ;;  %v869_v12 = vrot.slane %v4457_v3, 6  ;;  %v1174_v20 = vrot.slane %v4457_v3, 2 }
 0x227   :  { %v1076_v13 = vrot.slane %v4457_v3, 1  ;;  %v1367_v42 = vrot.slane %v4457_v3, 4  ;;  %v1464_v54 = vrot.slane %v4457_v3, 5 }
 0x228   :  { %1285 = vrot.lane.b32.xlu2 %v1270_v6, %s3717_s2  ;;  %946 = vrot.lane.b32.xlu0 %v933_v10, %s3718_s1  ;;  %890 = vst.msk [vmem:[#allocation2 + $0x18] sm:$0xfc] %vm889_vm6, %v869_v12 }
 0x229   :  { %v621_v4 = vpop.f32.mrf.mxu2  ;;  %1563 = vst.msk [vmem:[#allocation2 + $0x8] sm:$0xfc] %vm889_vm6, %v869_v12 }
 0x22a   :  { %v622_v16 = vadd.f32 %v621_v4, %v4263_v49 }
 0x22b   :  { %v754_v22 = vpop.f32.mrf.mxu1  ;;  %v701_v2 = vpop.f32.mrf.mxu3 }
 0x22c   :  { %v4473_v17 = vmax.f32 %v622_v16, %v752_v58  ;;  %v755_v49 = vadd.f32 %v754_v22, %v689_v57 }
 0x22e   :  { %1189 = vrot.lane.b32.xlu1 %v1174_v20, %s3719_s29  ;;  %v1077_v23 = vrot.slane %v4473_v17, 1  ;;  %v870_v5 = vrot.slane %v4473_v17, 6  ;;  %v1271_v53 = vrot.slane %v4473_v17, 3 }
 0x230   :  { %1091 = vrot.lane.b32.xlu0 %v1076_v13, %s3720_s30  ;;  %v1078_v32 = vsel %vm1075_vm1, %v1076_v13, %v1077_v23  ;;  %v871_v41 = vsel %vm6724_vm7, %v869_v12, %v870_v5  ;;  %v1272_v59 = vsel %vm419_vm0, %v1270_v6, %v1271_v53  ;;  %v1175_v12 = vrot.slane %v4473_v17, 2 }
 0x231   :  { %v624_v38 = vpop.f32.mrf.mxu2  ;;  %1093 = vrot.lane.b32.xlu2 %v1078_v32, %s3720_s30  ;;  %892 = vst.msk [vmem:[#allocation2 + $0x30] sm:$0xff] %vm891_vm9, %v871_v41  ;;  %v1465_v6 = vrot.slane %v4473_v17, 5 }
 0x232   :  { %v625_v44 = vadd.f32 %v624_v38, %v4280_v62  ;;  %1564 = vst.msk [vmem:[#allocation2 + $0x20] sm:$0xff] %vm891_vm9, %v871_v41 }
 0x233   :  { %v757_v36 = vpop.f32.mrf.mxu1  ;;  %1746 = vst.msk [vmem:[#allocation2 + $0x10] sm:$0xff] %vm891_vm9, %v871_v41  ;;  %v1466_v22 = vsel %vm1463_vm13, %v1464_v54, %v1465_v6  ;;  %v704_v41 = vpop.f32.mrf.mxu3 }
 0x234   :  { %v4489_v39 = vmax.f32 %v625_v44, %v755_v49  ;;  %v758_v57 = vadd.f32 %v757_v36, %v692_v60 }
 0x236   :  { %1382 = vrot.lane.b32.xlu1 %v1367_v42, %s3721_s12  ;;  %v872_v62 = vrot.slane %v4489_v39, 6  ;;  %v1177_v3 = vrot.slane %v4489_v39, 2 }
 0x238   :  { %1479 = vrot.lane.b32.xlu0 %v1464_v54, %s3722_s13  ;;  %v873_v0 = vsel %vm6724_vm7, %v870_v5, %v872_v62  ;;  %v1368_v5 = vrot.slane %v4473_v17, 4 }
 0x239   :  { %v627_v63 = vpop.f32.mrf.mxu2  ;;  %1287 = vrot.lane.b32.xlu2 %v1272_v59, %s3717_s2  ;;  %893 = vst.msk [vmem:[#allocation2 + $0x48] sm:$0xff] %vm891_vm9, %v873_v0 }
 0x23a   :  { %v628_v1 = vadd.f32 %v627_v63, %v4297_v28  ;;  %1565 = vst.msk [vmem:[#allocation2 + $0x38] sm:$0xff] %vm891_vm9, %v873_v0  ;;  %v1176_v28 = vsel %vm6738_vm11, %v1174_v20, %v1175_v12  ;;  %v934_v20 = vrot.slane %v4473_v17, 7  ;;  %v1369_v44 = vsel %vm6739_vm5, %v1367_v42, %v1368_v5 }
 0x23b   :  { %v760_v58 = vpop.f32.mrf.mxu1  ;;  %1747 = vst.msk [vmem:[#allocation2 + $0x28] sm:$0xff] %vm891_vm9, %v873_v0 }
 0x23c   :  { %v4507_v60 = vmax.f32 %v628_v1, %v758_v57  ;;  %v761_v16 = vadd.f32 %v760_v58, %v4463_v11  ;;  %v1273_v57 = vrot.slane %v4489_v39, 3  ;;  %v1178_v1 = vsel %vm6738_vm11, %v1175_v12, %v1177_v3 }
 0x23e   :  { %1019 = vrot.lane.b32.xlu1 %v4473_v17, %s3716_s0  ;;  %v874_v4 = vrot.slane %v4507_v60, 6  ;;  %v1274_v0 = vsel %vm419_vm0, %v1271_v53, %v1273_v57  ;;  %v936_v53 = vrot.slane %v4489_v39, 7 }
 0x240   :  { %1191 = vrot.lane.b32.xlu0 %v1176_v28, %s3719_s29  ;;  %v875_v49 = vsel %vm6724_vm7, %v872_v62, %v874_v4 }
 0x241   :  { %v630_v13 = vpop.f32.mrf.mxu2  ;;  %1481 = vrot.lane.b32.xlu2 %v1466_v22, %s3722_s13  ;;  %894 = vst.msk [vmem:[#allocation2 + $0x60] sm:$0xff] %vm891_vm9, %v875_v49 }
 0x242   :  { %v631_v32 = vadd.f32 %v630_v13, %v4314_v31  ;;  %1566 = vst.msk [vmem:[#allocation2 + $0x50] sm:$0xff] %vm891_vm9, %v875_v49  ;;  %v935_v31 = vsel %vm932_vm14, %v933_v10, %v934_v20  ;;  %v1467_v13 = vrot.slane %v4489_v39, 5 }
 0x243   :  { %v763_v38 = vpop.f32.mrf.mxu1  ;;  %1748 = vst.msk [vmem:[#allocation2 + $0x40] sm:$0xff] %vm891_vm9, %v875_v49 }
 0x244   :  { %v4527_v11 = vmax.f32 %v631_v32, %v761_v16  ;;  %v764_v54 = vadd.f32 %v763_v38, %v698_v35  ;;  %v1079_v35 = vrot.slane %v4489_v39, 1  ;;  %v937_v32 = vsel %vm932_vm14, %v934_v20, %v936_v53 }
 0x246   :  { %1384 = vrot.lane.b32.xlu1 %v1369_v44, %s3721_s12  ;;  %v876_v36 = vrot.slane %v4527_v11, 6 }
 0x248   :  { %948 = vrot.lane.b32.xlu0 %v935_v31, %s3718_s1  ;;  %v877_v59 = vsel %vm6724_vm7, %v874_v4, %v876_v36  ;;  %v1080_v4 = vsel %vm1075_vm1, %v1077_v23, %v1079_v35  ;;  %v1370_v23 = vrot.slane %v4489_v39, 4 }
 0x249   :  { %v633_v62 = vpop.f32.mrf.mxu2  ;;  %1021 = vrot.lane.b32.xlu2 %v4489_v39, %s3716_s0  ;;  %895 = vst.msk [vmem:[#allocation2 + $0x78] sm:$0xff] %vm891_vm9, %v877_v59  ;;  %v1372_v39 = vrot.slane %v4507_v60, 4 }
 0x24a   :  { %v634_v42 = vadd.f32 %v633_v62, %v4325_v34  ;;  %1567 = vst.msk [vmem:[#allocation2 + $0x68] sm:$0xff] %vm891_vm9, %v877_v59  ;;  %v707_v34 = vpop.f32.mrf.mxu3  ;;  %v1371_v31 = vsel %vm6739_vm5, %v1368_v5, %v1370_v23  ;;  %v1179_v62 = vrot.slane %v4507_v60, 2 }
 0x24b   :  { %v766_v10 = vpop.f32.mrf.mxu1  ;;  %1749 = vst.msk [vmem:[#allocation2 + $0x58] sm:$0xff] %vm891_vm9, %v877_v59 }
 0x24c   :  { %v4545_v63 = vmax.f32 %v634_v42, %v764_v54  ;;  %v767_v28 = vadd.f32 %v766_v10, %v701_v2  ;;  %v1180_v5 = vsel %vm6738_vm11, %v1177_v3, %v1179_v62 }
 0x24e   :  { %1289 = vrot.lane.b32.xlu1 %v1274_v0, %s3717_s2  ;;  %v878_v58 = vrot.slane %v4545_v63, 6 }
 0x250   :  { %1193 = vrot.lane.b32.xlu0 %v1178_v1, %s3719_s29  ;;  %v879_v22 = vsel %vm6724_vm7, %v876_v36, %v878_v58  ;;  %v1469_v1 = vrot.slane %v4507_v60, 5 }
 0x251   :  { %v636_v16 = vpop.f32.mrf.mxu2  ;;  %1095 = vrot.lane.b32.xlu2 %v1080_v4, %s3720_s30  ;;  %896 = vst.msk [vmem:[#allocation2 + $0x90] sm:$0xff] %vm891_vm9, %v879_v22 }
 0x252   :  { %v637_v12 = vadd.f32 %v636_v16, %v4336_v37  ;;  %1568 = vst.msk [vmem:[#allocation2 + $0x80] sm:$0xff] %vm891_vm9, %v879_v22  ;;  %v1468_v37 = vsel %vm1463_vm13, %v1465_v6, %v1467_v13  ;;  %v710_v36 = vpop.f32.mrf.mxu3  ;;  %v938_v16 = vrot.slane %v4507_v60, 7 }
 0x253   :  { %v769_v2 = vpop.f32.mrf.mxu1  ;;  %1750 = vst.msk [vmem:[#allocation2 + $0x70] sm:$0xff] %vm891_vm9, %v879_v22  ;;  %v1470_v22 = vsel %vm1463_vm13, %v1467_v13, %v1469_v1 }
 0x254   :  { %v4568_v49 = vmax.f32 %v637_v12, %v767_v28  ;;  %v770_v44 = vadd.f32 %v769_v2, %v704_v41  ;;  %v1275_v41 = vrot.slane %v4507_v60, 3 }
 0x256   :  { %950 = vrot.lane.b32.xlu1 %v937_v32, %s3718_s1  ;;  %v880_v38 = vrot.slane %v4568_v49, 6  ;;  %v1276_v10 = vsel %vm419_vm0, %v1273_v57, %v1275_v41  ;;  %v939_v32 = vsel %vm932_vm14, %v936_v53, %v938_v16  ;;  %v1373_v53 = vsel %vm6739_vm5, %v1370_v23, %v1372_v39 }
 0x257   :  { %v1277_v23 = vrot.slane %v4527_v11, 3 }
 0x258   :  { %1483 = vrot.lane.b32.xlu0 %v1468_v37, %s3722_s13  ;;  %v881_v20 = vsel %vm6724_vm7, %v878_v58, %v880_v38 }
 0x259   :  { %v639_v54 = vpop.f32.mrf.mxu2  ;;  %1386 = vrot.lane.b32.xlu2 %v1371_v31, %s3721_s12  ;;  %897 = vst.msk [vmem:[#allocation2 + $0xa8] sm:$0xff] %vm891_vm9, %v881_v20 }
 0x25a   :  { %v640_v59 = vadd.f32 %v639_v54, %v4347_v40  ;;  %1569 = vst.msk [vmem:[#allocation2 + $0x98] sm:$0xff] %vm891_vm9, %v881_v20  ;;  %v713_v28 = vpop.f32.mrf.mxu3 }
 0x25b   :  { %v772_v17 = vpop.f32.mrf.mxu1  ;;  %1751 = vst.msk [vmem:[#allocation2 + $0x88] sm:$0xff] %vm891_vm9, %v881_v20 }
 0x25c   :  { %v4586_v6 = vmax.f32 %v640_v59, %v770_v44  ;;  %v773_v40 = vadd.f32 %v772_v17, %v707_v34  ;;  %v1081_v34 = vrot.slane %v4507_v60, 1  ;;  %v1181_v44 = vrot.slane %v4527_v11, 2 }
 0x25d   :  { %v1083_v59 = vrot.slane %v4527_v11, 1 }
 0x25e   :  { %1195 = vrot.lane.b32.xlu1 %v1180_v5, %s3719_s29  ;;  %v1560_v42 = vrot.slane %v4586_v6, 6  ;;  %v1182_v54 = vsel %vm6738_vm11, %v1179_v62, %v1181_v44  ;;  %v1471_v62 = vrot.slane %v4527_v11, 5 }
 0x260   :  { %1023 = vrot.lane.b32.xlu0 %v4507_v60, %s3716_s0  ;;  %1754 = vst.msk [vmem:[#allocation2 + $0xb8] sm:$0x3] %vm1753_vm4, %v1560_v42  ;;  %v1561_v3 = vsel %vm6724_vm7, %v880_v38, %v1560_v42  ;;  %v1885_v60 = vld [vmem:[%s6699_s3 + $0x40] sm:$0xff] }
 0x261   :  { %v642_v0 = vpop.f32.mrf.mxu2  ;;  %1291 = vrot.lane.b32.xlu2 %v1276_v10, %s3717_s2  ;;  %1570 = vst.msk [vmem:[#allocation2 + $0xb0] sm:$0xff] %vm891_vm9, %v1561_v3  ;;  %v1892_v10 = vld [vmem:[%s6699_s3 + $0x78] sm:$0xff] }
 0x262   :  { %v643_v58 = vadd.f32 %v642_v0, %v4358_v43  ;;  %1752 = vst.msk [vmem:[#allocation2 + $0xa0] sm:$0xff] %vm891_vm9, %v1561_v3  ;;  %v1082_v43 = vsel %vm1075_vm1, %v1079_v35, %v1081_v34  ;;  %v716_v31 = vpop.f32.mrf.mxu3  ;;  %v1891_v0 = vld [vmem:[%s6699_s3 + $0x70] sm:$0xff]  ;;  %1971 = vmatpush.msrb.mxu2 %v1892_v10  ;;  %v1183_v10 = vrot.slane %v4545_v63, 2 }
 0x263   :  { %v775_v4 = vpop.f32.mrf.mxu1 }
 0x264   :  { %v4606_v57 = vmax.f32 %v643_v58, %v773_v40  ;;  %v776_v2 = vadd.f32 %v775_v4, %v710_v36  ;;  %v1890_v58 = vld [vmem:[%s6699_s3 + $0x68] sm:$0xff]  ;;  %1972 = vmatpush.msrb.mxu2 %v1891_v0 }
 0x266   :  { %1485 = vrot.lane.b32.xlu1 %v1470_v22, %s3722_s13  ;;  %v905_v12 = vrot.slane %v4606_v57, 6  ;;  %v1472_v22 = vsel %vm1463_vm13, %v1469_v1, %v1471_v62  ;;  %1973 = vmatpush.msrb.mxu2 %v1890_v58  ;;  %v1908_v58 = vld [vmem:[%s6699_s3 + $0xf8] sm:$0xff] }
 0x267   :  { %2036 = vmatpush.msrb.mxu3 %v1908_v58  ;;  %v1902_v58 = vld [vmem:[%s6699_s3 + $0xc8] sm:$0xff] }
 0x268   :  { %1097 = vrot.lane.b32.xlu0 %v1082_v43, %s3720_s30  ;;  %925 = vst.msk [vmem:[#allocation2 + $0xd8] sm:$0xfc] %vm889_vm6, %v905_v12 }
 0x269   :  { %v645_v37 = vpop.f32.mrf.mxu2  ;;  %952 = vrot.lane.b32.xlu2 %v939_v32, %s3718_s1  ;;  %1574 = vst.msk [vmem:[#allocation2 + $0xc8] sm:$0xfc] %vm889_vm6, %v905_v12  ;;  %v1889_v32 = vld [vmem:[%s6699_s3 + $0x60] sm:$0xff]  ;;  %vm6729_vm6 = vcmask 261249  }
 0x26a   :  { %v646_v13 = vadd.f32 %v645_v37, %v4368_v46  ;;  %v719_v3 = vpop.f32.mrf.mxu3  ;;  %v940_v37 = vrot.slane %v4527_v11, 7  ;;  %1974 = vmatpush.msrb.mxu2 %v1889_v32 }
 0x26b   :  { %v778_v35 = vpop.f32.mrf.mxu1 }
 0x26c   :  { %v4624_v38 = vmax.f32 %v646_v13, %v776_v2  ;;  %v779_v46 = vadd.f32 %v778_v35, %v713_v28  ;;  %v1278_v28 = vsel %vm419_vm0, %v1275_v41, %v1277_v23  ;;  %v1888_v35 = vld [vmem:[%s6699_s3 + $0x58] sm:$0xff] }
 0x26d   :  { %1975 = vmatpush.msrb.mxu2 %v1888_v35  ;;  %v1881_v35 = vld [vmem:[%s6699_s3 + $0x20] sm:$0xff] }
 0x26e   :  { %1025 = vrot.lane.b32.xlu1 %v4527_v11, %s3716_s0  ;;  %v906_v36 = vrot.slane %v4624_v38, 6 }
 0x270   :  { %1388 = vrot.lane.b32.xlu0 %v1373_v53, %s3721_s12  ;;  %v907_v17 = vsel %vm6724_vm7, %v905_v12, %v906_v36  ;;  %v1374_v12 = vrot.slane %v4527_v11, 4  ;;  %v941_v53 = vsel %vm932_vm14, %v938_v16, %v940_v37 }
 0x271   :  { %v648_v20 = vpop.f32.mrf.mxu2  ;;  %1197 = vrot.lane.b32.xlu2 %v1182_v54, %s3719_s29  ;;  %926 = vst.msk [vmem:[#allocation2 + $0xf0] sm:$0xff] %vm891_vm9, %v907_v17 }
 0x272   :  { %v649_v5 = vadd.f32 %v648_v20, %v4378_v47  ;;  %1575 = vst.msk [vmem:[#allocation2 + $0xe0] sm:$0xff] %vm891_vm9, %v907_v17  ;;  %v1084_v47 = vsel %vm1075_vm1, %v1081_v34, %v1083_v59  ;;  %v722_v54 = vpop.f32.mrf.mxu3 }
 0x273   :  { %v781_v42 = vpop.f32.mrf.mxu1  ;;  %1756 = vst.msk [vmem:[#allocation2 + $0xd0] sm:$0xff] %vm891_vm9, %v907_v17  ;;  %v1279_v17 = vrot.slane %v4545_v63, 3 }
 0x274   :  { %v4642_v40 = vmax.f32 %v649_v5, %v779_v46  ;;  %v782_v34 = vadd.f32 %v781_v42, %v716_v31  ;;  %v1887_v31 = vld [vmem:[%s6699_s3 + $0x50] sm:$0xff] }
 0x275   :  { %1976 = vmatpush.msrb.mxu2 %v1887_v31 }
 0x276   :  { %1099 = vrot.lane.b32.xlu1 %v1084_v47, %s3720_s30  ;;  %v908_v4 = vrot.slane %v4642_v40, 6 }
 0x278   :  { %1293 = vrot.lane.b32.xlu0 %v1278_v28, %s3717_s2  ;;  %v909_v2 = vsel %vm6724_vm7, %v906_v36, %v908_v4  ;;  %v1907_v28 = vld [vmem:[%s6699_s3 + $0xf0] sm:$0xff] }
 0x279   :  { %v651_v43 = vpop.f32.mrf.mxu2  ;;  %1487 = vrot.lane.b32.xlu2 %v1472_v22, %s3722_s13  ;;  %927 = vst.msk [vmem:[#allocation2 + $0x108] sm:$0xff] %vm891_vm9, %v909_v2  ;;  %v1906_v22 = vld [vmem:[%s6699_s3 + $0xe8] sm:$0xff]  ;;  %2037 = vmatpush.msrb.mxu3 %v1907_v28 }
 0x27a   :  { %v652_v41 = vadd.f32 %v651_v43, %v4388_v50  ;;  %1576 = vst.msk [vmem:[#allocation2 + $0xf8] sm:$0xff] %vm891_vm9, %v909_v2  ;;  %v1375_v50 = vsel %vm6739_vm5, %v1372_v39, %v1374_v12  ;;  %v1886_v39 = vld [vmem:[%s6699_s3 + $0x48] sm:$0xff] }
 0x27b   :  { %v784_v13 = vpop.f32.mrf.mxu1  ;;  %1757 = vst.msk [vmem:[#allocation2 + $0xe8] sm:$0xff] %vm891_vm9, %v909_v2  ;;  %1977 = vmatpush.msrb.mxu2 %v1886_v39  ;;  %v1882_v43 = vld [vmem:[%s6699_s3 + $0x28] sm:$0xff]  ;;  %2038 = vmatpush.msrb.mxu3 %v1906_v22  ;;  %v1185_v22 = vrot.slane %v4568_v49, 2 }
 0x27c   :  { %v4679_v1 = vmax.f32 %v652_v41, %v782_v34  ;;  %v785_v46 = vadd.f32 %v784_v13, %v719_v3  ;;  %v1085_v3 = vrot.slane %v4545_v63, 1  ;;  %v1883_v34 = vld [vmem:[%s6699_s3 + $0x30] sm:$0xff] }
 0x27d   :  { %1978 = vmatpush.msrb.mxu2 %v1885_v60  ;;  %v1880_v60 = vld [vmem:[%s6699_s3 + $0x18] sm:$0xff] }
 0x27e   :  { %1390 = vrot.lane.b32.xlu1 %v1375_v50, %s3721_s12  ;;  %v910_v36 = vrot.slane %v4679_v1, 6  ;;  %v1086_v41 = vsel %vm1075_vm1, %v1083_v59, %v1085_v3  ;;  %v1905_v50 = vld [vmem:[%s6699_s3 + $0xe0] sm:$0xff]  ;;  %v725_v59 = vpop.f32.mrf.mxu3 }
 0x27f   :  { %2039 = vmatpush.msrb.mxu3 %v1905_v50 }
 0x280   :  { %954 = vrot.lane.b32.xlu0 %v941_v53, %s3718_s1  ;;  %v911_v42 = vsel %vm6724_vm7, %v908_v4, %v910_v36  ;;  %v1280_v4 = vsel %vm419_vm0, %v1277_v23, %v1279_v17  ;;  %v1184_v23 = vsel %vm6738_vm11, %v1181_v44, %v1183_v10  ;;  %v942_v44 = vrot.slane %v4545_v63, 7 }
 0x281   :  { %v654_v20 = vpop.f32.mrf.mxu2  ;;  %1027 = vrot.lane.b32.xlu2 %v4545_v63, %s3716_s0  ;;  %928 = vst.msk [vmem:[#allocation2 + $0x120] sm:$0xff] %vm891_vm9, %v911_v42 }
 0x282   :  { %v655_v16 = vadd.f32 %v654_v20, %v4398_v51  ;;  %v4709_v5 = vpop.permute.xlu2 %1285  ;;  %v1884_v51 = vld [vmem:[%s6699_s3 + $0x38] sm:$0xff]  ;;  %1577 = vst.msk [vmem:[#allocation2 + $0x110] sm:$0xff] %vm891_vm9, %v911_v42 }
 0x283   :  { %v787_v0 = vpop.f32.mrf.mxu1  ;;  %1758 = vst.msk [vmem:[#allocation2 + $0x100] sm:$0xff] %vm891_vm9, %v911_v42  ;;  %1979 = vmatpush.msrb.mxu2 %v1884_v51  ;;  %v1904_v20 = vld [vmem:[%s6699_s3 + $0xd8] sm:$0xff]  ;;  %v943_v42 = vsel %vm932_vm14, %v940_v37, %v942_v44  ;;  %v1878_v51 = vld [vmem:[%s6699_s3 + $0x8] sm:$0xff] }
 0x284   :  { %v4714_v47 = vmax.f32 %v655_v16, %v785_v46  ;;  %v788_v2 = vadd.f32 %v787_v0, %v722_v54  ;;  %v1473_v46 = vrot.slane %v4545_v63, 5  ;;  %v1903_v16 = vld [vmem:[%s6699_s3 + $0xd0] sm:$0xff]  ;;  %2040 = vmatpush.msrb.mxu3 %v1904_v20 }
 0x285   :  { %1980 = vmatpush.msrb.mxu2 %v1883_v34  ;;  %v1879_v0 = vld [vmem:[%s6699_s3 + $0x10] sm:$0xff] }
 0x286   :  { %1295 = vrot.lane.b32.xlu1 %v1280_v4, %s3717_s2  ;;  %v912_v32 = vrot.slane %v4714_v47, 6  ;;  %v1474_v37 = vsel %vm1463_vm13, %v1471_v62, %v1473_v46  ;;  %2041 = vmatpush.msrb.mxu3 %v1903_v16  ;;  %v1901_v62 = vld [vmem:[%s6699_s3 + $0xc0] sm:$0xff]  ;;  %v728_v50 = vpop.f32.mrf.mxu3  ;;  %v1475_v16 = vrot.slane %v4568_v49, 5 }
 0x287   :  { %1981 = vmatpush.msrb.mxu2 %v1882_v43 }
 0x288   :  { %1199 = vrot.lane.b32.xlu0 %v1184_v23, %s3719_s29  ;;  %v913_v53 = vsel %vm6724_vm7, %v910_v36, %v912_v32  ;;  %v1376_v36 = vrot.slane %v4545_v63, 4  ;;  %2042 = vmatpush.msrb.mxu3 %v1902_v58  ;;  %v1877_v23 = vld [vmem:[%s6699_s3] sm:$0xff] }
 0x289   :  { %v657_v13 = vpop.f32.mrf.mxu2  ;;  %1101 = vrot.lane.b32.xlu2 %v1086_v41, %s3720_s30  ;;  %929 = vst.msk [vmem:[#allocation2 + $0x138] sm:$0xff] %vm891_vm9, %v913_v53  ;;  %1982 = vmatpush.msrb.mxu2 %v1881_v35  ;;  %v1281_v41 = vrot.slane %v4568_v49, 3 }
 0x28a   :  { %v658_v31 = vadd.f32 %v657_v13, %v4405_v45  ;;  %1578 = vst.msk [vmem:[#allocation2 + $0x128] sm:$0xff] %vm891_vm9, %v913_v53  ;;  %v1377_v4 = vsel %vm6739_vm5, %v1374_v12, %v1376_v36  ;;  %2043 = vmatpush.msrb.mxu3 %v1901_v62  ;;  %v1900_v13 = vld [vmem:[%s6699_s3 + $0xb8] sm:$0xff]  ;;  %v944_v62 = vrot.slane %v4568_v49, 7 }
 0x28b   :  { %v4765_v39 = vpop.permute.xlu2 %1093  ;;  %v790_v54 = vpop.f32.mrf.mxu1  ;;  %1759 = vst.msk [vmem:[#allocation2 + $0x118] sm:$0xff] %vm891_vm9, %v913_v53  ;;  %1983 = vmatpush.msrb.mxu2 %v1880_v60  ;;  %v1918_v53 = vld [vmem:[%s6699_s3 + $0x148] sm:$0xff]  ;;  %v1282_v20 = vsel %vm419_vm0, %v1279_v17, %v1281_v41  ;;  %v1897_v17 = vld [vmem:[%s6699_s3 + $0xa0] sm:$0xff] }
 0x28c   :  { %v4775_v45 = vmax.f32 %v658_v31, %v788_v2  ;;  %v791_v11 = vadd.f32 %v790_v54, %v725_v59  ;;  %2044 = vmatpush.msrb.mxu3 %v1900_v13  ;;  %v1898_v59 = vld [vmem:[%s6699_s3 + $0xa8] sm:$0xff]  ;;  %2107 = vmatpush.msrb.mxu0 %v1918_v53  ;;  %v1916_v13 = vld [vmem:[%s6699_s3 + $0x138] sm:$0xff] }
 0x28d   :  { %1984 = vmatpush.msrb.mxu2 %v1879_v0 }
 0x28e   :  { %956 = vrot.lane.b32.xlu1 %v943_v42, %s3718_s1  ;;  %v914_v28 = vrot.slane %v4775_v45, 6 }
 0x28f   :  { %1985 = vmatpush.msrb.mxu2 %v1878_v51  ;;  %v1087_v51 = vrot.slane %v4568_v49, 1 }
 0x290   :  { %1489 = vrot.lane.b32.xlu0 %v1474_v37, %s3722_s13  ;;  %v915_v12 = vsel %vm6724_vm7, %v912_v32, %v914_v28  ;;  %v1186_v32 = vsel %vm6738_vm11, %v1183_v10, %v1185_v22 }
 0x291   :  { %v660_v34 = vpop.f32.mrf.mxu2  ;;  %1392 = vrot.lane.b32.xlu2 %v1377_v4, %s3721_s12  ;;  %930 = vst.msk [vmem:[#allocation2 + $0x150] sm:$0xff] %vm891_vm9, %v915_v12  ;;  %1986 = vmatpush.msrb.mxu2 %v1877_v23 }
 0x292   :  { %v661_v43 = vadd.f32 %v660_v34, %v4412_v48  ;;  %v1899_v48 = vld [vmem:[%s6699_s3 + $0xb0] sm:$0xff]  ;;  %1579 = vst.msk [vmem:[#allocation2 + $0x140] sm:$0xff] %vm891_vm9, %v915_v12  ;;  %v1476_v34 = vsel %vm1463_vm13, %v1473_v46, %v1475_v16  ;;  %v945_v46 = vsel %vm932_vm14, %v942_v44, %v944_v62 }
 0x293   :  { %v4820_v2 = vpop.permute.xlu2 %1287  ;;  %v793_v35 = vpop.f32.mrf.mxu1  ;;  %1760 = vst.msk [vmem:[#allocation2 + $0x130] sm:$0xff] %vm891_vm9, %v915_v12  ;;  %2045 = vmatpush.msrb.mxu3 %v1899_v48  ;;  %v1896_v12 = vld [vmem:[%s6699_s3 + $0x98] sm:$0xff]  ;;  %v1895_v48 = vld [vmem:[%s6699_s3 + $0x90] sm:$0xff] }
 0x294   :  { %v4837_v31 = vmax.f32 %v661_v43, %v791_v11  ;;  %v794_v54 = vadd.f32 %v793_v35, %v728_v50  ;;  %v1088_v43 = vsel %vm1075_vm1, %v1085_v3, %v1087_v51  ;;  %v1915_v50 = vld [vmem:[%s6699_s3 + $0x130] sm:$0xff]  ;;  %v1894_v35 = vld [vmem:[%s6699_s3 + $0x88] sm:$0xff] }
 0x295   :  { %2046 = vmatpush.msrb.mxu3 %v1898_v59  ;;  %v1914_v59 = vld [vmem:[%s6699_s3 + $0x128] sm:$0xff] }
 0x296   :  { %1201 = vrot.lane.b32.xlu1 %v1186_v32, %s3719_s29  ;;  %v916_v58 = vrot.slane %v4837_v31, 6 }
 0x297   :  { %2047 = vmatpush.msrb.mxu3 %v1897_v17  ;;  %v1911_v17 = vld [vmem:[%s6699_s3 + $0x110] sm:$0xff] }
 0x298   :  { %v1018_v10 = vpop.permute.xlu1 %1017  ;;  %1029 = vrot.lane.b32.xlu0 %v4568_v49, %s3716_s0  ;;  %v917_v23 = vsel %vm6724_vm7, %v914_v28, %v916_v58 }
 0x299   :  { %v663_v60 = vpop.f32.mrf.mxu2  ;;  %1297 = vrot.lane.b32.xlu2 %v1282_v20, %s3717_s2  ;;  %931 = vst.msk [vmem:[#allocation2 + $0x168] sm:$0xff] %vm891_vm9, %v917_v23  ;;  %2048 = vmatpush.msrb.mxu3 %v1896_v12 }
 0x29a   :  { %v664_v42 = vadd.f32 %v663_v60, %v4419_v55  ;;  %v947_v0 = vpop.permute.xlu0 %946  ;;  %v1917_v55 = vld [vmem:[%s6699_s3 + $0x140] sm:$0xff]  ;;  %1580 = vst.msk [vmem:[#allocation2 + $0x158] sm:$0xff] %vm891_vm9, %v917_v23  ;;  %v1283_v60 = vrot.slane %v4586_v6, 3 }
 0x29b   :  { %968 = vst.msk [vmem:[#allocation2 + $0x18] sm:$0xfe] %vm6729_vm6, %v947_v0  ;;  %v4858_v37 = vpop.permute.xlu2 %1481  ;;  %2108 = vmatpush.msrb.mxu0 %v1917_v55  ;;  %2049 = vmatpush.msrb.mxu3 %v1895_v48 }
 0x29c   :  { %v4864_v4 = vmax.f32 %v664_v42, %v794_v54  ;;  %1039 = vst.msk [vmem:[#allocation2 + $0x18] sm:$0xff] %vm1038_vm12, %v1018_v10  ;;  %v1913_v54 = vld [vmem:[%s6699_s3 + $0x120] sm:$0xff]  ;;  %v1187_v42 = vrot.slane %v4586_v6, 2 }
 0x29d   :  { %1587 = vst.msk [vmem:[#allocation2 + $0x8] sm:$0xfe] %vm6729_vm6, %v947_v0  ;;  %2109 = vmatpush.msrb.mxu0 %v1916_v13  ;;  %2050 = vmatpush.msrb.mxu3 %v1894_v35  ;;  %v1912_v0 = vld [vmem:[%s6699_s3 + $0x118] sm:$0xff]  ;;  %vm6730_vm6 = vcmask 254080  }
 0x29e   :  { %1611 = vst.msk [vmem:[#allocation2 + $0x8] sm:$0xff] %vm1038_vm12, %v1018_v10  ;;  %1491 = vrot.lane.b32.xlu1 %v1476_v34, %s3722_s13  ;;  %v1571_v28 = vrot.slane %v4864_v4, 6  ;;  %v1089_v10 = vrot.slane %v4586_v6, 1  ;;  %v1910_v34 = vld [vmem:[%s6699_s3 + $0x108] sm:$0xff]  ;;  %v1188_v13 = vsel %vm6738_vm11, %v1185_v22, %v1187_v42 }
 0x29f   :  { %1118 = vst.msk [vmem:[#allocation2 + $0x18] sm:$0xff] %vm1117_vm3, %v4765_v39  ;;  %2110 = vmatpush.msrb.mxu0 %v1915_v50 }
 0x2a0   :  { %v1190_v11 = vpop.permute.xlu1 %1189  ;;  %1103 = vrot.lane.b32.xlu0 %v1088_v43, %s3720_s30  ;;  %1633 = vst.msk [vmem:[#allocation2 + $0x8] sm:$0xff] %vm1117_vm3, %v4765_v39  ;;  %v1378_v39 = vrot.slane %v4568_v49, 4  ;;  %v1572_v32 = vsel %vm6724_vm7, %v916_v58, %v1571_v28  ;;  %vm6727_vm7 = vcmask 917252   ;;  %v1380_v58 = vrot.slane %v4586_v6, 4 }
 0x2a1   :  { %958 = vrot.lane.b32.xlu2 %v945_v46, %s3718_s1  ;;  %1761 = vst.msk [vmem:[#allocation2 + $0x148] sm:$0xff] %vm891_vm9, %v917_v23  ;;  %2111 = vmatpush.msrb.mxu0 %v1914_v59  ;;  %v1582_v46 = vrot.slane %v4586_v6, 7  ;;  %v1090_v22 = vsel %vm1075_vm1, %v1087_v51, %v1089_v10  ;;  %v976_v49 = vrot.slane %v4606_v57, 7 }
 0x2a2   :  { %v1092_v3 = vpop.permute.xlu0 %1091  ;;  %v1379_v53 = vsel %vm6739_vm5, %v1376_v36, %v1378_v39  ;;  %1581 = vst.msk [vmem:[#allocation2 + $0x170] sm:$0xff] %vm891_vm9, %v1572_v32 }
 0x2a3   :  { %1116 = vst.msk [vmem:[#allocation2] sm:$0x80] %vm1115_vm10, %v1092_v3  ;;  %v4903_v44 = vpop.permute.xlu2 %1021  ;;  %2112 = vmatpush.msrb.mxu0 %v1913_v54  ;;  %v1477_v3 = vrot.slane %v4586_v6, 5  ;;  %v1583_v59 = vsel %vm932_vm14, %v944_v62, %v1582_v46  ;;  %v1416_v54 = vrot.slane %v4606_v57, 4 }
 0x2a4   :  { %1214 = vst.msk [vmem:[#allocation2] sm:$0xc0] %vm6728_vm2, %v1190_v11  ;;  %vm969_vm2 = vcmask 261248  }
 0x2a5   :  { %1310 = vst.msk [vmem:[#allocation2] sm:$0xe0] %vm6725_vm15, %v4709_v5  ;;  %v1893_v5 = vld [vmem:[%s6699_s3 + $0x80] sm:$0xff]  ;;  %vm6726_vm15 = vcmask 1048451   ;;  %2113 = vmatpush.msrb.mxu0 %v1912_v0  ;;  %v1319_v0 = vrot.slane %v4606_v57, 3 }
 0x2a6   :  { %1608 = vrot.lane.b32.xlu1 %v4586_v6, %s3716_s0  ;;  %1762 = vst.msk [vmem:[#allocation2 + $0x160] sm:$0xff] %vm891_vm9, %v1572_v32  ;;  %2051 = vmatpush.msrb.mxu3 %v1893_v5  ;;  %vm6732_vm9 = vcmask 786048   ;;  %v1126_v5 = vrot.slane %v4606_v57, 1 }
 0x2a7   :  { %1763 = vst.msk [vmem:[#allocation2 + $0x178] sm:$0x3] %vm1753_vm4, %v1571_v28  ;;  %vm1215_vm4 = vcmask 654848   ;;  %2114 = vmatpush.msrb.mxu0 %v1911_v17  ;;  %v1909_v28 = vld [vmem:[%s6699_s3 + $0x100] sm:$0xff] }
 0x2a8   :  { %v1383_v20 = vpop.permute.xlu1 %1382  ;;  %1394 = vrot.lane.b32.xlu0 %v1379_v53, %s3721_s12 }
 0x2a9   :  { %1407 = vst.msk [vmem:[#allocation2] sm:$0xf0] %vm6727_vm7, %v1383_v20  ;;  %1630 = vrot.lane.b32.xlu2 %v1089_v10, %s3720_s30  ;;  %2115 = vmatpush.msrb.mxu0 %v1910_v34  ;;  %vm6733_vm7 = vcmask 1048448   ;;  %v1513_v34 = vrot.slane %v4606_v57, 5 }
 0x2aa   :  { %v1480_v63 = vpop.permute.xlu0 %1479 }
 0x2ab   :  { %1504 = vst.msk [vmem:[#allocation2] sm:$0xf8] %vm6726_vm15, %v1480_v63  ;;  %v4947_v36 = vpop.permute.xlu2 %1095  ;;  %2116 = vmatpush.msrb.mxu0 %v1909_v28  ;;  %vm6731_vm15 = vcmask 917248  }
 0x2ae   :  { %1676 = vrot.lane.b32.xlu1 %v1283_v60, %s3717_s2 }
 0x2b0   :  { %v1020_v55 = vpop.permute.xlu1 %1019  ;;  %1653 = vrot.lane.b32.xlu0 %v1187_v42, %s3719_s29  ;;  %v1127_v42 = vrot.slane %v4624_v38, 1 }
 0x2b1   :  { %1699 = vrot.lane.b32.xlu2 %v1380_v58, %s3721_s12 }
 0x2b2   :  { %v1192_v23 = vpop.permute.xlu0 %1191  ;;  %v1829_v43 = vld [vmem:[#allocation2] sm:$0xff]  ;;  %v1128_v17 = vsel %vm1075_vm1, %v1126_v5, %v1127_v42 }
 0x2b3   :  { %1216 = vst.msk [vmem:[#allocation2 + $0x18] sm:$0xff] %vm1215_vm4, %v1192_v23  ;;  %v1387_v11 = vpop.permute.xlu2 %1386  ;;  %1987 = vmatmul.f32.vlgmr.msrb.gmra.mxu2 %v1829_v43 }
 0x2b4   :  { %1656 = vst.msk [vmem:[#allocation2 + $0x8] sm:$0xff] %vm1215_vm4, %v1192_v23  ;;  %v1417_v23 = vrot.slane %v4624_v38, 4 }
 0x2b5   :  { %1312 = vst.msk [vmem:[#allocation2 + $0x18] sm:$0xff] %vm6732_vm9, %v4820_v2 }
 0x2b6   :  { %1764 = vrot.lane.b32.xlu1 %v1582_v46, %s3718_s1  ;;  %1679 = vst.msk [vmem:[#allocation2 + $0x8] sm:$0xff] %vm6732_vm9, %v4820_v2  ;;  %v1284_v2 = vsel %vm419_vm0, %v1281_v41, %v1283_v60  ;;  %v1223_v60 = vrot.slane %v4606_v57, 2  ;;  %v1418_v28 = vsel %vm6739_vm5, %v1416_v54, %v1417_v23 }
 0x2b8   :  { %v1385_v12 = vpop.permute.xlu1 %1384  ;;  %1722 = vrot.lane.b32.xlu0 %v1477_v3, %s3722_s13 }
 0x2b9   :  { %1409 = vst.msk [vmem:[#allocation2 + $0x18] sm:$0xff] %vm6731_vm15, %v1385_v12  ;;  %1203 = vrot.lane.b32.xlu2 %v1188_v13, %s3719_s29 }
 0x2ba   :  { %1506 = vst.msk [vmem:[#allocation2 + $0x18] sm:$0xff] %vm6733_vm7, %v4858_v37  ;;  %v949_v48 = vpop.permute.xlu0 %948 }
 0x2bb   :  { %1702 = vst.msk [vmem:[#allocation2 + $0x8] sm:$0xff] %vm6731_vm15, %v1385_v12  ;;  %v4985_v6 = vpop.permute.xlu2 %1291 }
 0x2bc   :  { %1725 = vst.msk [vmem:[#allocation2 + $0x8] sm:$0xff] %vm6733_vm7, %v4858_v37  ;;  %v1478_v37 = vsel %vm1463_vm13, %v1475_v16, %v1477_v3  ;;  %v1381_v16 = vsel %vm6739_vm5, %v1378_v39, %v1380_v58  ;;  %v1224_v3 = vrot.slane %v4624_v38, 2 }
 0x2bd   :  { %970 = vst.msk [vmem:[#allocation2 + $0x30] sm:$0xff] %vm969_vm2, %v949_v48 }
 0x2be   :  { %1040 = vst.msk [vmem:[#allocation2 + $0x30] sm:$0xff] %vm1038_vm12, %v1020_v55  ;;  %1105 = vrot.lane.b32.xlu1 %v1090_v22, %s3720_s30  ;;  %v977_v22 = vrot.slane %v4624_v38, 7 }
 0x2bf   :  { %1588 = vst.msk [vmem:[#allocation2 + $0x20] sm:$0xff] %vm969_vm2, %v949_v48 }
 0x2c0   :  { %1612 = vst.msk [vmem:[#allocation2 + $0x20] sm:$0xff] %vm1038_vm12, %v1020_v55  ;;  %v1290_v32 = vpop.permute.xlu1 %1289  ;;  %1299 = vrot.lane.b32.xlu0 %v1284_v2, %s3717_s2 }
 0x2c1   :  { %1767 = vst.msk [vmem:[#allocation2 + $0x10] sm:$0xff] %vm969_vm2, %v949_v48  ;;  %1493 = vrot.lane.b32.xlu2 %v1478_v37, %s3722_s13  ;;  %v1832_v51 = vld [vmem:[#allocation2 + $0x18] sm:$0xff]  ;;  %v1320_v48 = vrot.slane %v4624_v38, 3 }
 0x2c2   :  { %1787 = vst.msk [vmem:[#allocation2 + $0x10] sm:$0xff] %vm1038_vm12, %v1020_v55  ;;  %v1194_v50 = vpop.permute.xlu0 %1193  ;;  %1990 = vmatmul.f32.gmra.mxu2 %v1832_v51  ;;  %v978_v51 = vsel %vm932_vm14, %v976_v49, %v977_v22 }
 0x2c3   :  { %1119 = vst.msk [vmem:[#allocation2 + $0x30] sm:$0xff] %vm1117_vm3, %v4947_v36  ;;  %v1830_v41 = vld [vmem:[#allocation2 + $0x8] sm:$0xff]  ;;  %v953_v35 = vpop.permute.xlu2 %952 }
 0x2c4   :  { %1634 = vst.msk [vmem:[#allocation2 + $0x20] sm:$0xff] %vm1117_vm3, %v4947_v36  ;;  %2052 = vmatmul.f32.vlgmr.msrb.gmra.mxu3 %v1830_v41 }
 0x2c5   :  { %1801 = vst.msk [vmem:[#allocation2 + $0x10] sm:$0xff] %vm1117_vm3, %v4947_v36 }
 0x2c6   :  { %1217 = vst.msk [vmem:[#allocation2 + $0x30] sm:$0xff] %vm1215_vm4, %v1194_v50  ;;  %1396 = vrot.lane.b32.xlu1 %v1381_v16, %s3721_s12  ;;  %v1514_v16 = vrot.slane %v4624_v38, 5 }
 0x2c7   :  { %1657 = vst.msk [vmem:[#allocation2 + $0x20] sm:$0xff] %vm1215_vm4, %v1194_v50 }
 0x2c8   :  { %1815 = vst.msk [vmem:[#allocation2 + $0x10] sm:$0xff] %vm1215_vm4, %v1194_v50  ;;  %v951_v53 = vpop.permute.xlu1 %950  ;;  %1584 = vrot.lane.b32.xlu0 %v1583_v59, %s3718_s1 }
 0x2c9   :  { %1313 = vst.msk [vmem:[#allocation2 + $0x30] sm:$0xff] %vm6732_vm9, %v1290_v32  ;;  %1141 = vrot.lane.b32.xlu2 %v1126_v5, %s3720_s30  ;;  %v1515_v5 = vsel %vm1463_vm13, %v1513_v34, %v1514_v16 }
 0x2ca   :  { %1680 = vst.msk [vmem:[#allocation2 + $0x20] sm:$0xff] %vm6732_vm9, %v1290_v32  ;;  %v1484_v39 = vpop.permute.xlu0 %1483  ;;  %v1225_v32 = vsel %vm6738_vm11, %v1223_v60, %v1224_v3 }
 0x2cb   :  { %1410 = vst.msk [vmem:[#allocation2 + $0x30] sm:$0xff] %vm6731_vm15, %v1387_v11  ;;  %v5029_v10 = vpop.permute.xlu2 %1197 }
 0x2cc   :  { %1703 = vst.msk [vmem:[#allocation2 + $0x20] sm:$0xff] %vm6731_vm15, %v1387_v11 }
 0x2cd   :  { %972 = vst.msk [vmem:[#allocation2 + $0x60] sm:$0xff] %vm969_vm2, %v953_v35 }
 0x2ce   :  { %1590 = vst.msk [vmem:[#allocation2 + $0x50] sm:$0xff] %vm969_vm2, %v953_v35  ;;  %989 = vrot.lane.b32.xlu1 %v976_v49, %s3718_s1 }
 0x2cf   :  { %1769 = vst.msk [vmem:[#allocation2 + $0x40] sm:$0xff] %vm969_vm2, %v953_v35  ;;  %v1831_v62 = vld [vmem:[#allocation2 + $0x10] sm:$0xff] }
 0x2d0   :  { %971 = vst.msk [vmem:[#allocation2 + $0x48] sm:$0xff] %vm969_vm2, %v951_v53  ;;  %3614 = vmatmul.msk.f32.vlgmr.msrb.gmra.mxu0 %vm814_vm8, %v1831_v62  ;;  %v1196_v20 = vpop.permute.xlu1 %1195  ;;  %1046 = vrot.lane.b32.xlu0 %v4606_v57, %s3716_s0  ;;  %v1226_v57 = vrot.slane %v4642_v40, 2 }
 0x2d1   :  { %1589 = vst.msk [vmem:[#allocation2 + $0x38] sm:$0xff] %vm969_vm2, %v951_v53  ;;  %1431 = vrot.lane.b32.xlu2 %v1416_v54, %s3721_s12 }
 0x2d2   :  { %1768 = vst.msk [vmem:[#allocation2 + $0x28] sm:$0xff] %vm969_vm2, %v951_v53  ;;  %v1024_v63 = vpop.permute.xlu0 %1023 }
 0x2d3   :  { %1041 = vst.msk [vmem:[#allocation2 + $0x48] sm:$0xff] %vm1038_vm12, %v4903_v44  ;;  %v5049_v36 = vpop.permute.xlu2 %1487 }
 0x2d4   :  { %1613 = vst.msk [vmem:[#allocation2 + $0x38] sm:$0xff] %vm1038_vm12, %v4903_v44 }
 0x2d5   :  { %1788 = vst.msk [vmem:[#allocation2 + $0x28] sm:$0xff] %vm1038_vm12, %v4903_v44 }
 0x2d6   :  { %1507 = vst.msk [vmem:[#allocation2 + $0x30] sm:$0xff] %vm6733_vm7, %v1484_v39  ;;  %1238 = vrot.lane.b32.xlu1 %v1223_v60, %s3719_s29 }
 0x2d7   :  { %1726 = vst.msk [vmem:[#allocation2 + $0x20] sm:$0xff] %vm6733_vm7, %v1484_v39  ;;  %v1227_v39 = vsel %vm6738_vm11, %v1224_v3, %v1226_v57 }
 0x2d8   :  { %1042 = vst.msk [vmem:[#allocation2 + $0x60] sm:$0xff] %vm1038_vm12, %v1024_v63  ;;  %v1486_v58 = vpop.permute.xlu1 %1485  ;;  %1334 = vrot.lane.b32.xlu0 %v1319_v0, %s3717_s2 }
 0x2d9   :  { %1614 = vst.msk [vmem:[#allocation2 + $0x50] sm:$0xff] %vm1038_vm12, %v1024_v63  ;;  %1143 = vrot.lane.b32.xlu2 %v1128_v17, %s3720_s30  ;;  %v1419_v17 = vrot.slane %v4642_v40, 4 }
 0x2da   :  { %1789 = vst.msk [vmem:[#allocation2 + $0x40] sm:$0xff] %vm1038_vm12, %v1024_v63  ;;  %v1098_v44 = vpop.permute.xlu0 %1097  ;;  %v1516_v63 = vrot.slane %v4642_v40, 5 }
 0x2db   :  { %1120 = vst.msk [vmem:[#allocation2 + $0x48] sm:$0xff] %vm1117_vm3, %v1098_v44  ;;  %v5070_v55 = vpop.permute.xlu2 %1027 }
 0x2dc   :  { %1635 = vst.msk [vmem:[#allocation2 + $0x38] sm:$0xff] %vm1117_vm3, %v1098_v44 }
 0x2dd   :  { %v1835_v43 = vld [vmem:[#allocation2 + $0x30] sm:$0xff]  ;;  %1802 = vst.msk [vmem:[#allocation2 + $0x28] sm:$0xff] %vm1117_vm3, %v1098_v44 }
 0x2de   :  { %1993 = vmatmul.f32.gmra.mxu2 %v1835_v43  ;;  %v1833_v11 = vld [vmem:[#allocation2 + $0x20] sm:$0xff]  ;;  %1816 = vst.msk [vmem:[#allocation2 + $0x28] sm:$0xff] %vm1215_vm4, %v1196_v20  ;;  %1528 = vrot.lane.b32.xlu1 %v1513_v34, %s3722_s13 }
 0x2df   :  { %2055 = vmatmul.f32.gmra.mxu3 %v1833_v11  ;;  %1218 = vst.msk [vmem:[#allocation2 + $0x48] sm:$0xff] %vm1215_vm4, %v1196_v20  ;;  %v979_v11 = vrot.slane %v4642_v40, 7 }
 0x2e0   :  { %1658 = vst.msk [vmem:[#allocation2 + $0x38] sm:$0xff] %vm1215_vm4, %v1196_v20  ;;  %v5080_v46 = vpop.permute.xlu1 %1025  ;;  %1048 = vrot.lane.b32.xlu0 %v4624_v38, %s3716_s0  ;;  %v1322_v20 = vrot.slane %v4642_v40, 3 }
 0x2e1   :  { %1314 = vst.msk [vmem:[#allocation2 + $0x48] sm:$0xff] %vm6732_vm9, %v4985_v6  ;;  %1433 = vrot.lane.b32.xlu2 %v1418_v28, %s3721_s12  ;;  %v980_v28 = vsel %vm932_vm14, %v977_v22, %v979_v11 }
 0x2e2   :  { %1681 = vst.msk [vmem:[#allocation2 + $0x38] sm:$0xff] %vm6732_vm9, %v4985_v6  ;;  %v1389_v12 = vpop.permute.xlu0 %1388  ;;  %v1321_v6 = vsel %vm419_vm0, %v1319_v0, %v1320_v48  ;;  %v1323_v0 = vsel %vm419_vm0, %v1320_v48, %v1322_v20  ;;  %v1131_v48 = vrot.slane %v4679_v1, 1 }
 0x2e3   :  { %1411 = vst.msk [vmem:[#allocation2 + $0x48] sm:$0xff] %vm6731_vm15, %v1389_v12  ;;  %v5094_v13 = vpop.permute.xlu2 %1101 }
 0x2e4   :  { %1508 = vst.msk [vmem:[#allocation2 + $0x48] sm:$0xff] %vm6733_vm7, %v1486_v58 }
 0x2e5   :  { %1704 = vst.msk [vmem:[#allocation2 + $0x38] sm:$0xff] %vm6731_vm15, %v1389_v12  ;;  %v1834_v2 = vld [vmem:[#allocation2 + $0x28] sm:$0xff] }
 0x2e6   :  { %1727 = vst.msk [vmem:[#allocation2 + $0x38] sm:$0xff] %vm6733_vm7, %v1486_v58  ;;  %3615 = vmatmul.msk.f32.gmra.mxu0 %vm814_vm8, %v1834_v2  ;;  %1240 = vrot.lane.b32.xlu1 %v1225_v32, %s3719_s29  ;;  %v1517_v58 = vsel %vm1463_vm13, %v1514_v16, %v1516_v63  ;;  %v1421_v16 = vrot.slane %v4679_v1, 4 }
 0x2e8   :  { %v1100_v37 = vpop.permute.xlu1 %1099  ;;  %1336 = vrot.lane.b32.xlu0 %v1321_v6, %s3717_s2 }
 0x2e9   :  { %1121 = vst.msk [vmem:[#allocation2 + $0x60] sm:$0xff] %vm1117_vm3, %v1100_v37  ;;  %991 = vrot.lane.b32.xlu2 %v978_v51, %s3718_s1  ;;  %v981_v51 = vrot.slane %v4679_v1, 7 }
 0x2ea   :  { %1636 = vst.msk [vmem:[#allocation2 + $0x50] sm:$0xff] %vm1117_vm3, %v1100_v37  ;;  %v1294_v50 = vpop.permute.xlu0 %1293 }
 0x2eb   :  { %1803 = vst.msk [vmem:[#allocation2 + $0x40] sm:$0xff] %vm1117_vm3, %v1100_v37  ;;  %v5115_v41 = vpop.permute.xlu2 %1392  ;;  %v1838_v35 = vld [vmem:[#allocation2 + $0x48] sm:$0xff] }
 0x2ec   :  { %1817 = vst.msk [vmem:[#allocation2 + $0x40] sm:$0xff] %vm1215_vm4, %v5029_v10  ;;  %1996 = vmatmul.f32.gmra.mxu2 %v1838_v35  ;;  %v1518_v35 = vrot.slane %v4679_v1, 5 }
 0x2ed   :  { %1219 = vst.msk [vmem:[#allocation2 + $0x60] sm:$0xff] %vm1215_vm4, %v5029_v10  ;;  %v1836_v59 = vld [vmem:[#allocation2 + $0x38] sm:$0xff] }
 0x2ee   :  { %1659 = vst.msk [vmem:[#allocation2 + $0x50] sm:$0xff] %vm1215_vm4, %v5029_v10  ;;  %2058 = vmatmul.f32.gmra.mxu3 %v1836_v59  ;;  %1050 = vrot.lane.b32.xlu1 %v4642_v40, %s3716_s0  ;;  %v1129_v10 = vrot.slane %v4642_v40, 1  ;;  %v1519_v59 = vsel %vm1463_vm13, %v1516_v63, %v1518_v35 }
 0x2ef   :  { %1315 = vst.msk [vmem:[#allocation2 + $0x60] sm:$0xff] %vm6732_vm9, %v1294_v50 }
 0x2f0   :  { %1682 = vst.msk [vmem:[#allocation2 + $0x50] sm:$0xff] %vm6732_vm9, %v1294_v50  ;;  %v1391_v53 = vpop.permute.xlu1 %1390  ;;  %1530 = vrot.lane.b32.xlu0 %v1515_v5, %s3722_s13  ;;  %v1130_v60 = vsel %vm1075_vm1, %v1127_v42, %v1129_v10  ;;  %v1132_v6 = vsel %vm1075_vm1, %v1129_v10, %v1131_v48  ;;  %v1326_v10 = vrot.slane %v4714_v47, 3 }
 0x2f1   :  { %1412 = vst.msk [vmem:[#allocation2 + $0x60] sm:$0xff] %vm6731_vm15, %v1391_v53  ;;  %1242 = vrot.lane.b32.xlu2 %v1227_v39, %s3719_s29 }
 0x2f2   :  { %1509 = vst.msk [vmem:[#allocation2 + $0x60] sm:$0xff] %vm6733_vm7, %v5049_v36  ;;  %v955_v49 = vpop.permute.xlu0 %954 }
 0x2f3   :  { %1705 = vst.msk [vmem:[#allocation2 + $0x50] sm:$0xff] %vm6731_vm15, %v1391_v53  ;;  %v1837_v62 = vld [vmem:[#allocation2 + $0x40] sm:$0xff]  ;;  %v5140_v54 = vpop.permute.xlu2 %1297  ;;  %v1230_v53 = vrot.slane %v4714_v47, 2 }
 0x2f4   :  { %1728 = vst.msk [vmem:[#allocation2 + $0x50] sm:$0xff] %vm6733_vm7, %v5049_v36  ;;  %3616 = vmatmul.msk.f32.gmra.mxu0 %vm814_vm8, %v1837_v62 }
 0x2f5   :  { %973 = vst.msk [vmem:[#allocation2 + $0x78] sm:$0xff] %vm969_vm2, %v955_v49 }
 0x2f6   :  { %1591 = vst.msk [vmem:[#allocation2 + $0x68] sm:$0xff] %vm969_vm2, %v955_v49  ;;  %1145 = vrot.lane.b32.xlu1 %v1130_v60, %s3720_s30 }
 0x2f7   :  { %1770 = vst.msk [vmem:[#allocation2 + $0x58] sm:$0xff] %vm969_vm2, %v955_v49 }
 0x2f8   :  { %1043 = vst.msk [vmem:[#allocation2 + $0x78] sm:$0xff] %vm1038_vm12, %v5080_v46  ;;  %v1296_v36 = vpop.permute.xlu1 %1295  ;;  %1338 = vrot.lane.b32.xlu0 %v1323_v0, %s3717_s2  ;;  %v1520_v0 = vrot.slane %v4714_v47, 5 }
 0x2f9   :  { %1615 = vst.msk [vmem:[#allocation2 + $0x68] sm:$0xff] %vm1038_vm12, %v5080_v46  ;;  %1532 = vrot.lane.b32.xlu2 %v1517_v58, %s3722_s13  ;;  %v1841_v42 = vld [vmem:[#allocation2 + $0x60] sm:$0xff] }
 0x2fa   :  { %1790 = vst.msk [vmem:[#allocation2 + $0x58] sm:$0xff] %vm1038_vm12, %v5080_v46  ;;  %v1200_v44 = vpop.permute.xlu0 %1199  ;;  %1999 = vmatmul.f32.gmra.mxu2 %v1841_v42  ;;  %v1420_v46 = vsel %vm6739_vm5, %v1417_v23, %v1419_v17  ;;  %v1324_v23 = vrot.slane %v4679_v1, 3  ;;  %v1133_v42 = vrot.slane %v4714_v47, 1 }
 0x2fb   :  { %1122 = vst.msk [vmem:[#allocation2 + $0x78] sm:$0xff] %vm1117_vm3, %v5094_v13  ;;  %v1839_v34 = vld [vmem:[#allocation2 + $0x50] sm:$0xff]  ;;  %v959_v43 = vpop.permute.xlu2 %958 }
 0x2fc   :  { %1637 = vst.msk [vmem:[#allocation2 + $0x68] sm:$0xff] %vm1117_vm3, %v5094_v13  ;;  %2061 = vmatmul.f32.gmra.mxu3 %v1839_v34  ;;  %v1325_v22 = vsel %vm419_vm0, %v1322_v20, %v1324_v23  ;;  %v1327_v60 = vsel %vm419_vm0, %v1324_v23, %v1326_v10  ;;  %v1134_v34 = vsel %vm1075_vm1, %v1131_v48, %v1133_v42  ;;  %v1423_v23 = vrot.slane %v4714_v47, 4 }
 0x2fd   :  { %1804 = vst.msk [vmem:[#allocation2 + $0x58] sm:$0xff] %vm1117_vm3, %v5094_v13  ;;  %v1228_v13 = vrot.slane %v4679_v1, 2 }
 0x2fe   :  { %1220 = vst.msk [vmem:[#allocation2 + $0x78] sm:$0xff] %vm1215_vm4, %v1200_v44  ;;  %1435 = vrot.lane.b32.xlu1 %v1420_v46, %s3721_s12  ;;  %v1424_v48 = vsel %vm6739_vm5, %v1421_v16, %v1423_v23 }
 0x2ff   :  { %1316 = vst.msk [vmem:[#allocation2 + $0x78] sm:$0xff] %vm6732_vm9, %v1296_v36  ;;  %v1229_v2 = vsel %vm6738_vm11, %v1226_v57, %v1228_v13  ;;  %v982_v57 = vsel %vm932_vm14, %v979_v11, %v981_v51  ;;  %v1231_v62 = vsel %vm6738_vm11, %v1228_v13, %v1230_v53 }
 0x300   :  { %1660 = vst.msk [vmem:[#allocation2 + $0x68] sm:$0xff] %vm1215_vm4, %v1200_v44  ;;  %v957_v3 = vpop.permute.xlu1 %956  ;;  %993 = vrot.lane.b32.xlu0 %v980_v28, %s3718_s1 }
 0x301   :  { %1683 = vst.msk [vmem:[#allocation2 + $0x68] sm:$0xff] %vm6732_vm9, %v1296_v36  ;;  %1052 = vrot.lane.b32.xlu2 %v4679_v1, %s3716_s0  ;;  %v1522_v1 = vrot.slane %v4775_v45, 5 }
 0x302   :  { %1818 = vst.msk [vmem:[#allocation2 + $0x58] sm:$0xff] %vm1215_vm4, %v1200_v44  ;;  %v1490_v12 = vpop.permute.xlu0 %1489  ;;  %v1521_v44 = vsel %vm1463_vm13, %v1518_v35, %v1520_v0 }
 0x303   :  { %1413 = vst.msk [vmem:[#allocation2 + $0x78] sm:$0xff] %vm6731_vm15, %v5115_v41  ;;  %v5192_v38 = vpop.permute.xlu2 %1630 }
 0x304   :  { %1706 = vst.msk [vmem:[#allocation2 + $0x68] sm:$0xff] %vm6731_vm15, %v5115_v41 }
 0x305   :  { %975 = vst.msk [vmem:[#allocation2 + $0xa8] sm:$0xff] %vm969_vm2, %v959_v43 }
 0x306   :  { %1593 = vst.msk [vmem:[#allocation2 + $0x98] sm:$0xff] %vm969_vm2, %v959_v43  ;;  %1340 = vrot.lane.b32.xlu1 %v1325_v22, %s3717_s2 }
 0x307   :  { %1772 = vst.msk [vmem:[#allocation2 + $0x88] sm:$0xff] %vm969_vm2, %v959_v43 }
 0x308   :  { %974 = vst.msk [vmem:[#allocation2 + $0x90] sm:$0xff] %vm969_vm2, %v957_v3  ;;  %v1202_v32 = vpop.permute.xlu1 %1201  ;;  %1244 = vrot.lane.b32.xlu0 %v1229_v2, %s3719_s29  ;;  %v1135_v2 = vrot.slane %v4775_v45, 1 }
 0x309   :  { %1592 = vst.msk [vmem:[#allocation2 + $0x80] sm:$0xff] %vm969_vm2, %v957_v3  ;;  %v1840_v37 = vld [vmem:[#allocation2 + $0x58] sm:$0xff]  ;;  %1147 = vrot.lane.b32.xlu2 %v1132_v6, %s3720_s30 }
 0x30a   :  { %1771 = vst.msk [vmem:[#allocation2 + $0x70] sm:$0xff] %vm969_vm2, %v957_v3  ;;  %3617 = vmatmul.msk.f32.gmra.mxu0 %vm814_vm8, %v1840_v37  ;;  %v1030_v50 = vpop.permute.xlu0 %1029  ;;  %v1328_v37 = vrot.slane %v4775_v45, 3 }
 0x30b   :  { %1044 = vst.msk [vmem:[#allocation2 + $0x90] sm:$0xff] %vm1038_vm12, %v5070_v55  ;;  %v5218_v41 = vpop.permute.xlu2 %1699 }
 0x30c   :  { %1616 = vst.msk [vmem:[#allocation2 + $0x80] sm:$0xff] %vm1038_vm12, %v5070_v55 }
 0x30d   :  { %1791 = vst.msk [vmem:[#allocation2 + $0x70] sm:$0xff] %vm1038_vm12, %v5070_v55  ;;  %v1422_v55 = vsel %vm6739_vm5, %v1419_v17, %v1421_v16  ;;  %v983_v17 = vrot.slane %v4714_v47, 7  ;;  %v1523_v16 = vsel %vm1463_vm13, %v1520_v0, %v1522_v1  ;;  %v1137_v0 = vrot.slane %v4837_v31, 1 }
 0x30e   :  { %1510 = vst.msk [vmem:[#allocation2 + $0x78] sm:$0xff] %vm6733_vm7, %v1490_v12  ;;  %995 = vrot.lane.b32.xlu1 %v982_v57, %s3718_s1  ;;  %v1425_v57 = vrot.slane %v4775_v45, 4 }
 0x30f   :  { %1729 = vst.msk [vmem:[#allocation2 + $0x68] sm:$0xff] %vm6733_vm7, %v1490_v12  ;;  %v984_v11 = vsel %vm932_vm14, %v981_v51, %v983_v17  ;;  %v1232_v12 = vrot.slane %v4775_v45, 2  ;;  %v1136_v51 = vsel %vm1075_vm1, %v1133_v42, %v1135_v2 }
 0x310   :  { %1045 = vst.msk [vmem:[#allocation2 + $0xa8] sm:$0xff] %vm1038_vm12, %v1030_v50  ;;  %v1492_v5 = vpop.permute.xlu1 %1491  ;;  %1534 = vrot.lane.b32.xlu0 %v1519_v59, %s3722_s13 }
 0x311   :  { %1617 = vst.msk [vmem:[#allocation2 + $0x98] sm:$0xff] %vm1038_vm12, %v1030_v50  ;;  %1437 = vrot.lane.b32.xlu2 %v1422_v55, %s3721_s12  ;;  %v985_v55 = vrot.slane %v4775_v45, 7 }
 0x312   :  { %1792 = vst.msk [vmem:[#allocation2 + $0x88] sm:$0xff] %vm1038_vm12, %v1030_v50  ;;  %v1104_v40 = vpop.permute.xlu0 %1103  ;;  %v1329_v50 = vsel %vm419_vm0, %v1326_v10, %v1328_v37 }
 0x313   :  { %1123 = vst.msk [vmem:[#allocation2 + $0x90] sm:$0xff] %vm1117_vm3, %v1104_v40  ;;  %v5243_v39 = vpop.permute.xlu2 %1203 }
 0x314   :  { %1221 = vst.msk [vmem:[#allocation2 + $0x90] sm:$0xff] %vm1215_vm4, %v1202_v32 }
 0x315   :  { %v1844_v49 = vld [vmem:[#allocation2 + $0x78] sm:$0xff]  ;;  %1638 = vst.msk [vmem:[#allocation2 + $0x80] sm:$0xff] %vm1117_vm3, %v1104_v40 }
 0x316   :  { %2002 = vmatmul.f32.gmra.mxu2 %v1844_v49  ;;  %v1842_v20 = vld [vmem:[#allocation2 + $0x68] sm:$0xff]  ;;  %1661 = vst.msk [vmem:[#allocation2 + $0x80] sm:$0xff] %vm1215_vm4, %v1202_v32  ;;  %1246 = vrot.lane.b32.xlu1 %v1231_v62, %s3719_s29  ;;  %v1330_v49 = vrot.slane %v4837_v31, 3 }
 0x317   :  { %2064 = vmatmul.f32.gmra.mxu3 %v1842_v20  ;;  %1805 = vst.msk [vmem:[#allocation2 + $0x70] sm:$0xff] %vm1117_vm3, %v1104_v40  ;;  %v986_v40 = vsel %vm932_vm14, %v983_v17, %v985_v55  ;;  %v1138_v17 = vsel %vm1075_vm1, %v1135_v2, %v1137_v0 }
 0x318   :  { %1819 = vst.msk [vmem:[#allocation2 + $0x70] sm:$0xff] %vm1215_vm4, %v1202_v32  ;;  %v5253_v63 = vpop.permute.xlu1 %1608  ;;  %1054 = vrot.lane.b32.xlu0 %v4714_v47, %s3716_s0  ;;  %v1233_v47 = vsel %vm6738_vm11, %v1230_v53, %v1232_v12  ;;  %v1426_v53 = vsel %vm6739_vm5, %v1423_v23, %v1425_v57 }
 0x319   :  { %1317 = vst.msk [vmem:[#allocation2 + $0x90] sm:$0xff] %vm6732_vm9, %v5140_v54  ;;  %1342 = vrot.lane.b32.xlu2 %v1327_v60, %s3717_s2  ;;  %v1234_v60 = vrot.slane %v4837_v31, 2 }
 0x31a   :  { %1684 = vst.msk [vmem:[#allocation2 + $0x80] sm:$0xff] %vm6732_vm9, %v5140_v54  ;;  %v1395_v36 = vpop.permute.xlu0 %1394 }
 0x31b   :  { %1414 = vst.msk [vmem:[#allocation2 + $0x90] sm:$0xff] %vm6731_vm15, %v1395_v36  ;;  %v5265_v58 = vpop.permute.xlu2 %1493 }
 0x31c   :  { %1511 = vst.msk [vmem:[#allocation2 + $0x90] sm:$0xff] %vm6733_vm7, %v1492_v5 }
 0x31d   :  { %1707 = vst.msk [vmem:[#allocation2 + $0x80] sm:$0xff] %vm6731_vm15, %v1395_v36  ;;  %v1331_v36 = vsel %vm419_vm0, %v1328_v37, %v1330_v49  ;;  %v1332_v37 = vrot.slane %v4864_v4, 3 }
 0x31e   :  { %1730 = vst.msk [vmem:[#allocation2 + $0x80] sm:$0xff] %vm6733_vm7, %v1492_v5  ;;  %1536 = vrot.lane.b32.xlu1 %v1521_v44, %s3722_s13 }
 0x31f   :  { %v1843_v54 = vld [vmem:[#allocation2 + $0x70] sm:$0xff] }
 0x320   :  { %3618 = vmatmul.msk.f32.gmra.mxu0 %vm814_vm8, %v1843_v54  ;;  %v5278_v43 = vpop.permute.xlu1 %1676  ;;  %1149 = vrot.lane.b32.xlu0 %v1134_v34, %s3720_s30  ;;  %v987_v54 = vrot.slane %v4837_v31, 7 }
 0x321   :  { %997 = vrot.lane.b32.xlu2 %v984_v11, %s3718_s1 }
 0x322   :  { %v5283_v46 = vpop.permute.xlu0 %1653 }
 0x323   :  { %v1142_v28 = vpop.permute.xlu2 %1141  ;;  %v1847_v3 = vld [vmem:[#allocation2 + $0x90] sm:$0xff] }
 0x324   :  { %1165 = vst.msk [vmem:[#allocation2 + $0xc0] sm:$0x80] %vm1115_vm10, %v1142_v28  ;;  %2005 = vmatmul.f32.gmra.mxu2 %v1847_v3  ;;  %vm1640_vm10 = vcmask 522624   ;;  %v1524_v3 = vrot.slane %v4837_v31, 5 }
 0x325   :  { %v1845_v13 = vld [vmem:[#allocation2 + $0x80] sm:$0xff] }
 0x326   :  { %2067 = vmatmul.f32.gmra.mxu3 %v1845_v13  ;;  %1056 = vrot.lane.b32.xlu1 %v4775_v45, %s3716_s0  ;;  %v1525_v23 = vsel %vm1463_vm13, %v1522_v1, %v1524_v3  ;;  %v1139_v45 = vrot.slane %v4864_v4, 1 }
 0x328   :  { %v1765_v22 = vpop.permute.xlu1 %1764  ;;  %1439 = vrot.lane.b32.xlu0 %v1424_v48, %s3721_s12 }
 0x329   :  { %1775 = vst.msk [vmem:[#allocation2 + $0xb8] sm:$0x1] %vm6730_vm6, %v1765_v22  ;;  %1248 = vrot.lane.b32.xlu2 %v1233_v47, %s3719_s29  ;;  %vm6737_vm6 = vcmask 652800   ;;  %v1236_v22 = vrot.slane %v4864_v4, 2 }
 0x32a   :  { %v1723_v32 = vpop.permute.xlu0 %1722 }
 0x32b   :  { %v5298_v6 = vpop.permute.xlu2 %1431  ;;  %v1237_v1 = vsel %vm6738_vm11, %v1234_v60, %v1236_v22 }
 0x32e   :  { %1151 = vrot.lane.b32.xlu1 %v1136_v51, %s3720_s30 }
 0x330   :  { %v1106_v35 = vpop.permute.xlu1 %1105  ;;  %1344 = vrot.lane.b32.xlu0 %v1329_v50, %s3717_s2  ;;  %v1852_v51 = vld [vmem:[#allocation2 + $0xb8] sm:$0xff] }
 0x331   :  { %1124 = vst.msk [vmem:[#allocation2 + $0xa8] sm:$0xff] %vm1117_vm3, %v1106_v35  ;;  %1538 = vrot.lane.b32.xlu2 %v1523_v16, %s3722_s13  ;;  %v1526_v16 = vrot.slane %v4864_v4, 5 }
 0x332   :  { %1639 = vst.msk [vmem:[#allocation2 + $0x98] sm:$0xff] %vm1117_vm3, %v1106_v35  ;;  %v1300_v59 = vpop.permute.xlu0 %1299 }
 0x333   :  { %1806 = vst.msk [vmem:[#allocation2 + $0x88] sm:$0xff] %vm1117_vm3, %v1106_v35  ;;  %v5314_v5 = vpop.permute.xlu2 %1143  ;;  %v1333_v35 = vsel %vm419_vm0, %v1330_v49, %v1332_v37 }
 0x334   :  { %1820 = vst.msk [vmem:[#allocation2 + $0x88] sm:$0xff] %vm1215_vm4, %v5243_v39 }
 0x335   :  { %1222 = vst.msk [vmem:[#allocation2 + $0xa8] sm:$0xff] %vm1215_vm4, %v5243_v39 }
 0x336   :  { %1662 = vst.msk [vmem:[#allocation2 + $0x98] sm:$0xff] %vm1215_vm4, %v5243_v39  ;;  %1441 = vrot.lane.b32.xlu1 %v1426_v53, %s3721_s12  ;;  %v1595_v53 = vrot.slane %v4864_v4, 7 }
 0x337   :  { %1318 = vst.msk [vmem:[#allocation2 + $0xa8] sm:$0xff] %vm6732_vm9, %v1300_v59 }
 0x338   :  { %1685 = vst.msk [vmem:[#allocation2 + $0x98] sm:$0xff] %vm6732_vm9, %v1300_v59  ;;  %v1397_v10 = vpop.permute.xlu1 %1396  ;;  %999 = vrot.lane.b32.xlu0 %v986_v40, %s3718_s1  ;;  %vm6735_vm9 = vcmask 913152   ;;  %v1527_v40 = vsel %vm1463_vm13, %v1524_v3, %v1526_v16 }
 0x339   :  { %1415 = vst.msk [vmem:[#allocation2 + $0xa8] sm:$0xff] %vm6731_vm15, %v1397_v10  ;;  %1058 = vrot.lane.b32.xlu2 %v4837_v31, %s3716_s0 }
 0x33a   :  { %1512 = vst.msk [vmem:[#allocation2 + $0xa8] sm:$0xff] %vm6733_vm7, %v5265_v58  ;;  %v1585_v39 = vpop.permute.xlu0 %1584 }
 0x33b   :  { %1708 = vst.msk [vmem:[#allocation2 + $0x98] sm:$0xff] %vm6731_vm15, %v1397_v10  ;;  %v1846_v62 = vld [vmem:[#allocation2 + $0x88] sm:$0xff]  ;;  %v5338_v20 = vpop.permute.xlu2 %1433  ;;  %vm6736_vm15 = vcmask 782976  }
 0x33c   :  { %1731 = vst.msk [vmem:[#allocation2 + $0x98] sm:$0xff] %vm6733_vm7, %v5265_v58  ;;  %3619 = vmatmul.msk.f32.gmra.mxu0 %vm814_vm8, %v1846_v62  ;;  %v1235_v58 = vsel %vm6738_vm11, %v1232_v12, %v1234_v60  ;;  %vm6734_vm7 = vcmask 1043328  }
 0x33d   :  { %1594 = vst.msk [vmem:[#allocation2 + $0xb0] sm:$0xff] %vm969_vm2, %v1585_v39 }
 0x33e   :  { %1618 = vst.msk [vmem:[#allocation2 + $0xb0] sm:$0xff] %vm1038_vm12, %v5253_v63  ;;  %1346 = vrot.lane.b32.xlu1 %v1331_v36, %s3717_s2 }
 0x33f   :  { %1641 = vst.msk [vmem:[#allocation2 + $0xb0] sm:$0x7f] %vm1640_vm10, %v5192_v38 }
 0x340   :  { %1664 = vst.msk [vmem:[#allocation2 + $0xb0] sm:$0x3f] %vm6737_vm6, %v5283_v46  ;;  %v990_v42 = vpop.permute.xlu1 %989  ;;  %1250 = vrot.lane.b32.xlu0 %v1235_v58, %s3719_s29 }
 0x341   :  { %1687 = vst.msk [vmem:[#allocation2 + $0xb0] sm:$0x1f] %vm6736_vm15, %v5278_v43  ;;  %1153 = vrot.lane.b32.xlu2 %v1138_v17, %s3720_s30  ;;  %v1850_v44 = vld [vmem:[#allocation2 + $0xa8] sm:$0xff]  ;;  %v1427_v43 = vrot.slane %v4837_v31, 4  ;;  %vm6781_vm15 = vcmask 917252  }
 0x342   :  { %1710 = vst.msk [vmem:[#allocation2 + $0xb0] sm:$0xf] %vm6735_vm9, %v5218_v41  ;;  %v1047_v34 = vpop.permute.xlu0 %1046  ;;  %2008 = vmatmul.f32.gmra.mxu2 %v1850_v44  ;;  %v988_v41 = vsel %vm932_vm14, %v985_v55, %v987_v54  ;;  %v1429_v55 = vrot.slane %v4864_v4, 4 }
 0x343   :  { %1733 = vst.msk [vmem:[#allocation2 + $0xb0] sm:$0x7] %vm6734_vm7, %v1723_v32  ;;  %v1848_v11 = vld [vmem:[#allocation2 + $0x98] sm:$0xff]  ;;  %v992_v28 = vpop.permute.xlu2 %991  ;;  %vm6777_vm7 = vcmask 261249  }
 0x344   :  { %1773 = vst.msk [vmem:[#allocation2 + $0xa0] sm:$0xff] %vm969_vm2, %v1585_v39  ;;  %2070 = vmatmul.f32.gmra.mxu3 %v1848_v11  ;;  %vm6778_vm9 = vmmov %vm6777_vm7  ;;  %v1430_v10 = vsel %vm6739_vm5, %v1427_v43, %v1429_v55 }
 0x345   :  { %1793 = vst.msk [vmem:[#allocation2 + $0xa0] sm:$0xff] %vm1038_vm12, %v5253_v63 }
 0x346   :  { %1807 = vst.msk [vmem:[#allocation2 + $0xa0] sm:$0x7f] %vm1640_vm10, %v5192_v38  ;;  %1001 = vrot.lane.b32.xlu1 %v988_v41, %s3718_s1  ;;  %v1428_v38 = vsel %vm6739_vm5, %v1425_v57, %v1427_v43 }
 0x347   :  { %1821 = vst.msk [vmem:[#allocation2 + $0xa0] sm:$0x3f] %vm6737_vm6, %v5283_v46  ;;  %vm6782_vm6 = vcmask 1048451  }
 0x348   :  { %1010 = vst.msk [vmem:[#allocation2 + $0xd8] sm:$0xfe] %vm6777_vm7, %v990_v42  ;;  %v1239_v63 = vpop.permute.xlu1 %1238  ;;  %1540 = vrot.lane.b32.xlu0 %v1525_v23, %s3722_s13  ;;  %vm6779_vm7 = vcmask 654854  }
 0x349   :  { %1600 = vst.msk [vmem:[#allocation2 + $0xc8] sm:$0xfe] %vm6778_vm9, %v990_v42  ;;  %1443 = vrot.lane.b32.xlu2 %v1428_v38, %s3721_s12  ;;  %vm6780_vm9 = vcmask 786053  }
 0x34a   :  { %1067 = vst.msk [vmem:[#allocation2 + $0xd8] sm:$0xff] %vm1038_vm12, %v1047_v34  ;;  %v1335_v46 = vpop.permute.xlu0 %1334  ;;  %v1851_v12 = vld [vmem:[#allocation2 + $0xb0] sm:$0xff] }
 0x34b   :  { %1622 = vst.msk [vmem:[#allocation2 + $0xc8] sm:$0xff] %vm1038_vm12, %v1047_v34  ;;  %v5399_v13 = vpop.permute.xlu2 %1242 }
 0x34c   :  { %1166 = vst.msk [vmem:[#allocation2 + $0xd8] sm:$0xff] %vm1117_vm3, %v5314_v5  ;;  %2073 = vmatmul.f32.gmra.mxu3 %v1851_v12 }
 0x34d   :  { %1645 = vst.msk [vmem:[#allocation2 + $0xc8] sm:$0xff] %vm1117_vm3, %v5314_v5 }
 0x34e   :  { %1011 = vst.msk [vmem:[#allocation2 + $0xf0] sm:$0xff] %vm969_vm2, %v992_v28  ;;  %v1849_v48 = vld [vmem:[#allocation2 + $0xa0] sm:$0xff]  ;;  %1642 = vrot.lane.b32.xlu1 %v1139_v45, %s3720_s30 }
 0x34f   :  { %1601 = vst.msk [vmem:[#allocation2 + $0xe0] sm:$0xff] %vm969_vm2, %v992_v28  ;;  %3620 = vmatmul.msk.f32.gmra.mxu0 %vm814_vm8, %v1849_v48 }
 0x350   :  { %1779 = vst.msk [vmem:[#allocation2 + $0xd0] sm:$0xff] %vm969_vm2, %v992_v28  ;;  %v1529_v47 = vpop.permute.xlu1 %1528  ;;  %1619 = vrot.lane.b32.xlu0 %v4864_v4, %s3716_s0  ;;  %v1596_v4 = vsel %vm932_vm14, %v987_v54, %v1595_v53 }
 0x351   :  { %1262 = vst.msk [vmem:[#allocation2 + $0xc0] sm:$0xc0] %vm6779_vm7, %v1239_v63  ;;  %1665 = vrot.lane.b32.xlu2 %v1236_v22, %s3719_s29  ;;  %vm6785_vm7 = vcmask 917248  }
 0x352   :  { %1358 = vst.msk [vmem:[#allocation2 + $0xc0] sm:$0xe0] %vm6780_vm9, %v1335_v46  ;;  %v1049_v2 = vpop.permute.xlu0 %1048  ;;  %vm6786_vm9 = vmmov %vm6785_vm7 }
 0x353   :  { %1455 = vst.msk [vmem:[#allocation2 + $0xc0] sm:$0xf0] %vm6781_vm15, %v5298_v6  ;;  %v5419_v32 = vpop.permute.xlu2 %1532  ;;  %v1140_v6 = vsel %vm1075_vm1, %v1137_v0, %v1139_v45  ;;  %vm6783_vm15 = vcmask 786048  }
 0x354   :  { %1552 = vst.msk [vmem:[#allocation2 + $0xc0] sm:$0xf8] %vm6782_vm6, %v1529_v47  ;;  %vm6784_vm6 = vmmov %vm6783_vm15 }
 0x355   :  { %1068 = vst.msk [vmem:[#allocation2 + $0xf0] sm:$0xff] %vm1038_vm12, %v1049_v2 }
 0x356   :  { %1623 = vst.msk [vmem:[#allocation2 + $0xe0] sm:$0xff] %vm1038_vm12, %v1049_v2  ;;  %1252 = vrot.lane.b32.xlu1 %v1237_v1, %s3719_s29 }
 0x357   :  { %3621 = vmatmul.msk.f32.gmra.mxu0 %vm814_vm8, %v1852_v51  ;;  %1794 = vst.msk [vmem:[#allocation2 + $0xd0] sm:$0xff] %vm1038_vm12, %v1049_v2 }
 0x358   :  { %v1241_v50 = vpop.permute.xlu1 %1240  ;;  %1155 = vrot.lane.b32.xlu0 %v1140_v6, %s3720_s30 }
 0x359   :  { %1263 = vst.msk [vmem:[#allocation2 + $0xd8] sm:$0xff] %vm1215_vm4, %v1241_v50  ;;  %1348 = vrot.lane.b32.xlu2 %v1333_v35, %s3717_s2 }
 0x35a   :  { %1668 = vst.msk [vmem:[#allocation2 + $0xc8] sm:$0xff] %vm1215_vm4, %v1241_v50  ;;  %v1337_v57 = vpop.permute.xlu0 %1336 }
 0x35b   :  { %v1853_v59 = vld [vmem:[#allocation2 + $0xc0] sm:$0xff]  ;;  %1359 = vst.msk [vmem:[#allocation2 + $0xd8] sm:$0xff] %vm6783_vm15, %v1337_v57  ;;  %v5443_v5 = vpop.permute.xlu2 %1052  ;;  %vm6787_vm15 = vcmask 1048448  }
 0x35c   :  { %2011 = vmatmul.f32.gmra.mxu2 %v1853_v59  ;;  %1691 = vst.msk [vmem:[#allocation2 + $0xc8] sm:$0xff] %vm6784_vm6, %v1337_v57  ;;  %vm6788_vm6 = vmmov %vm6787_vm15 }
 0x35d   :  { %1456 = vst.msk [vmem:[#allocation2 + $0xd8] sm:$0xff] %vm6785_vm7, %v5338_v20  ;;  %vm6789_vm7 = vcmask 786048   ;;  %vm6793_vm5 = vmmov %vm6788_vm6 }
 0x35e   :  { %1714 = vst.msk [vmem:[#allocation2 + $0xc8] sm:$0xff] %vm6786_vm9, %v5338_v20  ;;  %1542 = vrot.lane.b32.xlu1 %v1527_v40, %s3722_s13  ;;  %vm6790_vm9 = vmmov %vm6789_vm7 }
 0x360   :  { %v1051_v49 = vpop.permute.xlu1 %1050  ;;  %1445 = vrot.lane.b32.xlu0 %v1430_v10, %s3721_s12 }
 0x361   :  { %1597 = vrot.lane.b32.xlu2 %v1596_v4, %s3718_s1 }
 0x362   :  { %v1531_v39 = vpop.permute.xlu0 %1530 }
 0x363   :  { %1553 = vst.msk [vmem:[#allocation2 + $0xd8] sm:$0xff] %vm6787_vm15, %v1531_v39  ;;  %v1148_v62 = vpop.permute.xlu2 %1147  ;;  %vm6791_vm15 = vcmask 917248  }
 0x364   :  { %1737 = vst.msk [vmem:[#allocation2 + $0xc8] sm:$0xff] %vm6788_vm6, %v1531_v39  ;;  %vm6792_vm11 = vmmov %vm6791_vm15 }
 0x366   :  { %1711 = vrot.lane.b32.xlu1 %v1429_v55, %s3721_s12 }
 0x368   :  { %v1146_v20 = vpop.permute.xlu1 %1145  ;;  %1688 = vrot.lane.b32.xlu0 %v1332_v37, %s3717_s2 }
 0x369   :  { %1167 = vst.msk [vmem:[#allocation2 + $0xf0] sm:$0xff] %vm1117_vm3, %v1146_v20  ;;  %1734 = vrot.lane.b32.xlu2 %v1526_v16, %s3722_s13 }
 0x36a   :  { %1646 = vst.msk [vmem:[#allocation2 + $0xe0] sm:$0xff] %vm1117_vm3, %v1146_v20  ;;  %v1339_v31 = vpop.permute.xlu0 %1338  ;;  %v1856_v60 = vld [vmem:[#allocation2 + $0xd8] sm:$0xff] }
 0x36b   :  { %1808 = vst.msk [vmem:[#allocation2 + $0xd0] sm:$0xff] %vm1117_vm3, %v1146_v20  ;;  %v1438_v0 = vpop.permute.xlu2 %1437  ;;  %2014 = vmatmul.f32.gmra.mxu2 %v1856_v60  ;;  %v1854_v36 = vld [vmem:[#allocation2 + $0xc8] sm:$0xff] }
 0x36c   :  { %1822 = vst.msk [vmem:[#allocation2 + $0xd0] sm:$0xff] %vm1215_vm4, %v5399_v13  ;;  %2076 = vmatmul.f32.gmra.mxu3 %v1854_v36 }
 0x36d   :  { %1264 = vst.msk [vmem:[#allocation2 + $0xf0] sm:$0xff] %vm1215_vm4, %v5399_v13 }
 0x36e   :  { %1669 = vst.msk [vmem:[#allocation2 + $0xe0] sm:$0xff] %vm1215_vm4, %v5399_v13 }
 0x36f   :  { %1360 = vst.msk [vmem:[#allocation2 + $0xf0] sm:$0xff] %vm6789_vm7, %v1339_v31 }
 0x370   :  { %1692 = vst.msk [vmem:[#allocation2 + $0xe0] sm:$0xff] %vm6790_vm9, %v1339_v31  ;;  %v1436_v58 = vpop.permute.xlu1 %1435  ;;  %1776 = vrot.lane.b32.xlu0 %v1595_v53, %s3718_s1 }
 0x371   :  { %1457 = vst.msk [vmem:[#allocation2 + $0xf0] sm:$0xff] %vm6791_vm15, %v1436_v58 }
 0x372   :  { %1554 = vst.msk [vmem:[#allocation2 + $0xf0] sm:$0xff] %vm6788_vm6, %v5419_v32  ;;  %v994_v42 = vpop.permute.xlu0 %993 }
 0x373   :  { %1715 = vst.msk [vmem:[#allocation2 + $0xe0] sm:$0xff] %vm6792_vm11, %v1436_v58  ;;  %v1855_v17 = vld [vmem:[#allocation2 + $0xd0] sm:$0xff]  ;;  %v5485_v44 = vpop.permute.xlu2 %1342 }
 0x374   :  { %1738 = vst.msk [vmem:[#allocation2 + $0xe0] sm:$0xff] %vm6793_vm5, %v5419_v32  ;;  %3622 = vmatmul.msk.f32.gmra.mxu0 %vm814_vm8, %v1855_v17  ;;  %vm6794_vm5 = vmmov %vm6789_vm7 }
 0x375   :  { %1012 = vst.msk [vmem:[#allocation2 + $0x108] sm:$0xff] %vm969_vm2, %v994_v42  ;;  %vm6795_vm11 = vmmov %vm6794_vm5 }
 0x376   :  { %1069 = vst.msk [vmem:[#allocation2 + $0x108] sm:$0xff] %vm1038_vm12, %v1051_v49  ;;  %vm6796_vm7 = vmmov %vm6791_vm15 }
 0x377   :  { %1602 = vst.msk [vmem:[#allocation2 + $0xf8] sm:$0xff] %vm969_vm2, %v994_v42  ;;  %vm6797_vm9 = vmmov %vm6796_vm7 }
 0x378   :  { %1624 = vst.msk [vmem:[#allocation2 + $0xf8] sm:$0xff] %vm1038_vm12, %v1051_v49  ;;  %v1341_v54 = vpop.permute.xlu1 %1340  ;;  %vm6798_vm15 = vmmov %vm6788_vm6 }
 0x379   :  { %1780 = vst.msk [vmem:[#allocation2 + $0xe8] sm:$0xff] %vm969_vm2, %v994_v42  ;;  %v1859_v34 = vld [vmem:[#allocation2 + $0xf0] sm:$0xff] }
 0x37a   :  { %1795 = vst.msk [vmem:[#allocation2 + $0xe8] sm:$0xff] %vm1038_vm12, %v1051_v49  ;;  %v1245_v11 = vpop.permute.xlu0 %1244  ;;  %2017 = vmatmul.f32.gmra.mxu2 %v1859_v34 }
 0x37b   :  { %1168 = vst.msk [vmem:[#allocation2 + $0x108] sm:$0xff] %vm1117_vm3, %v1148_v62  ;;  %v1857_v28 = vld [vmem:[#allocation2 + $0xe0] sm:$0xff]  ;;  %v998_v3 = vpop.permute.xlu2 %997 }
 0x37c   :  { %1647 = vst.msk [vmem:[#allocation2 + $0xf8] sm:$0xff] %vm1117_vm3, %v1148_v62  ;;  %2079 = vmatmul.f32.gmra.mxu3 %v1857_v28 }
 0x37d   :  { %1809 = vst.msk [vmem:[#allocation2 + $0xe8] sm:$0xff] %vm1117_vm3, %v1148_v62 }
 0x37e   :  { %1265 = vst.msk [vmem:[#allocation2 + $0x108] sm:$0xff] %vm1215_vm4, %v1245_v11 }
 0x37f   :  { %1361 = vst.msk [vmem:[#allocation2 + $0x108] sm:$0xff] %vm6794_vm5, %v1341_v54 }
 0x380   :  { %1670 = vst.msk [vmem:[#allocation2 + $0xf8] sm:$0xff] %vm1215_vm4, %v1245_v11  ;;  %v996_v43 = vpop.permute.xlu1 %995 }
 0x381   :  { %1693 = vst.msk [vmem:[#allocation2 + $0xf8] sm:$0xff] %vm6795_vm11, %v1341_v54  ;;  %vm6799_vm11 = vmmov %vm6794_vm5 }
 0x382   :  { %1823 = vst.msk [vmem:[#allocation2 + $0xe8] sm:$0xff] %vm1215_vm4, %v1245_v11  ;;  %v1535_v41 = vpop.permute.xlu0 %1534 }
 0x383   :  { %1458 = vst.msk [vmem:[#allocation2 + $0x108] sm:$0xff] %vm6796_vm7, %v1438_v0  ;;  %v1249_v23 = vpop.permute.xlu2 %1248 }
 0x384   :  { %1716 = vst.msk [vmem:[#allocation2 + $0xf8] sm:$0xff] %vm6797_vm9, %v1438_v0  ;;  %vm6800_vm9 = vmmov %vm6788_vm6 }
 0x385   :  { %1014 = vst.msk [vmem:[#allocation2 + $0x138] sm:$0xff] %vm969_vm2, %v998_v3 }
 0x386   :  { %1604 = vst.msk [vmem:[#allocation2 + $0x128] sm:$0xff] %vm969_vm2, %v998_v3 }
 0x387   :  { %1782 = vst.msk [vmem:[#allocation2 + $0x118] sm:$0xff] %vm969_vm2, %v998_v3 }
 0x388   :  { %1013 = vst.msk [vmem:[#allocation2 + $0x120] sm:$0xff] %vm969_vm2, %v996_v43  ;;  %v1247_v63 = vpop.permute.xlu1 %1246 }
 0x389   :  { %1603 = vst.msk [vmem:[#allocation2 + $0x110] sm:$0xff] %vm969_vm2, %v996_v43  ;;  %v1858_v38 = vld [vmem:[#allocation2 + $0xe8] sm:$0xff] }
 0x38a   :  { %1781 = vst.msk [vmem:[#allocation2 + $0x100] sm:$0xff] %vm969_vm2, %v996_v43  ;;  %3623 = vmatmul.msk.f32.gmra.mxu0 %vm814_vm8, %v1858_v38  ;;  %v1055_v46 = vpop.permute.xlu0 %1054 }
 0x38b   :  { %1070 = vst.msk [vmem:[#allocation2 + $0x120] sm:$0xff] %vm1038_vm12, %v5443_v5  ;;  %v1539_v12 = vpop.permute.xlu2 %1538 }
 0x38c   :  { %1625 = vst.msk [vmem:[#allocation2 + $0x110] sm:$0xff] %vm1038_vm12, %v5443_v5 }
 0x38d   :  { %1796 = vst.msk [vmem:[#allocation2 + $0x100] sm:$0xff] %vm1038_vm12, %v5443_v5 }
 0x38e   :  { %1555 = vst.msk [vmem:[#allocation2 + $0x108] sm:$0xff] %vm6798_vm15, %v1535_v41  ;;  %vm6801_vm15 = vmmov %vm6796_vm7 }
 0x38f   :  { %1739 = vst.msk [vmem:[#allocation2 + $0xf8] sm:$0xff] %vm6788_vm6, %v1535_v41 }
 0x390   :  { %1071 = vst.msk [vmem:[#allocation2 + $0x138] sm:$0xff] %vm1038_vm12, %v1055_v46  ;;  %v1537_v13 = vpop.permute.xlu1 %1536 }
 0x391   :  { %1626 = vst.msk [vmem:[#allocation2 + $0x128] sm:$0xff] %vm1038_vm12, %v1055_v46 }
 0x392   :  { %1797 = vst.msk [vmem:[#allocation2 + $0x118] sm:$0xff] %vm1038_vm12, %v1055_v46  ;;  %v1150_v45 = vpop.permute.xlu0 %1149 }
 0x393   :  { %1169 = vst.msk [vmem:[#allocation2 + $0x120] sm:$0xff] %vm1117_vm3, %v1150_v45  ;;  %v5525_v48 = vpop.permute.xlu2 %1058 }
 0x394   :  { %1266 = vst.msk [vmem:[#allocation2 + $0x120] sm:$0xff] %vm1215_vm4, %v1247_v63 }
 0x395   :  { %v1862_v22 = vld [vmem:[#allocation2 + $0x108] sm:$0xff]  ;;  %1648 = vst.msk [vmem:[#allocation2 + $0x110] sm:$0xff] %vm1117_vm3, %v1150_v45 }
 0x396   :  { %2020 = vmatmul.f32.gmra.mxu2 %v1862_v22  ;;  %v1860_v47 = vld [vmem:[#allocation2 + $0xf8] sm:$0xff]  ;;  %1671 = vst.msk [vmem:[#allocation2 + $0x110] sm:$0xff] %vm1215_vm4, %v1247_v63 }
 0x397   :  { %2082 = vmatmul.f32.gmra.mxu3 %v1860_v47  ;;  %1810 = vst.msk [vmem:[#allocation2 + $0x100] sm:$0xff] %vm1117_vm3, %v1150_v45  ;;  %v5613_v45 = vpop.f32.mrf.mxu0 }
 0x398   :  { %1824 = vst.msk [vmem:[#allocation2 + $0x100] sm:$0xff] %vm1215_vm4, %v1247_v63  ;;  %v1057_v2 = vpop.permute.xlu1 %1056 }
 0x399   :  { %1362 = vst.msk [vmem:[#allocation2 + $0x120] sm:$0xff] %vm6794_vm5, %v5485_v44 }
 0x39a   :  { %1694 = vst.msk [vmem:[#allocation2 + $0x110] sm:$0xff] %vm6799_vm11, %v5485_v44  ;;  %v1440_v32 = vpop.permute.xlu0 %1439  ;;  %vm6802_vm11 = vmmov %vm6794_vm5 }
 0x39b   :  { %1459 = vst.msk [vmem:[#allocation2 + $0x120] sm:$0xff] %vm6796_vm7, %v1440_v32  ;;  %v1154_v37 = vpop.permute.xlu2 %1153 }
 0x39c   :  { %1556 = vst.msk [vmem:[#allocation2 + $0x120] sm:$0xff] %vm6800_vm9, %v1537_v13  ;;  %vm6803_vm9 = vmmov %vm6788_vm6 }
 0x39d   :  { %1717 = vst.msk [vmem:[#allocation2 + $0x110] sm:$0xff] %vm6801_vm15, %v1440_v32  ;;  %vm6804_vm15 = vmmov %vm6796_vm7 }
 0x39e   :  { %1740 = vst.msk [vmem:[#allocation2 + $0x110] sm:$0xff] %vm6788_vm6, %v1537_v13  ;;  %v5611_v13 = vpop.f32.mrf.mxu3 }
 0x39f   :  { %v1861_v1 = vld [vmem:[#allocation2 + $0x100] sm:$0xff]  ;;  %v5619_v47 = vpop.f32.mrf.mxu0 }
 0x3a0   :  { %3624 = vmatmul.msk.f32.gmra.mxu0 %vm814_vm8, %v1861_v1  ;;  %v1152_v51 = vpop.permute.xlu1 %1151 }
 0x3a1   :  { %1170 = vst.msk [vmem:[#allocation2 + $0x138] sm:$0xff] %vm1117_vm3, %v1152_v51 }
 0x3a2   :  { %1649 = vst.msk [vmem:[#allocation2 + $0x128] sm:$0xff] %vm1117_vm3, %v1152_v51  ;;  %v1345_v6 = vpop.permute.xlu0 %1344 }
 0x3a3   :  { %1811 = vst.msk [vmem:[#allocation2 + $0x118] sm:$0xff] %vm1117_vm3, %v1152_v51  ;;  %v1865_v50 = vld [vmem:[#allocation2 + $0x120] sm:$0xff]  ;;  %v1444_v35 = vpop.permute.xlu2 %1443 }
 0x3a4   :  { %1825 = vst.msk [vmem:[#allocation2 + $0x118] sm:$0xff] %vm1215_vm4, %v1249_v23  ;;  %2023 = vmatmul.f32.gmra.mxu2 %v1865_v50 }
 0x3a5   :  { %1267 = vst.msk [vmem:[#allocation2 + $0x138] sm:$0xff] %vm1215_vm4, %v1249_v23  ;;  %v1863_v16 = vld [vmem:[#allocation2 + $0x110] sm:$0xff] }
 0x3a6   :  { %1672 = vst.msk [vmem:[#allocation2 + $0x128] sm:$0xff] %vm1215_vm4, %v1249_v23  ;;  %2085 = vmatmul.f32.gmra.mxu3 %v1863_v16  ;;  %v5617_v22 = vpop.f32.mrf.mxu3 }
 0x3a7   :  { %1363 = vst.msk [vmem:[#allocation2 + $0x138] sm:$0xff] %vm6794_vm5, %v1345_v6 }
 0x3a8   :  { %1695 = vst.msk [vmem:[#allocation2 + $0x128] sm:$0xff] %vm6802_vm11, %v1345_v6  ;;  %v1442_v57 = vpop.permute.xlu1 %1441  ;;  %vm6805_vm11 = vmmov %vm6794_vm5 }
 0x3a9   :  { %1460 = vst.msk [vmem:[#allocation2 + $0x138] sm:$0xff] %vm6796_vm7, %v1442_v57 }
 0x3aa   :  { %1557 = vst.msk [vmem:[#allocation2 + $0x138] sm:$0xff] %vm6803_vm9, %v1539_v12  ;;  %v1000_v59 = vpop.permute.xlu0 %999  ;;  %vm6806_vm9 = vmmov %vm6796_vm7 }
 0x3ab   :  { %1718 = vst.msk [vmem:[#allocation2 + $0x128] sm:$0xff] %vm6804_vm15, %v1442_v57  ;;  %v1864_v5 = vld [vmem:[#allocation2 + $0x118] sm:$0xff]  ;;  %v1666_v55 = vpop.permute.xlu2 %1665  ;;  %vm6807_vm15 = vmmov %vm6788_vm6 }
 0x3ac   :  { %1741 = vst.msk [vmem:[#allocation2 + $0x128] sm:$0xff] %vm6788_vm6, %v1539_v12  ;;  %3625 = vmatmul.msk.f32.gmra.mxu0 %vm814_vm8, %v1864_v5  ;;  %v5609_v12 = vpop.f32.mrf.mxu2 }
 0x3ad   :  { %1015 = vst.msk [vmem:[#allocation2 + $0x150] sm:$0xff] %vm969_vm2, %v1000_v59 }
 0x3ae   :  { %1072 = vst.msk [vmem:[#allocation2 + $0x150] sm:$0xff] %vm1038_vm12, %v1057_v2  ;;  %v5623_v32 = vpop.f32.mrf.mxu3 }
 0x3af   :  { %1605 = vst.msk [vmem:[#allocation2 + $0x140] sm:$0xff] %vm969_vm2, %v1000_v59 }
 0x3b0   :  { %1627 = vst.msk [vmem:[#allocation2 + $0x140] sm:$0xff] %vm1038_vm12, %v1057_v2  ;;  %v1347_v53 = vpop.permute.xlu1 %1346 }
 0x3b1   :  { %1783 = vst.msk [vmem:[#allocation2 + $0x130] sm:$0xff] %vm969_vm2, %v1000_v59  ;;  %v1868_v40 = vld [vmem:[#allocation2 + $0x138] sm:$0xff] }
 0x3b2   :  { %1798 = vst.msk [vmem:[#allocation2 + $0x130] sm:$0xff] %vm1038_vm12, %v1057_v2  ;;  %v1251_v10 = vpop.permute.xlu0 %1250  ;;  %2026 = vmatmul.f32.gmra.mxu2 %v1868_v40 }
 0x3b3   :  { %1171 = vst.msk [vmem:[#allocation2 + $0x150] sm:$0xff] %vm1117_vm3, %v1154_v37  ;;  %v1866_v49 = vld [vmem:[#allocation2 + $0x128] sm:$0xff]  ;;  %v1349_v4 = vpop.permute.xlu2 %1348 }
 0x3b4   :  { %1650 = vst.msk [vmem:[#allocation2 + $0x140] sm:$0xff] %vm1117_vm3, %v1154_v37  ;;  %2088 = vmatmul.f32.gmra.mxu3 %v1866_v49 }
 0x3b5   :  { %1812 = vst.msk [vmem:[#allocation2 + $0x130] sm:$0xff] %vm1117_vm3, %v1154_v37  ;;  %v5625_v37 = vpop.f32.mrf.mxu0 }
 0x3b6   :  { %1268 = vst.msk [vmem:[#allocation2 + $0x150] sm:$0xff] %vm1215_vm4, %v1251_v10  ;;  %v5629_v51 = vpop.f32.mrf.mxu3 }
 0x3b7   :  { %1364 = vst.msk [vmem:[#allocation2 + $0x150] sm:$0xff] %vm6794_vm5, %v1347_v53  ;;  %vm6808_vm5 = vcmask 652800  }
 0x3b8   :  { %1673 = vst.msk [vmem:[#allocation2 + $0x140] sm:$0xff] %vm1215_vm4, %v1251_v10  ;;  %v1002_v39 = vpop.permute.xlu1 %1001 }
 0x3b9   :  { %1696 = vst.msk [vmem:[#allocation2 + $0x140] sm:$0xff] %vm6805_vm11, %v1347_v53  ;;  %vm6809_vm11 = vmmov %vm6808_vm5 }
 0x3ba   :  { %1826 = vst.msk [vmem:[#allocation2 + $0x130] sm:$0xff] %vm1215_vm4, %v1251_v10  ;;  %v1541_v62 = vpop.permute.xlu0 %1540 }
 0x3bb   :  { %1461 = vst.msk [vmem:[#allocation2 + $0x150] sm:$0xff] %vm6796_vm7, %v1444_v35  ;;  %v1598_v60 = vpop.permute.xlu2 %1597 }
 0x3bc   :  { %1719 = vst.msk [vmem:[#allocation2 + $0x140] sm:$0xff] %vm6806_vm9, %v1444_v35 }
 0x3bd   :  { %1016 = vst.msk [vmem:[#allocation2 + $0x168] sm:$0xff] %vm969_vm2, %v1002_v39  ;;  %v5631_v6 = vpop.f32.mrf.mxu0 }
 0x3be   :  { %1606 = vst.msk [vmem:[#allocation2 + $0x158] sm:$0xff] %vm969_vm2, %v1002_v39  ;;  %v5635_v35 = vpop.f32.mrf.mxu3 }
 0x3bf   :  { %1784 = vst.msk [vmem:[#allocation2 + $0x148] sm:$0xff] %vm969_vm2, %v1002_v39 }
 0x3c0   :  { %1073 = vst.msk [vmem:[#allocation2 + $0x168] sm:$0xff] %vm1038_vm12, %v5525_v48  ;;  %v1643_v20 = vpop.permute.xlu1 %1642 }
 0x3c1   :  { %1628 = vst.msk [vmem:[#allocation2 + $0x158] sm:$0xff] %vm1038_vm12, %v5525_v48  ;;  %v1867_v31 = vld [vmem:[#allocation2 + $0x130] sm:$0xff] }
 0x3c2   :  { %1799 = vst.msk [vmem:[#allocation2 + $0x148] sm:$0xff] %vm1038_vm12, %v5525_v48  ;;  %3626 = vmatmul.msk.f32.gmra.mxu0 %vm814_vm8, %v1867_v31  ;;  %v1620_v0 = vpop.permute.xlu0 %1619  ;;  %v5615_v48 = vpop.f32.mrf.mxu2 }
 0x3c3   :  { %1558 = vst.msk [vmem:[#allocation2 + $0x150] sm:$0xff] %vm6807_vm15, %v1541_v62  ;;  %vm6814_vm15 = vmmov %vm6788_vm6  ;;  %v1735_v3 = vpop.permute.xlu2 %1734 }
 0x3c4   :  { %1742 = vst.msk [vmem:[#allocation2 + $0x140] sm:$0xff] %vm6788_vm6, %v1541_v62 }
 0x3c5   :  { %1607 = vst.msk [vmem:[#allocation2 + $0x170] sm:$0xff] %vm969_vm2, %v1598_v60  ;;  %v5637_v16 = vpop.f32.mrf.mxu0 }
 0x3c6   :  { %1785 = vst.msk [vmem:[#allocation2 + $0x160] sm:$0xff] %vm969_vm2, %v1598_v60  ;;  %vm6810_vm2 = vcmask 786048   ;;  %v5641_v59 = vpop.f32.mrf.mxu3 }
 0x3c7   :  { %1629 = vst.msk [vmem:[#allocation2 + $0x170] sm:$0xff] %vm1038_vm12, %v1620_v0 }
 0x3c8   :  { %1652 = vst.msk [vmem:[#allocation2 + $0x170] sm:$0x7f] %vm1640_vm10, %v1643_v20  ;;  %v1253_v36 = vpop.permute.xlu1 %1252 }
 0x3c9   :  { %1800 = vst.msk [vmem:[#allocation2 + $0x160] sm:$0xff] %vm1038_vm12, %v1620_v0  ;;  %vm6811_vm12 = vmmov %vm6810_vm2 }
 0x3ca   :  { %1814 = vst.msk [vmem:[#allocation2 + $0x160] sm:$0x7f] %vm1640_vm10, %v1643_v20  ;;  %v1871_v58 = vld [vmem:[#allocation2 + $0x150] sm:$0xff]  ;;  %v1156_v42 = vpop.permute.xlu0 %1155  ;;  %vm6812_vm10 = vmmov %vm6796_vm7  ;;  %v5621_v2 = vpop.f32.mrf.mxu2 }
 0x3cb   :  { %1828 = vst.msk [vmem:[#allocation2 + $0x160] sm:$0x3f] %vm6808_vm5, %v1666_v55  ;;  %2029 = vmatmul.f32.gmra.mxu2 %v1871_v58  ;;  %v1869_v17 = vld [vmem:[#allocation2 + $0x140] sm:$0xff]  ;;  %vm6813_vm7 = vmmov %vm6788_vm6  ;;  %vm6817_vm6 = vcmask 1043328   ;;  %vm6818_vm5 = vcmask 254080  }
 0x3cc   :  { %1675 = vst.msk [vmem:[#allocation2 + $0x170] sm:$0x3f] %vm6809_vm11, %v1666_v55  ;;  %2091 = vmatmul.f32.gmra.mxu3 %v1869_v17  ;;  %vm6821_vm11 = vcmp.eq.s32.totalorder %v3988_v8, %v3991_v9 }
 0x3cd   :  { %1172 = vst.msk [vmem:[#allocation2 + $0x168] sm:$0xff] %vm1117_vm3, %v1156_v42  ;;  %v5643_v5 = vpop.f32.mrf.mxu0 }
 0x3ce   :  { %1269 = vst.msk [vmem:[#allocation2 + $0x168] sm:$0xff] %vm1215_vm4, %v1253_v36  ;;  %v5649_v40 = vpop.f32.mrf.mxu3 }
 0x3cf   :  { %1651 = vst.msk [vmem:[#allocation2 + $0x158] sm:$0xff] %vm1117_vm3, %v1156_v42 }
 0x3d0   :  { %1674 = vst.msk [vmem:[#allocation2 + $0x158] sm:$0xff] %vm1215_vm4, %v1253_v36  ;;  %v1543_v44 = vpop.permute.xlu1 %1542 }
 0x3d1   :  { %1813 = vst.msk [vmem:[#allocation2 + $0x148] sm:$0xff] %vm1117_vm3, %v1156_v42  ;;  %vm6815_vm3 = vcmask 782976  }
 0x3d2   :  { %1827 = vst.msk [vmem:[#allocation2 + $0x148] sm:$0xff] %vm1215_vm4, %v1253_v36  ;;  %v1446_v54 = vpop.permute.xlu0 %1445  ;;  %vm6816_vm4 = vcmask 913152   ;;  %v1873_v23 = vld [vmem:[#allocation2 + $0x160] sm:$0xff]  ;;  %v5627_v1 = vpop.f32.mrf.mxu2 }
 0x3d3   :  { %1365 = vst.msk [vmem:[#allocation2 + $0x168] sm:$0xff] %vm6810_vm2, %v1349_v4 }
 0x3d4   :  { %1697 = vst.msk [vmem:[#allocation2 + $0x158] sm:$0xff] %vm6811_vm12, %v1349_v4 }
 0x3d5   :  { %1462 = vst.msk [vmem:[#allocation2 + $0x168] sm:$0xff] %vm6812_vm10, %v1446_v54  ;;  %v5647_v53 = vpop.f32.mrf.mxu0 }
 0x3d6   :  { %1559 = vst.msk [vmem:[#allocation2 + $0x168] sm:$0xff] %vm6813_vm7, %v1543_v44  ;;  %v2074_v4 = vpop.f32.mrf.mxu3 }
 0x3d7   :  { %1720 = vst.msk [vmem:[#allocation2 + $0x158] sm:$0xff] %vm6806_vm9, %v1446_v54 }
 0x3d8   :  { %1743 = vst.msk [vmem:[#allocation2 + $0x158] sm:$0xff] %vm6814_vm15, %v1543_v44  ;;  %v1712_v28 = vpop.permute.xlu1 %1711 }
 0x3d9   :  { %v1870_v34 = vld [vmem:[#allocation2 + $0x148] sm:$0xff] }
 0x3da   :  { %3627 = vmatmul.msk.f32.gmra.mxu0 %vm814_vm8, %v1870_v34  ;;  %v1689_v11 = vpop.permute.xlu0 %1688  ;;  %v5633_v50 = vpop.f32.mrf.mxu2 }
 0x3db   :  { %1698 = vst.msk [vmem:[#allocation2 + $0x170] sm:$0x1f] %vm6815_vm3, %v1689_v11 }
 0x3dc   :  { %1721 = vst.msk [vmem:[#allocation2 + $0x170] sm:$0xf] %vm6816_vm4, %v1712_v28 }
 0x3dd   :  { %1744 = vst.msk [vmem:[#allocation2 + $0x170] sm:$0x7] %vm6817_vm6, %v1735_v3  ;;  %v1874_v43 = vld [vmem:[#allocation2 + $0x168] sm:$0xff]  ;;  %v5651_v49 = vpop.f32.mrf.mxu0 }
 0x3de   :  { %2032 = vmatmul.f32.gmra.mxu2 %v1874_v43 }
 0x3df   :  { %v1872_v41 = vld [vmem:[#allocation2 + $0x158] sm:$0xff] }
 0x3e0   :  { %2094 = vmatmul.f32.gmra.mxu3 %v1872_v41 }
 0x3e2   :  { %3628 = vmatmul.msk.f32.gmra.mxu0 %vm814_vm8, %v1873_v23  ;;  %v1777_v63 = vpop.permute.xlu0 %1776  ;;  %v5639_v57 = vpop.f32.mrf.mxu2 }
 0x3e3   :  { %1786 = vst.msk [vmem:[#allocation2 + $0x178] sm:$0x1] %vm6818_vm5, %v1777_v63 }
 0x3e4   :  { %v1875_v38 = vld [vmem:[#allocation2 + $0x170] sm:$0xff] }
 0x3e8   :  { %2097 = vmatmul.f32.gmra.mxu3 %v1875_v38 }
 0x3ea   :  { %v1876_v46 = vld [vmem:[#allocation2 + $0x178] sm:$0xff]  ;;  %v5645_v55 = vpop.f32.mrf.mxu2 }
 0x3eb   :  { %3629 = vmatmul.msk.f32.gmra.mxu0 %vm814_vm8, %v1876_v46  ;;  %vm6820_vm8 = vcmp.eq.s32.totalorder %v3988_v8, %v4163_v52 }
 0x3ef   :  { %v2077_v62 = vpop.f32.mrf.mxu3 }
 0x3f1   :  { %v2142_v20 = vpop.f32.mrf.mxu0 }
 0x3f2   :  { %v2009_v10 = vpop.f32.mrf.mxu2 }
 0x3fa   :  { %v2012_v39 = vpop.f32.mrf.mxu2 }
 0x3ff   :  { %v2080_v60 = vpop.f32.mrf.mxu3 }
 0x402   :  { %v2015_v31 = vpop.f32.mrf.mxu2 }
 0x407   :  { %v2145_v0 = vpop.f32.mrf.mxu0 }
 0x40a   :  { %v2018_v36 = vpop.f32.mrf.mxu2 }
 0x419   :  { %v2021_v17 = vpop.f32.mrf.mxu2 }
 0x41a   :  { %v2083_v58 = vpop.f32.mrf.mxu3  ;;  %v2022_v19 = vadd.f32 %v5656_v14, %v2021_v17 }
 0x41d   :  { %v2148_v42 = vpop.f32.mrf.mxu0 }
 0x427   :  { %v2024_v34 = vpop.f32.mrf.mxu2 }
 0x428   :  { %v2025_v24 = vadd.f32 %v5656_v14, %v2024_v34 }
 0x429   :  { %v2086_v44 = vpop.f32.mrf.mxu3  ;;  %v2151_v54 = vpop.f32.mrf.mxu0 }
 0x42a   :  { %v2087_v61 = vadd.f32 %v2086_v44, %v2022_v19  ;;  %v6848_v44 = vld [vmem:[#allocation13_spill] sm:$0xff] }
 0x435   :  { %v2027_v3 = vpop.f32.mrf.mxu2 }
 0x436   :  { %v2028_v25 = vadd.f32 %v5656_v14, %v2027_v3 }
 0x437   :  { %v2089_v11 = vpop.f32.mrf.mxu3 }
 0x438   :  { %v2090_v18 = vadd.f32 %v2089_v11, %v2025_v24  ;;  %v2152_v24 = vadd.f32 %v2151_v54, %v2087_v61  ;;  %v2004_v61 = vadd.f32 %v5656_v14, %v5639_v57  ;;  %v5760_v54 = vld [vmem:[#allocation3] sm:$0xff] }
 0x43f   :  { %v2154_v28 = vpop.f32.mrf.mxu0 }
 0x44e   :  { %v2030_v23 = vpop.f32.mrf.mxu2 }
 0x44f   :  { %v2092_v43 = vpop.f32.mrf.mxu3  ;;  %v2031_v33 = vadd.f32 %v5656_v14, %v2030_v23 }
 0x450   :  { %v2093_v7 = vadd.f32 %v2092_v43, %v2028_v25 }
 0x457   :  { %v2157_v41 = vpop.f32.mrf.mxu0 }
 0x458   :  { %v2158_v23 = vadd.f32 %v2157_v41, %v2093_v7 }
 0x45f   :  { %v2160_v38 = vpop.f32.mrf.mxu0 }
 0x461   :  { %v2033_v46 = vpop.f32.mrf.mxu2 }
 0x462   :  { %v2034_v29 = vadd.f32 %v5656_v14, %v2033_v46 }
 0x463   :  { %v2095_v63 = vpop.f32.mrf.mxu3 }
 0x464   :  { %v2096_v26 = vadd.f32 %v2095_v63, %v2031_v33  ;;  %v2016_v33 = vadd.f32 %v5656_v14, %v2015_v31 }
 0x466   :  { %v2161_v15 = vadd.f32 %v2160_v38, %v2096_v26 }
 0x468   :  { %v2163_v56 = vpop.f32.mrf.mxu0 }
 0x46b   :  { %v2098_v30 = vpop.f32.mrf.mxu3 }
 0x46c   :  { %v2099_v27 = vadd.f32 %v2098_v30, %v2034_v29  ;;  %v2019_v30 = vadd.f32 %v5656_v14, %v2018_v36  ;;  %v2155_v29 = vadd.f32 %v2154_v28, %v2090_v18  ;;  %v6842_v36 = vld [vmem:[#allocation19_spill] sm:$0xff] }
 0x46e   :  { %v2164_v21 = vadd.f32 %v2163_v56, %v2099_v27  ;;  %v2013_v27 = vadd.f32 %v5656_v14, %v2012_v39  ;;  %v2081_v56 = vadd.f32 %v2080_v60, %v2016_v33  ;;  %v2084_v17 = vadd.f32 %v2083_v58, %v2019_v30  ;;  %v6838_v60 = vld [vmem:[#allocation18_spill] sm:$0xff]  ;;  %v6844_v58 = vld [vmem:[#allocation12_spill] sm:$0xff] }
 0x46f   :  { %vm6839_vm6 = vcmp.eq.s32.totalorder %v3988_v8, %v6838_v60 }
 0x470   :  { %2166 = vmatpush.msra.mxu1 %v2164_v21  ;;  %2207 = vmatpush.msra.mxu2 %v2164_v21  ;;  %v2010_v21 = vadd.f32 %v5656_v14, %v2009_v10  ;;  %v2078_v19 = vadd.f32 %v2077_v62, %v2013_v27  ;;  %v2149_v7 = vadd.f32 %v2148_v42, %v2084_v17  ;;  %v6846_v42 = vld [vmem:[#allocation20_spill] sm:$0xff] }
 0x471   :  { %v2146_v18 = vadd.f32 %v2145_v0, %v2081_v56  ;;  %v1998_v62 = vadd.f32 %v5656_v14, %v5627_v1  ;;  %v6840_v0 = vld [vmem:[#allocation11_spill] sm:$0xff] }
 0x472   :  { %2167 = vmatpush.msra.mxu1 %v2161_v15  ;;  %2208 = vmatpush.msra.mxu2 %v2161_v15  ;;  %v2007_v15 = vadd.f32 %v5656_v14, %v5645_v55  ;;  %v2075_v25 = vadd.f32 %v2074_v4, %v2010_v21  ;;  %v2143_v39 = vadd.f32 %v2142_v20, %v2078_v19 }
 0x473   :  { %v2001_v55 = vadd.f32 %v5656_v14, %v5633_v50  ;;  %v2069_v4 = vadd.f32 %v5641_v59, %v2004_v61  ;;  %v1995_v20 = vadd.f32 %v5656_v14, %v5621_v2  ;;  %v2063_v57 = vadd.f32 %v5629_v51, %v1998_v62 }
 0x474   :  { %2168 = vmatpush.msra.mxu1 %v2158_v23  ;;  %2209 = vmatpush.msra.mxu2 %v2158_v23  ;;  %v2072_v26 = vadd.f32 %v5649_v40, %v2007_v15  ;;  %v2140_v10 = vadd.f32 %v5651_v49, %v2075_v25  ;;  %v1989_v59 = vadd.f32 %v5656_v14, %v5609_v12 }
 0x475   :  { %v2066_v49 = vadd.f32 %v5635_v35, %v2001_v55  ;;  %v2134_v31 = vadd.f32 %v5643_v5, %v2069_v4  ;;  %v2060_v1 = vadd.f32 %v5623_v32, %v1995_v20  ;;  %v1992_v2 = vadd.f32 %v5656_v14, %v5615_v48  ;;  %v6826_v48 = vld [vmem:[#allocation15_spill] sm:$0xff] }
 0x476   :  { %2169 = vmatpush.msra.mxu1 %v2155_v29  ;;  %2210 = vmatpush.msra.mxu2 %v2155_v29  ;;  %v2137_v40 = vadd.f32 %v5647_v53, %v2072_v26  ;;  %v2128_v51 = vadd.f32 %v5631_v6, %v2063_v57  ;;  %v2054_v35 = vadd.f32 %v5611_v13, %v1989_v59  ;;  %v6819_v14 = vmov 1.0   ;;  %v6822_v13 = vld [vmem:[#allocation14_spill] sm:$0xff]  ;;  %v6834_v6 = vld [vmem:[#allocation17_spill] sm:$0xff] }
 0x477   :  { %v2131_v50 = vadd.f32 %v5637_v16, %v2066_v49  ;;  %v2057_v5 = vadd.f32 %v5617_v22, %v1992_v2  ;;  %v2125_v32 = vadd.f32 %v5625_v37, %v2060_v1  ;;  %vm6823_vm2 = vcmp.eq.s32.totalorder %v3988_v8, %v6822_v13  ;;  %v6828_v22 = vld [vmem:[#allocation8_spill] sm:$0xff]  ;;  %v6832_v37 = vld [vmem:[#allocation9_spill] sm:$0xff]  ;;  %v6836_v53 = vld [vmem:[#allocation10_spill] sm:$0xff] }
 0x478   :  { %2170 = vmatpush.msra.mxu1 %v2152_v24  ;;  %2211 = vmatpush.msra.mxu2 %v2152_v24  ;;  %v2119_v12 = vadd.f32 %v5613_v45, %v2054_v35  ;;  %v6824_v45 = vld [vmem:[#allocation7_spill] sm:$0xff]  ;;  %vm6827_vm10 = vcmp.eq.s32.totalorder %v3988_v8, %v6826_v48  ;;  %vm6829_vm7 = vcmp.eq.s32.totalorder %v3988_v8, %v6828_v22 }
 0x479   :  { %v2122_v16 = vadd.f32 %v5619_v47, %v2057_v5  ;;  %vm6825_vm12 = vcmp.eq.s32.totalorder %v3988_v8, %v6824_v45  ;;  %v6830_v47 = vld [vmem:[#allocation16_spill] sm:$0xff]  ;;  %vm6833_vm15 = vcmp.eq.s32.totalorder %v3988_v8, %v6832_v37  ;;  %vm6835_vm3 = vcmp.eq.s32.totalorder %v3988_v8, %v6834_v6 }
 0x47a   :  { %2171 = vmatpush.msra.mxu1 %v2149_v7  ;;  %2212 = vmatpush.msra.mxu2 %v2149_v7  ;;  %vm6831_vm9 = vcmp.eq.s32.totalorder %v3988_v8, %v6830_v47  ;;  %vm6837_vm4 = vcmp.eq.s32.totalorder %v3988_v8, %v6836_v53  ;;  %vm6841_vm5 = vcmp.eq.s32.totalorder %v3988_v8, %v6840_v0 }
 0x47c   :  { %2172 = vmatpush.msra.mxu1 %v2146_v18  ;;  %2213 = vmatpush.msra.mxu2 %v2146_v18 }
 0x47e   :  { %2173 = vmatpush.msra.mxu1 %v2143_v39  ;;  %2214 = vmatpush.msra.mxu2 %v2143_v39 }
 0x480   :  { %2174 = vmatpush.msra.mxu1 %v2140_v10  ;;  %2215 = vmatpush.msra.mxu2 %v2140_v10 }
 0x482   :  { %2175 = vmatpush.msra.mxu1 %v2137_v40  ;;  %2216 = vmatpush.msra.mxu2 %v2137_v40 }
 0x484   :  { %2176 = vmatpush.msra.mxu1 %v2134_v31  ;;  %2217 = vmatpush.msra.mxu2 %v2134_v31 }
 0x486   :  { %2177 = vmatpush.msra.mxu1 %v2131_v50  ;;  %2218 = vmatpush.msra.mxu2 %v2131_v50 }
 0x488   :  { %2178 = vmatpush.msra.mxu1 %v2128_v51  ;;  %2219 = vmatpush.msra.mxu2 %v2128_v51 }
 0x48a   :  { %2179 = vmatpush.msra.mxu1 %v2125_v32  ;;  %2220 = vmatpush.msra.mxu2 %v2125_v32 }
 0x48c   :  { %2180 = vmatpush.msra.mxu1 %v2122_v16  ;;  %2221 = vmatpush.msra.mxu2 %v2122_v16 }
 0x48e   :  { %2181 = vmatpush.msra.mxu1 %v2119_v12  ;;  %2222 = vmatpush.msra.mxu2 %v2119_v12 }
 0x48f   :  { %3638 = vmatmul.msk.f32.vlgmr.msra.gmra.mxu2 %vm6820_vm8, %v6819_v14  ;;  %3630 = vmatmul.msk.f32.vlgmr.msra.gmra.mxu1 %vm6821_vm11, %v6819_v14  ;;  %vm6843_vm8 = vcmp.eq.s32.totalorder %v3988_v8, %v6842_v36  ;;  %vm6845_vm11 = vcmp.eq.s32.totalorder %v3988_v8, %v6844_v58 }
 0x497   :  { %3639 = vmatmul.msk.f32.gmra.mxu2 %vm6823_vm2, %v6819_v14  ;;  %3631 = vmatmul.msk.f32.gmra.mxu1 %vm6825_vm12, %v6819_v14  ;;  %vm6847_vm2 = vcmp.eq.s32.totalorder %v3988_v8, %v6846_v42  ;;  %vm6849_vm12 = vcmp.eq.s32.totalorder %v3988_v8, %v6848_v44 }
 0x49f   :  { %3640 = vmatmul.msk.f32.gmra.mxu2 %vm6827_vm10, %v6819_v14  ;;  %3632 = vmatmul.msk.f32.gmra.mxu1 %vm6829_vm7, %v6819_v14  ;;  %vm2258_vm10 = vcmask 261120  }
 0x4a0   :  { %2358 = vst.msk [vmem:[#allocation3 + $0x28] sm:$0xff] %vm2258_vm10, %v5760_v54 }
 0x4a1   :  { %2364 = vst.msk [vmem:[#allocation3 + $0x58] sm:$0xff] %vm2258_vm10, %v5760_v54 }
 0x4a2   :  { %2370 = vst.msk [vmem:[#allocation3 + $0x88] sm:$0xff] %vm2258_vm10, %v5760_v54 }
 0x4a3   :  { %2376 = vst.msk [vmem:[#allocation3 + $0xb8] sm:$0xff] %vm2258_vm10, %v5760_v54 }
 0x4a4   :  { %2382 = vst.msk [vmem:[#allocation3 + $0xe8] sm:$0xff] %vm2258_vm10, %v5760_v54 }
 0x4a5   :  { %2388 = vst.msk [vmem:[#allocation3 + $0x118] sm:$0xff] %vm2258_vm10, %v5760_v54 }
 0x4a6   :  { %2394 = vst.msk [vmem:[#allocation3 + $0x148] sm:$0xff] %vm2258_vm10, %v5760_v54 }
 0x4a7   :  { %3641 = vmatmul.msk.f32.gmra.mxu2 %vm6831_vm9, %v6819_v14  ;;  %3633 = vmatmul.msk.f32.gmra.mxu1 %vm6833_vm15, %v6819_v14  ;;  %2400 = vst.msk [vmem:[#allocation3 + $0x178] sm:$0xff] %vm2258_vm10, %v5760_v54 }
 0x4af   :  { %3642 = vmatmul.msk.f32.gmra.mxu2 %vm6835_vm3, %v6819_v14  ;;  %3634 = vmatmul.msk.f32.gmra.mxu1 %vm6837_vm4, %v6819_v14  ;;  %vm6850_vm3 = vcmask 1043456   ;;  %vm2412_vm4 = vcmask 261122  }
 0x4b7   :  { %3643 = vmatmul.msk.f32.gmra.mxu2 %vm6839_vm6, %v6819_v14  ;;  %3635 = vmatmul.msk.f32.gmra.mxu1 %vm6841_vm5, %v6819_v14  ;;  %vm2552_vm6 = vcmask 261126   ;;  %vm6851_vm5 = vmmov %vm6850_vm3 }
 0x4bf   :  { %3644 = vmatmul.msk.f32.gmra.mxu2 %vm6843_vm8, %v6819_v14  ;;  %3636 = vmatmul.msk.f32.gmra.mxu1 %vm6845_vm11, %v6819_v14  ;;  %vm6852_vm8 = vmmov %vm6850_vm3  ;;  %vm6853_vm11 = vcmask 1041408  }
 0x4c7   :  { %3645 = vmatmul.msk.f32.gmra.mxu2 %vm6847_vm2, %v6819_v14  ;;  %3637 = vmatmul.msk.f32.gmra.mxu1 %vm6849_vm12, %v6819_v14  ;;  %vm6854_vm2 = vmmov %vm6853_vm11  ;;  %vm6855_vm12 = vcmask 1045504  }
 0x50c   :  { %v2183_v34 = vpop.f32.mrf.mxu1 }
 0x512   :  { %v2224_v11 = vpop.f32.mrf.mxu2 }
 0x513   :  { %v2248_v27 = vmax.f32 %v2183_v34, %v2224_v11 }
 0x514   :  { %v2186_v28 = vpop.f32.mrf.mxu1 }
 0x515   :  { %v2259_v19 = vsel %vm2258_vm10, %v2248_v27, 0.0 }
 0x51a   :  { %v2227_v3 = vpop.f32.mrf.mxu2 }
 0x51b   :  { %v2249_v29 = vmax.f32 %v2186_v28, %v2227_v3 }
 0x51c   :  { %v2189_v43 = vpop.f32.mrf.mxu1 }
 0x51d   :  { %v2260_v24 = vsel %vm2258_vm10, %v2249_v29, 0.0 }
 0x51e   :  { %v2261_v25 = vadd.f32 %v2260_v24, %v2259_v19 }
 0x522   :  { %v2230_v41 = vpop.f32.mrf.mxu2 }
 0x523   :  { %v2250_v56 = vmax.f32 %v2189_v43, %v2230_v41 }
 0x524   :  { %v2192_v63 = vpop.f32.mrf.mxu1 }
 0x525   :  { %v2262_v7 = vsel %vm2258_vm10, %v2250_v56, 0.0 }
 0x526   :  { %v2263_v61 = vadd.f32 %v2262_v7, %v2261_v25 }
 0x52a   :  { %v2233_v38 = vpop.f32.mrf.mxu2 }
 0x52b   :  { %v2251_v21 = vmax.f32 %v2192_v63, %v2233_v38 }
 0x52c   :  { %v2195_v46 = vpop.f32.mrf.mxu1 }
 0x52d   :  { %v2264_v26 = vsel %vm2258_vm10, %v2251_v21, 0.0 }
 0x52e   :  { %v2265_v55 = vadd.f32 %v2264_v26, %v2263_v61 }
 0x532   :  { %v2236_v23 = vpop.f32.mrf.mxu2 }
 0x533   :  { %v2252_v15 = vmax.f32 %v2195_v46, %v2236_v23 }
 0x534   :  { %v2198_v33 = vpop.f32.mrf.mxu1 }
 0x535   :  { %v2266_v10 = vsel %vm2258_vm10, %v2252_v15, 0.0 }
 0x536   :  { %v2267_v40 = vadd.f32 %v2266_v10, %v2265_v55 }
 0x53a   :  { %v2239_v30 = vpop.f32.mrf.mxu2 }
 0x53b   :  { %v2253_v39 = vmax.f32 %v2198_v33, %v2239_v30 }
 0x53c   :  { %v2201_v17 = vpop.f32.mrf.mxu1 }
 0x53d   :  { %v2268_v4 = vsel %vm2258_vm10, %v2253_v39, 0.0 }
 0x53e   :  { %v2269_v49 = vadd.f32 %v2268_v4, %v2267_v40 }
 0x542   :  { %v2242_v18 = vpop.f32.mrf.mxu2 }
 0x543   :  { %v2254_v62 = vmax.f32 %v2201_v17, %v2242_v18 }
 0x544   :  { %v2204_v20 = vpop.f32.mrf.mxu1 }
 0x545   :  { %v2270_v57 = vsel %vm2258_vm10, %v2254_v62, 0.0 }
 0x546   :  { %v2271_v50 = vadd.f32 %v2270_v57, %v2269_v49 }
 0x54a   :  { %v2245_v31 = vpop.f32.mrf.mxu2 }
 0x54b   :  { %v2255_v1 = vmax.f32 %v2204_v20, %v2245_v31 }
 0x54d   :  { %v2272_v59 = vsel %vm2258_vm10, %v2255_v1, 0.0 }
 0x54e   :  { %v2273_v2 = vadd.f32 %v2272_v59, %v2271_v50  ;;  %v2256_v50 = vld [vmem:[%s6701_s5] sm:$0x1] }
 0x550   :  { %v2274_v51 = vrot.slane %v2273_v2, 4 }
 0x552   :  { %v2275_v35 = vadd.f32 %v2274_v51, %v2273_v2 }
 0x554   :  { %v2276_v5 = vrot.slane %v2275_v35, 2 }
 0x556   :  { %v2277_v32 = vadd.f32 %v2276_v5, %v2275_v35  ;;  %v5814_v5 = vld [vmem:[%s6702_s6] ss:$0 sm:$0xff] }
 0x558   :  { %v2278_v16 = vrot.slane %v2277_v32, 1 }
 0x55a   :  { %v2279_v12 = vadd.f32 %v2278_v16, %v2277_v32 }
 0x55c   :  { %v2280_v14 = vmul.f32 0.015625, %v2279_v12 }
 0x55e   :  { %v2281_v6 = vsub.f32 %v2248_v27, %v2280_v14  ;;  %v2282_v53 = vsub.f32 %v2249_v29, %v2280_v14  ;;  %v2283_v60 = vsub.f32 %v2250_v56, %v2280_v14  ;;  %v5786_v0 = vsub.f32 %v2251_v21, %v2280_v14 }
 0x55f   :  { %v2285_v36 = vsub.f32 %v2252_v15, %v2280_v14  ;;  %v2286_v34 = vsub.f32 %v2253_v39, %v2280_v14  ;;  %v5792_v41 = vsub.f32 %v2254_v62, %v2280_v14  ;;  %v5795_v23 = vsub.f32 %v2255_v1, %v2280_v14 }
 0x560   :  { %v2289_v58 = vmul.f32 %v2281_v6, %v2281_v6  ;;  %v2290_v42 = vmul.f32 %v2282_v53, %v2282_v53  ;;  %v2291_v44 = vmul.f32 %v2283_v60, %v2283_v60  ;;  %v2292_v11 = vmul.f32 %v5786_v0, %v5786_v0 }
 0x561   :  { %v2293_v63 = vmul.f32 %v2285_v36, %v2285_v36  ;;  %v2294_v33 = vmul.f32 %v2286_v34, %v2286_v34  ;;  %v2295_v27 = vmul.f32 %v5792_v41, %v5792_v41  ;;  %v2296_v24 = vmul.f32 %v5795_v23, %v5795_v23 }
 0x562   :  { %v2297_v28 = vsel %vm2258_vm10, %v2289_v58, 0.0  ;;  %v2298_v3 = vsel %vm2258_vm10, %v2290_v42, 0.0  ;;  %v2300_v38 = vsel %vm2258_vm10, %v2291_v44, 0.0  ;;  %v2302_v30 = vsel %vm2258_vm10, %v2292_v11, 0.0 }
 0x563   :  { %v2299_v43 = vadd.f32 %v2298_v3, %v2297_v28  ;;  %v2304_v56 = vsel %vm2258_vm10, %v2293_v63, 0.0  ;;  %v2306_v21 = vsel %vm2258_vm10, %v2294_v33, 0.0  ;;  %v2308_v7 = vsel %vm2258_vm10, %v2295_v27, 0.0 }
 0x564   :  { %v2310_v25 = vsel %vm2258_vm10, %v2296_v24, 0.0 }
 0x565   :  { %v2301_v46 = vadd.f32 %v2300_v38, %v2299_v43 }
 0x567   :  { %v2303_v29 = vadd.f32 %v2302_v30, %v2301_v46 }
 0x569   :  { %v2305_v17 = vadd.f32 %v2304_v56, %v2303_v29 }
 0x56b   :  { %v2307_v19 = vadd.f32 %v2306_v21, %v2305_v17 }
 0x56d   :  { %v2309_v15 = vadd.f32 %v2308_v7, %v2307_v19 }
 0x56f   :  { %v2311_v18 = vadd.f32 %v2310_v25, %v2309_v15 }
 0x571   :  { %v2312_v26 = vrot.slane %v2311_v18, 4 }
 0x573   :  { %v2313_v39 = vadd.f32 %v2312_v26, %v2311_v18 }
 0x575   :  { %v2314_v61 = vrot.slane %v2313_v39, 2 }
 0x577   :  { %v2315_v10 = vadd.f32 %v2314_v61, %v2313_v39 }
 0x579   :  { %v2316_v62 = vrot.slane %v2315_v10, 1 }
 0x57b   :  { %v2317_v55 = vadd.f32 %v2316_v62, %v2315_v10 }
 0x57d   :  { %v2318_v4 = vmul.f32 0.015625, %v2317_v55 }
 0x57f   :  { %v2319_v40 = vadd.f32 1e-05, %v2318_v4 }
 0x581   :  { %3683 = vrsqrt.f32 %v2319_v40  ;;  %vm2326_vm9 = vweird.f32 %v2319_v40 }
 0x587   :  { %v3684_v20 = vpop.eup %3683 }
 0x588   :  { %v2321_v57 = vmul.f32 %v3684_v20, %v2319_v40  ;;  %vm2327_vm7 = vweird.f32 %v3684_v20 }
 0x589   :  { %vm2328_vm15 = vmor %vm2326_vm9, %vm2327_vm7 }
 0x58a   :  { %v2322_v49 = vmul.f32 %v3684_v20, %v2321_v57  ;;  %vm6856_vm7 = vmmov %vm6855_vm12 }
 0x58b   :  { %vm6857_vm9 = vmmov %vm6854_vm2 }
 0x58c   :  { %v2323_v31 = vmul.f32 0.5, %v2322_v49 }
 0x58e   :  { %v2324_v1 = vsub.f32 1.5, %v2323_v31 }
 0x590   :  { %v2325_v59 = vmul.f32 %v3684_v20, %v2324_v1 }
 0x592   :  { %v2329_v2 = vsel %vm2328_vm15, %v3684_v20, %v2325_v59  ;;  %vm6858_vm15 = vmmov %vm6854_vm2 }
 0x593   :  { %v2330_v51 = vmul.f32 %v2329_v2, %v2256_v50 }
 0x595   :  { %v5809_v35 = vperm.slane %v2330_v51, 0 }
 0x597   :  { %v2334_v32 = vmul.f32 %v5809_v35, %v2281_v6  ;;  %v2335_v16 = vmul.f32 %v5809_v35, %v2282_v53  ;;  %v2336_v12 = vmul.f32 %v5809_v35, %v2283_v60  ;;  %v2338_v14 = vmul.f32 %v5809_v35, %v2285_v36 }
 0x598   :  { %v2339_v36 = vmul.f32 %v5809_v35, %v2286_v34  ;;  %v2340_v33 = vmul.f32 %v5809_v35, %v5792_v41 }
 0x599   :  { %v5821_v58 = vadd.f32 %v5814_v5, %v2334_v32  ;;  %v5824_v42 = vadd.f32 %v5814_v5, %v2335_v16  ;;  %v5827_v44 = vadd.f32 %v5814_v5, %v2336_v12  ;;  %v5830_v11 = vadd.f32 %v5814_v5, %v2338_v14 }
 0x59a   :  { %v5873_v27 = vadd.f32 %v5814_v5, %v2339_v36  ;;  %v5892_v7 = vadd.f32 %v5814_v5, %v2340_v33 }
 0x59b   :  { %2466 = vrot.lane.b32.xlu0 %v5821_v58, %s3719_s29  ;;  %v2430_v6 = vrot.slane %v5821_v58, 7  ;;  %2479 = vrot.lane.b32.xlu1 %v5830_v11, %s3719_s29  ;;  %v2573_v53 = vrot.slane %v5824_v42, 3  ;;  %v2431_v60 = vrot.slane %v5824_v42, 7  ;;  %v2493_v28 = vrot.slane %v5824_v42, 1 }
 0x59c   :  { %v2433_v3 = vrot.slane %v5827_v44, 7  ;;  %v2575_v43 = vrot.slane %v5827_v44, 3  ;;  %v2667_v63 = vrot.slane %v5824_v42, 5  ;;  %v2495_v38 = vrot.slane %v5827_v44, 1 }
 0x59d   :  { %2435 = vrot.lane.b32.xlu2 %v2430_v6, %s3716_s0  ;;  %v2669_v29 = vrot.slane %v5827_v44, 5  ;;  %v2620_v56 = vrot.slane %v5824_v42, 4  ;;  %v2572_v17 = vrot.slane %v5821_v58, 3  ;;  %v2622_v24 = vrot.slane %v5827_v44, 4 }
 0x59e   :  { %v5853_v46 = vsel %vm932_vm14, %v2431_v60, %v2433_v3  ;;  %v5860_v34 = vsel %vm419_vm0, %v2573_v53, %v2575_v43  ;;  %v5869_v30 = vsel %vm1075_vm1, %v2493_v28, %v2495_v38  ;;  %v2596_v21 = vrot.slane %v5830_v11, 3 }
 0x59f   :  { %v5884_v41 = vsel %vm1463_vm13, %v2667_v63, %v2669_v29  ;;  %v2690_v19 = vrot.slane %v5830_v11, 5  ;;  %v5902_v15 = vsel %vm6850_vm3, %v2620_v56, %v2622_v24  ;;  %v2643_v25 = vrot.slane %v5830_v11, 4  ;;  %vm6859_vm3 = vmmov %vm6856_vm7 }
 0x5a0   :  { %v2404_v18 = vrot.slane %v5821_v58, 6  ;;  %v2597_v26 = vrot.slane %v5873_v27, 3  ;;  %v2691_v39 = vrot.slane %v5873_v27, 5  ;;  %v2541_v61 = vrot.slane %v5821_v58, 2 }
 0x5a1   :  { %v2644_v55 = vrot.slane %v5873_v27, 4  ;;  %v2599_v4 = vrot.slane %v5892_v7, 3  ;;  %v2646_v40 = vrot.slane %v5892_v7, 4  ;;  %v6762_v57 = vrot.slane %v5892_v7, 5 }
 0x5a2   :  { %2413 = vst.msk [vmem:[#allocation3 + $0x30] sm:$0xfc] %vm2412_vm4, %v2404_v18  ;;  %v5913_v10 = vsel %vm419_vm0, %v2596_v21, %v2597_v26  ;;  %v5918_v62 = vsel %vm1463_vm13, %v2690_v19, %v2691_v39  ;;  %v2419_v49 = vrot.slane %v5830_v11, 6  ;;  %v2518_v31 = vrot.slane %v5830_v11, 1 }
 0x5a3   :  { %2468 = vrot.lane.b32.xlu0 %v5824_v42, %s3719_s29  ;;  %2481 = vrot.lane.b32.xlu1 %v5873_v27, %s3719_s29  ;;  %2716 = vst.msk [vmem:[#allocation3 + $0x10] sm:$0xfc] %vm2412_vm4, %v2404_v18  ;;  %v5928_v20 = vsel %vm6851_vm5, %v2643_v25, %v2644_v55  ;;  %v5938_v1 = vsel %vm419_vm0, %v2597_v26, %v2599_v4  ;;  %v2405_v2 = vrot.slane %v5824_v42, 6  ;;  %v2407_v51 = vrot.slane %v5827_v44, 6  ;;  %vm6862_vm5 = vmmov %vm6854_vm2 }
 0x5a4   :  { %2553 = vst.msk [vmem:[#allocation3 + $0x8] sm:$0xc0] %vm2552_vm6, %v2541_v61  ;;  %v5943_v50 = vsel %vm6852_vm8, %v2644_v55, %v2646_v40  ;;  %v5950_v59 = vsel %vm1463_vm13, %v2691_v39, %v6762_v57  ;;  %v2542_v32 = vrot.slane %v5824_v42, 2  ;;  %v2544_v12 = vrot.slane %v5827_v44, 2  ;;  %vm6863_vm8 = vmmov %vm6859_vm3 }
 0x5a5   :  { %2579 = vrot.lane.b32.xlu2 %v2572_v17, %s3716_s0  ;;  %2427 = vst.msk [vmem:[#allocation3 + $0xf0] sm:$0xfc] %vm2412_vm4, %v2419_v49  ;;  %v2406_v16 = vsel %vm6853_vm11, %v2404_v18, %v2405_v2  ;;  %v2408_v14 = vsel %vm6854_vm2, %v2405_v2, %v2407_v51  ;;  %v2619_v33 = vrot.slane %v5821_v58, 4  ;;  %v2557_v26 = vrot.slane %v5830_v11, 2 }
 0x5a6   :  { %2723 = vst.msk [vmem:[#allocation3 + $0xd0] sm:$0xfc] %vm2412_vm4, %v2419_v49  ;;  %v2545_v36 = vsel %vm6855_vm12, %v2542_v32, %v2544_v12  ;;  %v2420_v18 = vrot.slane %v5873_v27, 6  ;;  %v2337_v39 = vmul.f32 %v5809_v35, %v5786_v0  ;;  %v2492_v55 = vrot.slane %v5821_v58, 1  ;;  %vm6860_vm4 = vmmov %vm6859_vm3 }
 0x5a7   :  { %2414 = vst.msk [vmem:[#allocation3 + $0x60] sm:$0xff] %vm2258_vm10, %v2406_v16  ;;  %v2449_v2 = vrot.slane %v5830_v11, 7  ;;  %vm2778_vm11 = vcmask 259072   ;;  %vm2834_vm2 = vcmask 254976   ;;  %vm6864_vm12 = vmmov %vm6862_vm5 }
 0x5a8   :  { %2717 = vst.msk [vmem:[#allocation3 + $0x40] sm:$0xff] %vm2258_vm10, %v2406_v16  ;;  %v2421_v0 = vsel %vm6857_vm9, %v2419_v49, %v2420_v18  ;;  %v5990_v57 = vadd.f32 %v5814_v5, %v2337_v39  ;;  %v2341_v39 = vmul.f32 %v5809_v35, %v5795_v23 }
 0x5a9   :  { %2831 = vst.msk [vmem:[#allocation3 + $0x20] sm:$0xff] %vm2258_vm10, %v2406_v16  ;;  %v2543_v16 = vsel %vm6856_vm7, %v2541_v61, %v2542_v32  ;;  %v2422_v61 = vrot.slane %v5892_v7, 6  ;;  %v2666_v32 = vrot.slane %v5821_v58, 5  ;;  %vm6865_vm7 = vcmask 1043456  }
 0x5aa   :  { %2415 = vst.msk [vmem:[#allocation3 + $0x90] sm:$0xff] %vm2258_vm10, %v2408_v14  ;;  %v6019_v23 = vadd.f32 %v5814_v5, %v2341_v39  ;;  %v2432_v5 = vsel %vm932_vm14, %v2430_v6, %v2431_v60  ;;  %v2621_v11 = vsel %vm6865_vm7, %v2619_v33, %v2620_v56  ;;  %v2671_v58 = vrot.slane %v5990_v57, 5  ;;  %v2937_v56 = vld [vmem:[%s6703_s7 + $0x78] sm:$0xff]  ;;  %vm6866_vm9 = vmmov %vm6865_vm7 }
 0x5ab   :  { %2470 = vrot.lane.b32.xlu0 %v5827_v44, %s3719_s29  ;;  %2483 = vrot.lane.b32.xlu1 %v5892_v7, %s3719_s29  ;;  %2718 = vst.msk [vmem:[#allocation3 + $0x70] sm:$0xff] %vm2258_vm10, %v2408_v14  ;;  %v2423_v49 = vsel %vm6858_vm15, %v2420_v18, %v2422_v61  ;;  %v2668_v60 = vsel %vm1463_vm13, %v2666_v32, %v2667_v63  ;;  %v2519_v63 = vrot.slane %v5873_v27, 1  ;;  %vm2444_vm15 = vcmask 523521   ;;  %v2933_v39 = vld [vmem:[%s6703_s7 + $0x58] sm:$0xff]  ;;  %v2948_v44 = vld [vmem:[%s6703_s7 + $0xd0] sm:$0xff] }
 0x5ac   :  { %2832 = vst.msk [vmem:[#allocation3 + $0x50] sm:$0xff] %vm2258_vm10, %v2408_v14  ;;  %v2546_v14 = vrot.slane %v5990_v57, 2  ;;  %3034 = vmatpush.msra.mxu3 %v2937_v56  ;;  %v2695_v56 = vrot.slane %v6019_v23, 5 }
 0x5ad   :  { %2525 = vrot.lane.b32.xlu2 %v2518_v31, %s3721_s12  ;;  %2568 = vst.msk [vmem:[#allocation3 + $0xc8] sm:$0xc0] %vm2552_vm6, %v2557_v26  ;;  %vm6861_vm6 = vmmov %vm6859_vm3 }
 0x5ae   :  { %2554 = vst.msk [vmem:[#allocation3 + $0x38] sm:$0xff] %vm2258_vm10, %v2543_v16  ;;  %v2547_v18 = vsel %vm6859_vm3, %v2544_v12, %v2546_v14  ;;  %v2713_v12 = vrot.slane %v5990_v57, 6  ;;  %vm2511_vm3 = vcmask 1048327  }
 0x5af   :  { %2775 = vst.msk [vmem:[#allocation3 + $0x18] sm:$0xff] %vm2258_vm10, %v2543_v16  ;;  %v2558_v16 = vrot.slane %v5873_v27, 2 }
 0x5b0   :  { %2428 = vst.msk [vmem:[#allocation3 + $0x120] sm:$0xff] %vm2258_vm10, %v2421_v0 }
 0x5b1   :  { %2724 = vst.msk [vmem:[#allocation3 + $0x100] sm:$0xff] %vm2258_vm10, %v2421_v0 }
 0x5b2   :  { %2837 = vst.msk [vmem:[#allocation3 + $0xe0] sm:$0xff] %vm2258_vm10, %v2421_v0  ;;  %v2521_v0 = vrot.slane %v5892_v7, 1 }
 0x5b3   :  { %2626 = vrot.lane.b32.xlu0 %v2619_v33, %s3719_s29  ;;  %2499 = vrot.lane.b32.xlu1 %v2492_v55, %s3721_s12  ;;  %2555 = vst.msk [vmem:[#allocation3 + $0x68] sm:$0xff] %vm2258_vm10, %v2545_v36  ;;  %v2523_v33 = vrot.slane %v6019_v23, 1 }
 0x5b4   :  { %2776 = vst.msk [vmem:[#allocation3 + $0x48] sm:$0xff] %vm2258_vm10, %v2545_v36 }
 0x5b5   :  { %2454 = vrot.lane.b32.xlu2 %v2449_v2, %s3716_s0  ;;  %2868 = vst.msk [vmem:[#allocation3 + $0x28] sm:$0xff] %vm2258_vm10, %v2545_v36  ;;  %v2720_v36 = vrot.slane %v6019_v23, 6 }
 0x5b6   :  { %2429 = vst.msk [vmem:[#allocation3 + $0x150] sm:$0xff] %vm2258_vm10, %v2423_v49 }
 0x5b7   :  { %2725 = vst.msk [vmem:[#allocation3 + $0x130] sm:$0xff] %vm2258_vm10, %v2423_v49 }
 0x5b8   :  { %2838 = vst.msk [vmem:[#allocation3 + $0x110] sm:$0xff] %vm2258_vm10, %v2423_v49 }
 0x5b9   :  { %2556 = vst.msk [vmem:[#allocation3 + $0x98] sm:$0xff] %vm2258_vm10, %v2547_v18 }
 0x5ba   :  { %2777 = vst.msk [vmem:[#allocation3 + $0x78] sm:$0xff] %vm2258_vm10, %v2547_v18 }
 0x5bb   :  { %2603 = vrot.lane.b32.xlu0 %v2596_v21, %s3716_s0  ;;  %2673 = vrot.lane.b32.xlu1 %v2666_v32, %s3721_s12  ;;  %v2560_v21 = vrot.slane %v5892_v7, 2  ;;  %2869 = vst.msk [vmem:[#allocation3 + $0x58] sm:$0xff] %vm2258_vm10, %v2547_v18  ;;  %v2935_v32 = vld [vmem:[%s6703_s7 + $0x68] sm:$0xff]  ;;  %v2932_v18 = vld [vmem:[%s6703_s7 + $0x50] sm:$0xff] }
 0x5bc   :  { %2779 = vst.msk [vmem:[#allocation3 + $0xa8] sm:$0x3f] %vm2778_vm11, %v2546_v14 }
 0x5bd   :  { %2697 = vrot.lane.b32.xlu2 %v2690_v19, %s3721_s12  ;;  %v2561_v35 = vsel %vm6860_vm4, %v2558_v16, %v2560_v21  ;;  %v2574_v19 = vsel %vm419_vm0, %v2572_v17, %v2573_v53  ;;  %v2559_v53 = vsel %vm6861_vm6, %v2557_v26, %v2558_v16  ;;  %v2562_v17 = vrot.slane %v6019_v23, 2  ;;  %2870 = vst.msk [vmem:[#allocation3 + $0x88] sm:$0x3f] %vm2778_vm11, %v2546_v14  ;;  %v2953_v14 = vld [vmem:[%s6703_s7 + $0xf8] sm:$0xff]  ;;  %v2952_v16 = vld [vmem:[%s6703_s7 + $0xf0] sm:$0xff] }
 0x5be   :  { %2570 = vst.msk [vmem:[#allocation3 + $0x128] sm:$0xff] %vm2258_vm10, %v2561_v35  ;;  %v2497_v26 = vrot.slane %v5990_v57, 1  ;;  %3075 = vmatpush.msrb.mxu1 %v2953_v14  ;;  %vm2475_vm4 = vcmask 785920   ;;  %v3000_v14 = vld [vmem:[%s6703_s7 + $0x270] sm:$0xff]  ;;  %vm2638_vm6 = vcmask 785924  }
 0x5bf   :  { %2782 = vst.msk [vmem:[#allocation3 + $0x108] sm:$0xff] %vm2258_vm10, %v2561_v35  ;;  %v2563_v6 = vsel %vm6863_vm8, %v2560_v21, %v2562_v17  ;;  %v2951_v21 = vld [vmem:[%s6703_s7 + $0xe8] sm:$0xff]  ;;  %vm2765_vm8 = vcmask 1047296  }
 0x5c0   :  { %2871 = vst.msk [vmem:[#allocation3 + $0xe8] sm:$0xff] %vm2258_vm10, %v2561_v35  ;;  %3076 = vmatpush.msrb.mxu1 %v2952_v16  ;;  %v2931_v35 = vld [vmem:[%s6703_s7 + $0x48] sm:$0xff] }
 0x5c1   :  { %2569 = vst.msk [vmem:[#allocation3 + $0xf8] sm:$0xff] %vm2258_vm10, %v2559_v53  ;;  %v2963_v16 = vld [vmem:[%s6703_s7 + $0x148] sm:$0xff] }
 0x5c2   :  { %2781 = vst.msk [vmem:[#allocation3 + $0xd8] sm:$0xff] %vm2258_vm10, %v2559_v53  ;;  %3077 = vmatpush.msrb.mxu1 %v2951_v21  ;;  %v2999_v21 = vld [vmem:[%s6703_s7 + $0x268] sm:$0xff] }
 0x5c3   :  { %2581 = vrot.lane.b32.xlu0 %v2574_v19, %s3716_s0  ;;  %2650 = vrot.lane.b32.xlu1 %v2643_v25, %s3719_s29  ;;  %v2714_v25 = vsel %vm6862_vm5, %v2407_v51, %v2713_v12  ;;  %v2494_v51 = vsel %vm1075_vm1, %v2492_v55, %v2493_v28  ;;  %2571 = vst.msk [vmem:[#allocation3 + $0x158] sm:$0xff] %vm2258_vm10, %v2563_v6  ;;  %v2450_v55 = vrot.slane %v5873_v27, 7  ;;  %v2950_v19 = vld [vmem:[%s6703_s7 + $0xe0] sm:$0xff]  ;;  %vm2513_vm5 = vcmask 1048320  }
 0x5c4   :  { %2719 = vst.msk [vmem:[#allocation3 + $0xa0] sm:$0xff] %vm2258_vm10, %v2714_v25  ;;  %v2721_v28 = vsel %vm6864_vm12, %v2422_v61, %v2720_v36  ;;  %v2936_v61 = vld [vmem:[%s6703_s7 + $0x70] sm:$0xff]  ;;  %3078 = vmatpush.msrb.mxu1 %v2950_v19  ;;  %vm2806_vm12 = vcmask 781824  }
 0x5c5   :  { %2437 = vrot.lane.b32.xlu2 %v2432_v5, %s3716_s0  ;;  %2833 = vst.msk [vmem:[#allocation3 + $0x80] sm:$0xff] %vm2258_vm10, %v2714_v25  ;;  %3035 = vmatpush.msra.mxu3 %v2936_v61  ;;  %v2949_v5 = vld [vmem:[%s6703_s7 + $0xd8] sm:$0xff]  ;;  %v2928_v25 = vld [vmem:[%s6703_s7 + $0x30] sm:$0xff] }
 0x5c6   :  { %2783 = vst.msk [vmem:[#allocation3 + $0x138] sm:$0xff] %vm2258_vm10, %v2563_v6  ;;  %3079 = vmatpush.msrb.mxu1 %v2949_v5  ;;  %v2965_v61 = vld [vmem:[%s6703_s7 + $0x158] sm:$0xff]  ;;  %v2998_v5 = vld [vmem:[%s6703_s7 + $0x260] sm:$0xff] }
 0x5c7   :  { %2872 = vst.msk [vmem:[#allocation3 + $0x118] sm:$0xff] %vm2258_vm10, %v2563_v6  ;;  %3036 = vmatpush.msra.mxu3 %v2935_v32  ;;  %v2601_v6 = vrot.slane %v6019_v23, 3  ;;  %v2941_v32 = vld [vmem:[%s6703_s7 + $0x98] sm:$0xff] }
 0x5c8   :  { %2873 = vst.msk [vmem:[#allocation3 + $0x148] sm:$0x3f] %vm2778_vm11, %v2562_v17  ;;  %3080 = vmatpush.msrb.mxu1 %v2948_v44 }
 0x5c9   :  { %2784 = vst.msk [vmem:[#allocation3 + $0x168] sm:$0x3f] %vm2778_vm11, %v2562_v17  ;;  %v2929_v17 = vld [vmem:[%s6703_s7 + $0x38] sm:$0xff]  ;;  %vm2791_vm11 = vcmask 520448  }
 0x5ca   :  { %2835 = vst.msk [vmem:[#allocation3 + $0xb0] sm:$0x3] %vm2834_vm2, %v2713_v12  ;;  %v2727_v12 = vrot.slane %v5990_v57, 7 }
 0x5cb   :  { %2675 = vrot.lane.b32.xlu0 %v2668_v60, %s3721_s12  ;;  %2501 = vrot.lane.b32.xlu1 %v2494_v51, %s3721_s12  ;;  %2726 = vst.msk [vmem:[#allocation3 + $0x160] sm:$0xff] %vm2258_vm10, %v2721_v28  ;;  %v2926_v60 = vld [vmem:[%s6703_s7 + $0x20] sm:$0xff] }
 0x5cc   :  { %2839 = vst.msk [vmem:[#allocation3 + $0x140] sm:$0xff] %vm2258_vm10, %v2721_v28  ;;  %v2946_v51 = vld [vmem:[%s6703_s7 + $0xc0] sm:$0xff]  ;;  %v2602_v28 = vsel %vm419_vm0, %v2599_v4, %v2601_v6  ;;  %v2924_v4 = vld [vmem:[%s6703_s7 + $0x10] sm:$0xff] }
 0x5cd   :  { %2439 = vrot.lane.b32.xlu2 %v5853_v46, %s3716_s0  ;;  %v2520_v46 = vsel %vm1075_vm1, %v2518_v31, %v2519_v63  ;;  %2840 = vst.msk [vmem:[#allocation3 + $0x170] sm:$0x3] %vm2834_vm2, %v2720_v36  ;;  %v2577_v31 = vrot.slane %v5990_v57, 3  ;;  %v2969_v36 = vld [vmem:[%s6703_s7 + $0x178] sm:$0xff]  ;;  %vm2847_vm2 = vcmask 516352  }
 0x5ce   :  { %3116 = vmatpush.msrb.mxu2 %v2969_v36  ;;  %v2957_v36 = vld [vmem:[%s6703_s7 + $0x118] sm:$0xff] }
 0x5cf   :  { %v2578_v27 = vsel %vm419_vm0, %v2575_v43, %v2577_v31  ;;  %v2624_v43 = vrot.slane %v5990_v57, 4  ;;  %vm6867_vm0 = vmmov %vm6865_vm7  ;;  %vm2821_vm7 = vcmask 1043200  }
 0x5d3   :  { %2583 = vrot.lane.b32.xlu0 %v5860_v34, %s3716_s0  ;;  %2503 = vrot.lane.b32.xlu1 %v5869_v30, %s3721_s12  ;;  %v2498_v34 = vsel %vm1075_vm1, %v2495_v38, %v2497_v26  ;;  %v2451_v30 = vsel %vm932_vm14, %v2449_v2, %v2450_v55  ;;  %v2522_v38 = vsel %vm1075_vm1, %v2519_v63, %v2521_v0  ;;  %v2925_v63 = vld [vmem:[%s6703_s7 + $0x18] sm:$0xff] }
 0x5d4   :  { %v2625_v2 = vsel %vm6866_vm9, %v2622_v24, %v2624_v43  ;;  %v2934_v24 = vld [vmem:[%s6703_s7 + $0x60] sm:$0xff]  ;;  %vm6870_vm9 = vcmp.eq.s32.totalorder %v3988_v8, %v4163_v52 }
 0x5d5   :  { %2527 = vrot.lane.b32.xlu2 %v2520_v46, %s3721_s12  ;;  %3037 = vmatpush.msra.mxu3 %v2934_v24  ;;  %v2945_v46 = vld [vmem:[%s6703_s7 + $0xb8] sm:$0xff]  ;;  %v2964_v24 = vld [vmem:[%s6703_s7 + $0x150] sm:$0xff] }
 0x5d7   :  { %3038 = vmatpush.msra.mxu3 %v2933_v39 }
 0x5d9   :  { %3039 = vmatpush.msra.mxu3 %v2932_v18 }
 0x5db   :  { %2677 = vrot.lane.b32.xlu0 %v5884_v41, %s3721_s12  ;;  %2505 = vrot.lane.b32.xlu1 %v2498_v34, %s3721_s12  ;;  %v2452_v41 = vrot.slane %v5892_v7, 7  ;;  %v2968_v34 = vld [vmem:[%s6703_s7 + $0x170] sm:$0xff] }
 0x5dc   :  { %3040 = vmatpush.msra.mxu3 %v2931_v35  ;;  %3117 = vmatpush.msrb.mxu2 %v2968_v34  ;;  %v2939_v35 = vld [vmem:[%s6703_s7 + $0x88] sm:$0xff]  ;;  %v2990_v34 = vld [vmem:[%s6703_s7 + $0x220] sm:$0xff] }
 0x5dd   :  { %2456 = vrot.lane.b32.xlu2 %v2451_v30, %s3716_s0  ;;  %v2453_v42 = vsel %vm932_vm14, %v2450_v55, %v2452_v41  ;;  %v2944_v55 = vld [vmem:[%s6703_s7 + $0xb0] sm:$0xff] }
 0x5e3   :  { %2585 = vrot.lane.b32.xlu0 %v2578_v27, %s3716_s0  ;;  %2628 = vrot.lane.b32.xlu1 %v2621_v11, %s3719_s29  ;;  %v2648_v11 = vrot.slane %v6019_v23, 4 }
 0x5e5   :  { %2529 = vrot.lane.b32.xlu2 %v2522_v38, %s3721_s12  ;;  %v2922_v38 = vld [vmem:[%s6703_s7] sm:$0xff] }
 0x5eb   :  { %2759 = vrot.lane.b32.xlu0 %v2497_v26, %s3721_s12  ;;  %2630 = vrot.lane.b32.xlu1 %v5902_v15, %s3719_s29  ;;  %v2672_v15 = vsel %vm1463_vm13, %v2669_v29, %v2671_v58  ;;  %v2524_v29 = vsel %vm1075_vm1, %v2521_v0, %v2523_v33  ;;  %vm2591_vm1 = vcmask 523525   ;;  %v2967_v0 = vld [vmem:[%s6703_s7 + $0x168] sm:$0xff] }
 0x5ec   :  { %3118 = vmatpush.msrb.mxu2 %v2967_v0 }
 0x5ed   :  { %2458 = vrot.lane.b32.xlu2 %v2453_v42, %s3716_s0  ;;  %v2966_v42 = vld [vmem:[%s6703_s7 + $0x160] sm:$0xff] }
 0x5ee   :  { %3119 = vmatpush.msrb.mxu2 %v2966_v42 }
 0x5f0   :  { %3120 = vmatpush.msrb.mxu2 %v2965_v61 }
 0x5f2   :  { %3121 = vmatpush.msrb.mxu2 %v2964_v24  ;;  %v2984_v24 = vld [vmem:[%s6703_s7 + $0x1f0] sm:$0xff] }
 0x5f3   :  { %2679 = vrot.lane.b32.xlu0 %v2672_v15, %s3721_s12  ;;  %2632 = vrot.lane.b32.xlu1 %v2625_v2, %s3719_s29  ;;  %v2942_v15 = vld [vmem:[%s6703_s7 + $0xa0] sm:$0xff]  ;;  %v3001_v2 = vld [vmem:[%s6703_s7 + $0x278] sm:$0xff] }
 0x5f4   :  { %3198 = vmatpush.msra.mxu0 %v3001_v2  ;;  %3122 = vmatpush.msrb.mxu2 %v2963_v16 }
 0x5f5   :  { %2531 = vrot.lane.b32.xlu2 %v2524_v29, %s3721_s12  ;;  %v2649_v29 = vsel %vm6867_vm0, %v2646_v40, %v2648_v11  ;;  %v2940_v40 = vld [vmem:[%s6703_s7 + $0x90] sm:$0xff]  ;;  %vm6874_vm0 = vcmp.eq.s32.totalorder %v3988_v8, %v6826_v48 }
 0x5f6   :  { %3199 = vmatpush.msra.mxu0 %v3000_v14  ;;  %v2983_v14 = vld [vmem:[%s6703_s7 + $0x1e8] sm:$0xff] }
 0x5f7   :  { %v2436_v49 = vpop.permute.xlu2 %2435 }
 0x5f8   :  { %2445 = vst.msk [vmem:[#allocation3 + $0x30] sm:$0xfe] %vm2444_vm15, %v2436_v49  ;;  %3200 = vmatpush.msra.mxu0 %v2999_v21 }
 0x5f9   :  { %2732 = vst.msk [vmem:[#allocation3 + $0x10] sm:$0xfe] %vm2444_vm15, %v2436_v49 }
 0x5fa   :  { %3201 = vmatpush.msra.mxu0 %v2998_v5 }
 0x5fb   :  { %2605 = vrot.lane.b32.xlu0 %v5913_v10, %s3716_s0  ;;  %2745 = vrot.lane.b32.xlu1 %v5990_v57, %s3719_s29  ;;  %v2930_v10 = vld [vmem:[%s6703_s7 + $0x40] sm:$0xff]  ;;  %v2959_v57 = vld [vmem:[%s6703_s7 + $0x128] sm:$0xff] }
 0x5fc   :  { %3041 = vmatpush.msra.mxu3 %v2930_v10  ;;  %v2962_v10 = vld [vmem:[%s6703_s7 + $0x140] sm:$0xff] }
 0x5fd   :  { %2699 = vrot.lane.b32.xlu2 %v5918_v62, %s3721_s12  ;;  %v2728_v62 = vsel %vm932_vm14, %v2433_v3, %v2727_v12  ;;  %v2927_v3 = vld [vmem:[%s6703_s7 + $0x28] sm:$0xff]  ;;  %3123 = vmatpush.msrb.mxu2 %v2962_v10 }
 0x5fe   :  { %3042 = vmatpush.msra.mxu3 %v2929_v17  ;;  %v2961_v17 = vld [vmem:[%s6703_s7 + $0x138] sm:$0xff] }
 0x5ff   :  { %v2580_v53 = vpop.permute.xlu2 %2579  ;;  %3124 = vmatpush.msrb.mxu2 %v2961_v17 }
 0x600   :  { %2592 = vst.msk [vmem:[#allocation3 + $0x8] sm:$0xe0] %vm2591_vm1, %v2580_v53  ;;  %3043 = vmatpush.msra.mxu3 %v2928_v25  ;;  %v2938_v53 = vld [vmem:[%s6703_s7 + $0x80] sm:$0xff] }
 0x602   :  { %3044 = vmatpush.msra.mxu3 %v2927_v3 }
 0x603   :  { %2729 = vrot.lane.b32.xlu0 %v2728_v62, %s3716_s0  ;;  %2652 = vrot.lane.b32.xlu1 %v5928_v20, %s3719_s29  ;;  %v2947_v20 = vld [vmem:[%s6703_s7 + $0xc8] sm:$0xff]  ;;  %v2997_v62 = vld [vmem:[%s6703_s7 + $0x258] sm:$0xff] }
 0x604   :  { %3081 = vmatpush.msrb.mxu1 %v2947_v20  ;;  %3045 = vmatpush.msra.mxu3 %v2926_v60  ;;  %v2736_v20 = vrot.slane %v6019_v23, 7  ;;  %v2994_v60 = vld [vmem:[%s6703_s7 + $0x240] sm:$0xff] }
 0x605   :  { %2607 = vrot.lane.b32.xlu2 %v5938_v1, %s3716_s0  ;;  %3202 = vmatpush.msra.mxu0 %v2997_v62 }
 0x606   :  { %3082 = vmatpush.msrb.mxu1 %v2946_v51  ;;  %3046 = vmatpush.msra.mxu3 %v2925_v63  ;;  %v2737_v51 = vsel %vm932_vm14, %v2452_v41, %v2736_v20  ;;  %vm2685_vm14 = vcmask 1048323  }
 0x607   :  { %v2526_v1 = vpop.permute.xlu2 %2525 }
 0x608   :  { %2537 = vst.msk [vmem:[#allocation3 + $0xc0] sm:$0x80] %vm2511_vm3, %v2526_v1  ;;  %3083 = vmatpush.msrb.mxu1 %v2945_v46  ;;  %3047 = vmatpush.msra.mxu3 %v2924_v4  ;;  %v2958_v1 = vld [vmem:[%s6703_s7 + $0x120] sm:$0xff]  ;;  %v2991_v4 = vld [vmem:[%s6703_s7 + $0x228] sm:$0xff] }
 0x60a   :  { %3084 = vmatpush.msrb.mxu1 %v2944_v55  ;;  %v2954_v55 = vld [vmem:[%s6703_s7 + $0x100] sm:$0xff] }
 0x60b   :  { %2609 = vrot.lane.b32.xlu0 %v2602_v28, %s3716_s0  ;;  %2654 = vrot.lane.b32.xlu1 %v5943_v50, %s3719_s29  ;;  %v2923_v50 = vld [vmem:[%s6703_s7 + $0x8] sm:$0xff]  ;;  %v2992_v28 = vld [vmem:[%s6703_s7 + $0x230] sm:$0xff] }
 0x60c   :  { %3048 = vmatpush.msra.mxu3 %v2923_v50 }
 0x60d   :  { %v2467_v26 = vpop.permute.xlu0 %2466  ;;  %2701 = vrot.lane.b32.xlu2 %v5950_v59, %s3721_s12  ;;  %v2480_v30 = vpop.permute.xlu1 %2479  ;;  %v2943_v59 = vld [vmem:[%s6703_s7 + $0xa8] sm:$0xff] }
 0x60e   :  { %2476 = vst.msk [vmem:[#allocation3 + $0x30] sm:$0xff] %vm2475_vm4, %v2467_v26  ;;  %3085 = vmatpush.msrb.mxu1 %v2943_v59  ;;  %3049 = vmatpush.msra.mxu3 %v2922_v38  ;;  %v2986_v38 = vld [vmem:[%s6703_s7 + $0x200] sm:$0xff] }
 0x60f   :  { %2748 = vst.msk [vmem:[#allocation3 + $0x10] sm:$0xff] %vm2475_vm4, %v2467_v26  ;;  %v2455_v27 = vpop.permute.xlu2 %2454  ;;  %v2955_v26 = vld [vmem:[%s6703_s7 + $0x108] sm:$0xff] }
 0x610   :  { %2463 = vst.msk [vmem:[#allocation3 + $0xf0] sm:$0xfe] %vm2444_vm15, %v2455_v27  ;;  %3086 = vmatpush.msrb.mxu1 %v2942_v15 }
 0x611   :  { %2741 = vst.msk [vmem:[#allocation3 + $0xd0] sm:$0xfe] %vm2444_vm15, %v2455_v27  ;;  %v2988_v27 = vld [vmem:[%s6703_s7 + $0x210] sm:$0xff]  ;;  %vm3280_vm15 = vcmask 523264  }
 0x612   :  { %2488 = vst.msk [vmem:[#allocation3 + $0xf0] sm:$0xff] %vm2475_vm4, %v2480_v30  ;;  %3087 = vmatpush.msrb.mxu1 %v2941_v32 }
 0x613   :  { %2755 = vst.msk [vmem:[#allocation3 + $0xd0] sm:$0xff] %vm2475_vm4, %v2480_v30  ;;  %2785 = vrot.lane.b32.xlu0 %v2577_v31, %s3716_s0  ;;  %2656 = vrot.lane.b32.xlu1 %v2649_v29, %s3719_s29  ;;  %v6868_v31 = vrot.slane %v5892_v7, 5  ;;  %v2956_v7 = vld [vmem:[%s6703_s7 + $0x110] sm:$0xff]  ;;  %v2989_v30 = vld [vmem:[%s6703_s7 + $0x218] sm:$0xff] }
 0x614   :  { %3088 = vmatpush.msrb.mxu1 %v2940_v40  ;;  %v2985_v29 = vld [vmem:[%s6703_s7 + $0x1f8] sm:$0xff]  ;;  %v2982_v40 = vld [vmem:[%s6703_s7 + $0x1e0] sm:$0xff] }
 0x615   :  { %v2696_v49 = vsel %vm1463_vm13, %v6868_v31, %v2695_v56  ;;  %v2469_v39 = vpop.permute.xlu0 %2468  ;;  %v6311_v18 = vpop.permute.xlu1 %2481  ;;  %vm2446_vm13 = vcmask 523520   ;;  %3157 = vmatpush.msrb.mxu3 %v2985_v29  ;;  %v3002_v29 = vld [vmem:[%s6703_s7 + $0x280] sm:$0xff] }
 0x616   :  { %2703 = vrot.lane.b32.xlu2 %v2696_v49, %s3721_s12  ;;  %3089 = vmatpush.msrb.mxu1 %v2939_v35  ;;  %v2980_v35 = vld [vmem:[%s6703_s7 + $0x1d0] sm:$0xff] }
 0x617   :  { %v6316_v19 = vpop.permute.xlu2 %2697  ;;  %3158 = vmatpush.msrb.mxu3 %v2984_v24 }
 0x618   :  { %3090 = vmatpush.msrb.mxu1 %v2938_v53  ;;  %v2978_v53 = vld [vmem:[%s6703_s7 + $0x1c0] sm:$0xff] }
 0x619   :  { %3159 = vmatpush.msrb.mxu3 %v2983_v14 }
 0x61b   :  { %2841 = vrot.lane.b32.xlu0 %v2727_v12, %s3716_s0  ;;  %2800 = vrot.lane.b32.xlu1 %v2624_v43, %s3719_s29  ;;  %v2960_v12 = vld [vmem:[%s6703_s7 + $0x130] sm:$0xff] }
 0x61c   :  { %v2996_v43 = vld [vmem:[%s6703_s7 + $0x250] sm:$0xff]  ;;  %3125 = vmatpush.msrb.mxu2 %v2960_v12  ;;  %3160 = vmatpush.msrb.mxu3 %v2982_v40 }
 0x61d   :  { %v2471_v25 = vpop.permute.xlu0 %2470  ;;  %v6342_v44 = vpop.permute.xlu1 %2483  ;;  %3203 = vmatpush.msra.mxu0 %v2996_v43  ;;  %v2976_v12 = vld [vmem:[%s6703_s7 + $0x1b0] sm:$0xff] }
 0x61e   :  { %2815 = vrot.lane.b32.xlu2 %v2671_v58, %s3721_s12  ;;  %v2995_v58 = vld [vmem:[%s6703_s7 + $0x248] sm:$0xff]  ;;  %3126 = vmatpush.msrb.mxu2 %v2959_v57 }
 0x61f   :  { %v2438_v3 = vpop.permute.xlu2 %2437  ;;  %3204 = vmatpush.msra.mxu0 %v2995_v58 }
 0x620   :  { %2447 = vst.msk [vmem:[#allocation3 + $0x60] sm:$0xff] %vm2446_vm13, %v2438_v3  ;;  %3127 = vmatpush.msrb.mxu2 %v2958_v1  ;;  %v2974_v1 = vld [vmem:[%s6703_s7 + $0x1a0] sm:$0xff] }
 0x621   :  { %2733 = vst.msk [vmem:[#allocation3 + $0x40] sm:$0xff] %vm2446_vm13, %v2438_v3  ;;  %3205 = vmatpush.msra.mxu0 %v2994_v60 }
 0x622   :  { %2844 = vst.msk [vmem:[#allocation3 + $0x20] sm:$0xff] %vm2446_vm13, %v2438_v3  ;;  %3128 = vmatpush.msrb.mxu2 %v2957_v36 }
 0x623   :  { %2477 = vst.msk [vmem:[#allocation3 + $0x60] sm:$0xff] %vm2475_vm4, %v2469_v39  ;;  %2767 = vrot.lane.b32.xlu0 %v2523_v33, %s3721_s12  ;;  %2738 = vrot.lane.b32.xlu1 %v2737_v51, %s3716_s0  ;;  %v2993_v33 = vld [vmem:[%s6703_s7 + $0x238] sm:$0xff] }
 0x624   :  { %2749 = vst.msk [vmem:[#allocation3 + $0x40] sm:$0xff] %vm2475_vm4, %v2469_v39  ;;  %3206 = vmatpush.msra.mxu0 %v2993_v33  ;;  %3129 = vmatpush.msrb.mxu2 %v2956_v7  ;;  %v2973_v7 = vld [vmem:[%s6703_s7 + $0x198] sm:$0xff] }
 0x625   :  { %2856 = vst.msk [vmem:[#allocation3 + $0x20] sm:$0xff] %vm2475_vm4, %v2469_v39  ;;  %v2627_v63 = vpop.permute.xlu0 %2626  ;;  %v2500_v41 = vpop.permute.xlu1 %2499 }
 0x626   :  { %2752 = vrot.lane.b32.xlu2 %v6019_v23, %s3719_s29  ;;  %2639 = vst.msk [vmem:[#allocation3 + $0x8] sm:$0xf0] %vm2638_vm6, %v2627_v63  ;;  %3207 = vmatpush.msra.mxu0 %v2992_v28  ;;  %v2898_v28 = vld [vmem:[#allocation3 + $0xc0] sm:$0xff] }
 0x627   :  { %2512 = vst.msk [vmem:[#allocation3] sm:$0x80] %vm2511_vm3, %v2500_v41  ;;  %v2440_v46 = vpop.permute.xlu2 %2439  ;;  %3130 = vmatpush.msrb.mxu2 %v2955_v26  ;;  %v2972_v41 = vld [vmem:[%s6703_s7 + $0x190] sm:$0xff]  ;;  %vm6872_vm3 = vcmp.eq.s32.totalorder %v3988_v8, %v6822_v13 }
 0x628   :  { %2448 = vst.msk [vmem:[#allocation3 + $0x90] sm:$0xff] %vm2446_vm13, %v2440_v46  ;;  %3208 = vmatpush.msra.mxu0 %v2991_v4  ;;  %v2971_v4 = vld [vmem:[%s6703_s7 + $0x188] sm:$0xff]  ;;  %v3487_v52 = vsel %vm6872_vm3, 1.0, %v5760_v54 }
 0x629   :  { %2734 = vst.msk [vmem:[#allocation3 + $0x70] sm:$0xff] %vm2446_vm13, %v2440_v46  ;;  %3131 = vmatpush.msrb.mxu2 %v2954_v55  ;;  %v2970_v55 = vld [vmem:[%s6703_s7 + $0x180] sm:$0xff] }
 0x62a   :  { %2845 = vst.msk [vmem:[#allocation3 + $0x50] sm:$0xff] %vm2446_vm13, %v2440_v46  ;;  %3209 = vmatpush.msra.mxu0 %v2990_v34 }
 0x62b   :  { %2478 = vst.msk [vmem:[#allocation3 + $0x90] sm:$0xff] %vm2475_vm4, %v2471_v25  ;;  %2823 = vrot.lane.b32.xlu0 %v2695_v56, %s3721_s12  ;;  %2793 = vrot.lane.b32.xlu1 %v2601_v6, %s3716_s0 }
 0x62c   :  { %2750 = vst.msk [vmem:[#allocation3 + $0x70] sm:$0xff] %vm2475_vm4, %v2471_v25  ;;  %3210 = vmatpush.msra.mxu0 %v2989_v30 }
 0x62d   :  { %2857 = vst.msk [vmem:[#allocation3 + $0x50] sm:$0xff] %vm2475_vm4, %v2471_v25  ;;  %v2604_v50 = vpop.permute.xlu0 %2603  ;;  %v2674_v59 = vpop.permute.xlu1 %2673 }
 0x62e   :  { %2808 = vrot.lane.b32.xlu2 %v2648_v11, %s3719_s29  ;;  %2615 = vst.msk [vmem:[#allocation3 + $0xc8] sm:$0xe0] %vm2591_vm1, %v2604_v50  ;;  %v2874_v0 = vld [vmem:[#allocation3] sm:$0xff]  ;;  %v2987_v11 = vld [vmem:[%s6703_s7 + $0x208] sm:$0xff]  ;;  %3211 = vmatpush.msra.mxu0 %v2988_v27  ;;  %vm6871_vm1 = vcmp.eq.s32.totalorder %v3988_v8, %v6824_v45  ;;  %v3489_v45 = vsel %vm6874_vm0, 1.0, %v5760_v54 }
 0x62f   :  { %2686 = vst.msk [vmem:[#allocation3 + $0x8] sm:$0xf8] %vm2685_vm14, %v2674_v59  ;;  %3050 = vmatmul.f32.vlgmr.msra.gmra.mxu3 %v2874_v0  ;;  %v2528_v6 = vpop.permute.xlu2 %2527 }
 0x630   :  { %2538 = vst.msk [vmem:[#allocation3 + $0xf0] sm:$0xff] %vm2513_vm5, %v2528_v6  ;;  %3212 = vmatpush.msra.mxu0 %v2987_v11 }
 0x631   :  { %2770 = vst.msk [vmem:[#allocation3 + $0xd0] sm:$0xff] %vm2513_vm5, %v2528_v6 }
 0x632   :  { %3213 = vmatpush.msra.mxu0 %v2986_v38 }
 0x633   :  { %2849 = vrot.lane.b32.xlu1 %v2736_v20, %s3716_s0  ;;  %v2977_v20 = vld [vmem:[%s6703_s7 + $0x1b8] sm:$0xff] }
 0x635   :  { %v2582_v42 = vpop.permute.xlu0 %2581  ;;  %v2651_v56 = vpop.permute.xlu1 %2650 }
 0x636   :  { %2593 = vst.msk [vmem:[#allocation3 + $0x38] sm:$0xff] %vm2446_vm13, %v2582_v42  ;;  %v2875_v15 = vld [vmem:[#allocation3 + $0x8] sm:$0xff] }
 0x637   :  { %2788 = vst.msk [vmem:[#allocation3 + $0x18] sm:$0xff] %vm2446_vm13, %v2582_v42  ;;  %3091 = vmatmul.f32.vlgmr.msrb.gmra.mxu1 %v2875_v15  ;;  %v2457_v2 = vpop.permute.xlu2 %2456  ;;  %v2904_v59 = vld [vmem:[#allocation3 + $0xf0] sm:$0xff]  ;;  %v3005_v42 = vld [vmem:[%s6703_s7 + $0x298] sm:$0xff] }
 0x638   :  { %2662 = vst.msk [vmem:[#allocation3 + $0xc8] sm:$0xf0] %vm2638_vm6, %v2651_v56  ;;  %v3004_v56 = vld [vmem:[%s6703_s7 + $0x290] sm:$0xff]  ;;  %3251 = vmatpush.msra.mxu1 %v3005_v42  ;;  %3662 = vmatpush.msra.mxu2 %v3005_v42  ;;  %vm6876_vm6 = vcmp.eq.s32.totalorder %v3988_v8, %v6830_v47 }
 0x639   :  { %2709 = vst.msk [vmem:[#allocation3 + $0xc8] sm:$0xf8] %vm2685_vm14, %v6316_v19  ;;  %v2979_v19 = vld [vmem:[%s6703_s7 + $0x1c8] sm:$0xff] }
 0x63a   :  { %2464 = vst.msk [vmem:[#allocation3 + $0x120] sm:$0xff] %vm2446_vm13, %v2457_v2  ;;  %3252 = vmatpush.msra.mxu1 %v3004_v56  ;;  %3663 = vmatpush.msra.mxu2 %v3004_v56 }
 0x63b   :  { %2742 = vst.msk [vmem:[#allocation3 + $0x100] sm:$0xff] %vm2446_vm13, %v2457_v2 }
 0x63c   :  { %2852 = vst.msk [vmem:[#allocation3 + $0xe0] sm:$0xff] %vm2446_vm13, %v2457_v2 }
 0x63d   :  { %2489 = vst.msk [vmem:[#allocation3 + $0x120] sm:$0xff] %vm2475_vm4, %v6311_v18  ;;  %v6450_v23 = vpop.permute.xlu0 %2675  ;;  %v2502_v61 = vpop.permute.xlu1 %2501 }
 0x63e   :  { %2756 = vst.msk [vmem:[#allocation3 + $0x100] sm:$0xff] %vm2475_vm4, %v6311_v18 }
 0x63f   :  { %2859 = vst.msk [vmem:[#allocation3 + $0xe0] sm:$0xff] %vm2475_vm4, %v6311_v18  ;;  %v2530_v32 = vpop.permute.xlu2 %2529  ;;  %v2981_v18 = vld [vmem:[%s6703_s7 + $0x1d8] sm:$0xff] }
 0x640   :  { %2514 = vst.msk [vmem:[#allocation3 + $0x30] sm:$0xff] %vm2513_vm5, %v2502_v61  ;;  %3161 = vmatpush.msrb.mxu3 %v2981_v18 }
 0x641   :  { %2762 = vst.msk [vmem:[#allocation3 + $0x10] sm:$0xff] %vm2513_vm5, %v2502_v61  ;;  %v3003_v61 = vld [vmem:[%s6703_s7 + $0x288] sm:$0xff] }
 0x642   :  { %2539 = vst.msk [vmem:[#allocation3 + $0x120] sm:$0xff] %vm2513_vm5, %v2530_v32  ;;  %3162 = vmatpush.msrb.mxu3 %v2980_v35  ;;  %3664 = vmatpush.msra.mxu2 %v3003_v61  ;;  %v2900_v35 = vld [vmem:[#allocation3 + $0xd0] sm:$0xff] }
 0x643   :  { %2771 = vst.msk [vmem:[#allocation3 + $0x100] sm:$0xff] %vm2513_vm5, %v2530_v32  ;;  %3253 = vmatpush.msra.mxu1 %v3003_v61 }
 0x644   :  { %2865 = vst.msk [vmem:[#allocation3 + $0xe0] sm:$0xff] %vm2513_vm5, %v2530_v32  ;;  %3163 = vmatpush.msrb.mxu3 %v2979_v19  ;;  %v2899_v32 = vld [vmem:[#allocation3 + $0xc8] sm:$0xff]  ;;  %3665 = vmatpush.msra.mxu2 %v3002_v29 }
 0x645   :  { %v2584_v31 = vpop.permute.xlu0 %2583  ;;  %v2504_v49 = vpop.permute.xlu1 %2503  ;;  %3254 = vmatpush.msra.mxu1 %v3002_v29 }
 0x646   :  { %2594 = vst.msk [vmem:[#allocation3 + $0x68] sm:$0xff] %vm2446_vm13, %v2584_v31  ;;  %3164 = vmatpush.msrb.mxu3 %v2978_v53 }
 0x647   :  { %2789 = vst.msk [vmem:[#allocation3 + $0x48] sm:$0xff] %vm2446_vm13, %v2584_v31  ;;  %v2880_v39 = vld [vmem:[#allocation3 + $0x30] sm:$0xff]  ;;  %v2459_v16 = vpop.permute.xlu2 %2458 }
 0x648   :  { %2515 = vst.msk [vmem:[#allocation3 + $0x60] sm:$0xff] %vm2513_vm5, %v2504_v49  ;;  %3053 = vmatmul.f32.gmra.mxu3 %v2880_v39  ;;  %v2876_v21 = vld [vmem:[#allocation3 + $0x10] sm:$0xff] }
 0x649   :  { %2763 = vst.msk [vmem:[#allocation3 + $0x40] sm:$0xff] %vm2513_vm5, %v2504_v49  ;;  %3132 = vmatmul.f32.vlgmr.msrb.gmra.mxu2 %v2876_v21  ;;  %3165 = vmatpush.msrb.mxu3 %v2977_v20  ;;  %v2910_v11 = vld [vmem:[#allocation3 + $0x120] sm:$0xff] }
 0x64a   :  { %2862 = vst.msk [vmem:[#allocation3 + $0x20] sm:$0xff] %vm2513_vm5, %v2504_v49 }
 0x64b   :  { %2465 = vst.msk [vmem:[#allocation3 + $0x150] sm:$0xff] %vm2446_vm13, %v2459_v16  ;;  %3166 = vmatpush.msrb.mxu3 %v2976_v12 }
 0x64c   :  { %2743 = vst.msk [vmem:[#allocation3 + $0x130] sm:$0xff] %vm2446_vm13, %v2459_v16 }
 0x64d   :  { %2853 = vst.msk [vmem:[#allocation3 + $0x110] sm:$0xff] %vm2446_vm13, %v2459_v16  ;;  %v2678_v10 = vpop.permute.xlu0 %2677  ;;  %v2506_v5 = vpop.permute.xlu1 %2505 }
 0x64e   :  { %2490 = vst.msk [vmem:[#allocation3 + $0x150] sm:$0xff] %vm2475_vm4, %v6342_v44 }
 0x64f   :  { %2757 = vst.msk [vmem:[#allocation3 + $0x130] sm:$0xff] %vm2475_vm4, %v6342_v44  ;;  %v2886_v17 = vld [vmem:[#allocation3 + $0x60] sm:$0xff]  ;;  %v2532_v62 = vpop.permute.xlu2 %2531 }
 0x650   :  { %2860 = vst.msk [vmem:[#allocation3 + $0x110] sm:$0xff] %vm2475_vm4, %v6342_v44  ;;  %3056 = vmatmul.f32.gmra.mxu3 %v2886_v17  ;;  %v2882_v25 = vld [vmem:[#allocation3 + $0x40] sm:$0xff]  ;;  %v2975_v44 = vld [vmem:[%s6703_s7 + $0x1a8] sm:$0xff] }
 0x651   :  { %2516 = vst.msk [vmem:[#allocation3 + $0x90] sm:$0xff] %vm2513_vm5, %v2506_v5  ;;  %3135 = vmatmul.f32.gmra.mxu2 %v2882_v25  ;;  %v2878_v3 = vld [vmem:[#allocation3 + $0x20] sm:$0xff]  ;;  %3167 = vmatpush.msrb.mxu3 %v2975_v44 }
 0x652   :  { %2764 = vst.msk [vmem:[#allocation3 + $0x70] sm:$0xff] %vm2513_vm5, %v2506_v5  ;;  %3214 = vmatmul.f32.vlgmr.msra.gmra.mxu0 %v2878_v3 }
 0x653   :  { %2863 = vst.msk [vmem:[#allocation3 + $0x50] sm:$0xff] %vm2513_vm5, %v2506_v5  ;;  %3168 = vmatpush.msrb.mxu3 %v2974_v1  ;;  %v2879_v1 = vld [vmem:[#allocation3 + $0x28] sm:$0xff] }
 0x654   :  { %2540 = vst.msk [vmem:[#allocation3 + $0x150] sm:$0xff] %vm2513_vm5, %v2532_v62 }
 0x655   :  { %2772 = vst.msk [vmem:[#allocation3 + $0x130] sm:$0xff] %vm2513_vm5, %v2532_v62  ;;  %v2586_v43 = vpop.permute.xlu0 %2585  ;;  %v2629_v57 = vpop.permute.xlu1 %2628  ;;  %3169 = vmatpush.msrb.mxu3 %v2973_v7 }
 0x656   :  { %2866 = vst.msk [vmem:[#allocation3 + $0x110] sm:$0xff] %vm2513_vm5, %v2532_v62  ;;  %v2906_v62 = vld [vmem:[#allocation3 + $0x100] sm:$0xff] }
 0x657   :  { %2595 = vst.msk [vmem:[#allocation3 + $0x98] sm:$0xff] %vm2446_vm13, %v2586_v43  ;;  %v6515_v58 = vpop.permute.xlu2 %2699  ;;  %3170 = vmatpush.msrb.mxu3 %v2972_v41  ;;  %v2885_v41 = vld [vmem:[#allocation3 + $0x58] sm:$0xff] }
 0x658   :  { %2790 = vst.msk [vmem:[#allocation3 + $0x78] sm:$0xff] %vm2446_vm13, %v2586_v43  ;;  %v2892_v60 = vld [vmem:[#allocation3 + $0x90] sm:$0xff] }
 0x659   :  { %2640 = vst.msk [vmem:[#allocation3 + $0x38] sm:$0xff] %vm2475_vm4, %v2629_v57  ;;  %3059 = vmatmul.f32.gmra.mxu3 %v2892_v60  ;;  %v2888_v51 = vld [vmem:[#allocation3 + $0x70] sm:$0xff]  ;;  %v2902_v60 = vld [vmem:[#allocation3 + $0xe0] sm:$0xff] }
 0x65a   :  { %2687 = vst.msk [vmem:[#allocation3 + $0x38] sm:$0xff] %vm2513_vm5, %v6450_v23  ;;  %3138 = vmatmul.f32.gmra.mxu2 %v2888_v51  ;;  %v2884_v36 = vld [vmem:[#allocation3 + $0x50] sm:$0xff]  ;;  %3171 = vmatpush.msrb.mxu3 %v2971_v4  ;;  %v2915_v4 = vld [vmem:[#allocation3 + $0x148] sm:$0xff] }
 0x65b   :  { %2803 = vst.msk [vmem:[#allocation3 + $0x18] sm:$0xff] %vm2475_vm4, %v2629_v57  ;;  %3217 = vmatmul.f32.gmra.mxu0 %v2884_v36 }
 0x65c   :  { %2818 = vst.msk [vmem:[#allocation3 + $0x18] sm:$0xff] %vm2513_vm5, %v6450_v23  ;;  %3172 = vmatpush.msrb.mxu3 %v2970_v55  ;;  %v2916_v23 = vld [vmem:[#allocation3 + $0x150] sm:$0xff]  ;;  %v2891_v55 = vld [vmem:[#allocation3 + $0x88] sm:$0xff] }
 0x65d   :  { %v2760_v33 = vpop.permute.xlu0 %2759  ;;  %v2631_v63 = vpop.permute.xlu1 %2630 }
 0x65e   :  { %2641 = vst.msk [vmem:[#allocation3 + $0x68] sm:$0xff] %vm2475_vm4, %v2631_v63 }
 0x65f   :  { %2688 = vst.msk [vmem:[#allocation3 + $0x68] sm:$0xff] %vm2513_vm5, %v2678_v10  ;;  %v2608_v46 = vpop.permute.xlu2 %2607 }
 0x660   :  { %2804 = vst.msk [vmem:[#allocation3 + $0x48] sm:$0xff] %vm2475_vm4, %v2631_v63 }
 0x661   :  { %3062 = vmatmul.f32.gmra.mxu3 %v2898_v28  ;;  %v2881_v26 = vld [vmem:[#allocation3 + $0x38] sm:$0xff]  ;;  %2819 = vst.msk [vmem:[#allocation3 + $0x48] sm:$0xff] %vm2513_vm5, %v2678_v10  ;;  %v2908_v28 = vld [vmem:[#allocation3 + $0x110] sm:$0xff] }
 0x662   :  { %3094 = vmatmul.f32.gmra.mxu1 %v2881_v26  ;;  %2617 = vst.msk [vmem:[#allocation3 + $0x128] sm:$0xff] %vm2446_vm13, %v2608_v46 }
 0x663   :  { %2797 = vst.msk [vmem:[#allocation3 + $0x108] sm:$0xff] %vm2446_vm13, %v2608_v46  ;;  %v2877_v49 = vld [vmem:[#allocation3 + $0x18] sm:$0xff] }
 0x665   :  { %v2680_v34 = vpop.permute.xlu0 %2679  ;;  %v2633_v30 = vpop.permute.xlu1 %2632 }
 0x666   :  { %2642 = vst.msk [vmem:[#allocation3 + $0x98] sm:$0xff] %vm2475_vm4, %v2633_v30  ;;  %v2887_v50 = vld [vmem:[#allocation3 + $0x68] sm:$0xff] }
 0x667   :  { %2689 = vst.msk [vmem:[#allocation3 + $0x98] sm:$0xff] %vm2513_vm5, %v2680_v34  ;;  %v2702_v2 = vpop.permute.xlu2 %2701 }
 0x668   :  { %2805 = vst.msk [vmem:[#allocation3 + $0x78] sm:$0xff] %vm2475_vm4, %v2633_v30  ;;  %v2883_v19 = vld [vmem:[#allocation3 + $0x48] sm:$0xff]  ;;  %v2921_v30 = vld [vmem:[#allocation3 + $0x178] sm:$0xff] }
 0x669   :  { %3065 = vmatmul.f32.gmra.mxu3 %v2904_v59  ;;  %2820 = vst.msk [vmem:[#allocation3 + $0x78] sm:$0xff] %vm2513_vm5, %v2680_v34 }
 0x66a   :  { %3097 = vmatmul.f32.gmra.mxu1 %v2887_v50  ;;  %v6606_v50 = vld [vmem:[%s6704_s8] ss:$0 sm:$0xff] }
 0x66d   :  { %v2606_v0 = vpop.permute.xlu0 %2605  ;;  %v2746_v6 = vpop.permute.xlu1 %2745 }
 0x66e   :  { %2616 = vst.msk [vmem:[#allocation3 + $0xf8] sm:$0xff] %vm2446_vm13, %v2606_v0  ;;  %v2893_v27 = vld [vmem:[#allocation3 + $0x98] sm:$0xff] }
 0x66f   :  { %2796 = vst.msk [vmem:[#allocation3 + $0xd8] sm:$0xff] %vm2446_vm13, %v2606_v0  ;;  %v2897_v0 = vld [vmem:[#allocation3 + $0xb8] sm:$0xff] }
 0x670   :  { %v2704_v40 = vpop.permute.xlu2 %2703  ;;  %v2889_v25 = vld [vmem:[#allocation3 + $0x78] sm:$0xff] }
 0x671   :  { %3068 = vmatmul.f32.gmra.mxu3 %v2910_v11 }
 0x672   :  { %3100 = vmatmul.f32.gmra.mxu1 %v2893_v27 }
 0x675   :  { %v2730_v38 = vpop.permute.xlu0 %2729  ;;  %v2653_v15 = vpop.permute.xlu1 %2652 }
 0x676   :  { %2735 = vst.msk [vmem:[#allocation3 + $0xa0] sm:$0xff] %vm2446_vm13, %v2730_v38 }
 0x677   :  { %2751 = vst.msk [vmem:[#allocation3 + $0xa0] sm:$0xff] %vm2475_vm4, %v2746_v6 }
 0x678   :  { %2766 = vst.msk [vmem:[#allocation3 + $0xa0] sm:$0x7f] %vm2765_vm8, %v2760_v33  ;;  %v2816_v5 = vpop.permute.xlu2 %2815 }
 0x679   :  { %2846 = vst.msk [vmem:[#allocation3 + $0x80] sm:$0xff] %vm2446_vm13, %v2730_v38  ;;  %3071 = vmatmul.f32.gmra.mxu3 %v2916_v23 }
 0x67a   :  { %2858 = vst.msk [vmem:[#allocation3 + $0x80] sm:$0xff] %vm2475_vm4, %v2746_v6  ;;  %3103 = vmatmul.f32.gmra.mxu1 %v2899_v32 }
 0x67b   :  { %2864 = vst.msk [vmem:[#allocation3 + $0x80] sm:$0x7f] %vm2765_vm8, %v2760_v33 }
 0x67c   :  { %2663 = vst.msk [vmem:[#allocation3 + $0xf8] sm:$0xff] %vm2475_vm4, %v2653_v15 }
 0x67d   :  { %2710 = vst.msk [vmem:[#allocation3 + $0xf8] sm:$0xff] %vm2513_vm5, %v6515_v58  ;;  %v2610_v24 = vpop.permute.xlu0 %2609  ;;  %v2655_v14 = vpop.permute.xlu1 %2654 }
 0x67e   :  { %2811 = vst.msk [vmem:[#allocation3 + $0xd8] sm:$0xff] %vm2475_vm4, %v2653_v15  ;;  %v2903_v15 = vld [vmem:[#allocation3 + $0xe8] sm:$0xff] }
 0x67f   :  { %2826 = vst.msk [vmem:[#allocation3 + $0xd8] sm:$0xff] %vm2513_vm5, %v6515_v58  ;;  %v2894_v31 = vld [vmem:[#allocation3 + $0xa0] sm:$0xff]  ;;  %v2912_v58 = vld [vmem:[#allocation3 + $0x130] sm:$0xff] }
 0x680   :  { %2618 = vst.msk [vmem:[#allocation3 + $0x158] sm:$0xff] %vm2446_vm13, %v2610_v24  ;;  %3141 = vmatmul.f32.gmra.mxu2 %v2894_v31  ;;  %v2753_v20 = vpop.permute.xlu2 %2752 }
 0x681   :  { %2798 = vst.msk [vmem:[#allocation3 + $0x138] sm:$0xff] %vm2446_vm13, %v2610_v24  ;;  %3173 = vmatmul.f32.vlgmr.msrb.gmra.mxu3 %v2877_v49 }
 0x682   :  { %2664 = vst.msk [vmem:[#allocation3 + $0x128] sm:$0xff] %vm2475_vm4, %v2655_v14  ;;  %v2890_v39 = vld [vmem:[#allocation3 + $0x80] sm:$0xff] }
 0x683   :  { %2711 = vst.msk [vmem:[#allocation3 + $0x128] sm:$0xff] %vm2513_vm5, %v2702_v2  ;;  %3220 = vmatmul.f32.gmra.mxu0 %v2890_v39 }
 0x684   :  { %2812 = vst.msk [vmem:[#allocation3 + $0x108] sm:$0xff] %vm2475_vm4, %v2655_v14  ;;  %v2905_v16 = vld [vmem:[#allocation3 + $0xf8] sm:$0xff] }
 0x685   :  { %2827 = vst.msk [vmem:[#allocation3 + $0x108] sm:$0xff] %vm2513_vm5, %v2702_v2  ;;  %3106 = vmatmul.f32.gmra.mxu1 %v2905_v16  ;;  %v2786_v21 = vpop.permute.xlu0 %2785  ;;  %v2657_v18 = vpop.permute.xlu1 %2656  ;;  %v2909_v2 = vld [vmem:[#allocation3 + $0x118] sm:$0xff] }
 0x686   :  { %2792 = vst.msk [vmem:[#allocation3 + $0xa8] sm:$0x1f] %vm2791_vm11, %v2786_v21  ;;  %v2901_v63 = vld [vmem:[#allocation3 + $0xd8] sm:$0xff] }
 0x687   :  { %2665 = vst.msk [vmem:[#allocation3 + $0x158] sm:$0xff] %vm2475_vm4, %v2657_v18 }
 0x688   :  { %2712 = vst.msk [vmem:[#allocation3 + $0x158] sm:$0xff] %vm2513_vm5, %v2704_v40  ;;  %3144 = vmatmul.f32.gmra.mxu2 %v2900_v35  ;;  %v2809_v36 = vpop.permute.xlu2 %2808 }
 0x689   :  { %2813 = vst.msk [vmem:[#allocation3 + $0x138] sm:$0xff] %vm2475_vm4, %v2657_v18  ;;  %3176 = vmatmul.f32.gmra.mxu3 %v2883_v19 }
 0x68a   :  { %2828 = vst.msk [vmem:[#allocation3 + $0x138] sm:$0xff] %vm2513_vm5, %v2704_v40  ;;  %v2911_v10 = vld [vmem:[#allocation3 + $0x128] sm:$0xff] }
 0x68c   :  { %v2907_v26 = vld [vmem:[#allocation3 + $0x108] sm:$0xff] }
 0x68d   :  { %3109 = vmatmul.f32.gmra.mxu1 %v2911_v10  ;;  %v2842_v53 = vpop.permute.xlu0 %2841  ;;  %v2801_v17 = vpop.permute.xlu1 %2800 }
 0x68e   :  { %2848 = vst.msk [vmem:[#allocation3 + $0xb0] sm:$0x1] %vm2847_vm2, %v2842_v53 }
 0x68f   :  { %2807 = vst.msk [vmem:[#allocation3 + $0xa8] sm:$0xf] %vm2806_vm12, %v2801_v17  ;;  %v2917_v3 = vld [vmem:[#allocation3 + $0x158] sm:$0xff] }
 0x690   :  { %2822 = vst.msk [vmem:[#allocation3 + $0xa8] sm:$0x7] %vm2821_vm7, %v2816_v5  ;;  %3147 = vmatmul.f32.gmra.mxu2 %v2906_v62 }
 0x691   :  { %3179 = vmatmul.f32.gmra.mxu3 %v2889_v25  ;;  %v2913_v59 = vld [vmem:[#allocation3 + $0x138] sm:$0xff] }
 0x695   :  { %3112 = vmatmul.f32.gmra.mxu1 %v2917_v3  ;;  %v2896_v12 = vld [vmem:[#allocation3 + $0xb0] sm:$0xff]  ;;  %v2768_v44 = vpop.permute.xlu0 %2767  ;;  %v2739_v43 = vpop.permute.xlu1 %2738 }
 0x696   :  { %3223 = vmatmul.f32.gmra.mxu0 %v2896_v12  ;;  %2744 = vst.msk [vmem:[#allocation3 + $0x160] sm:$0xff] %vm2446_vm13, %v2739_v43 }
 0x697   :  { %v2895_v57 = vld [vmem:[#allocation3 + $0xa8] sm:$0xff]  ;;  %2758 = vst.msk [vmem:[#allocation3 + $0x160] sm:$0xff] %vm2475_vm4, %v2753_v20 }
 0x698   :  { %3150 = vmatmul.f32.gmra.mxu2 %v2912_v58  ;;  %2773 = vst.msk [vmem:[#allocation3 + $0x160] sm:$0x7f] %vm2765_vm8, %v2768_v44 }
 0x699   :  { %3182 = vmatmul.f32.gmra.mxu3 %v2895_v57  ;;  %2854 = vst.msk [vmem:[#allocation3 + $0x140] sm:$0xff] %vm2446_vm13, %v2739_v43  ;;  %vm6875_vm13 = vcmp.eq.s32.totalorder %v3988_v8, %v6832_v37 }
 0x69a   :  { %2861 = vst.msk [vmem:[#allocation3 + $0x140] sm:$0xff] %vm2475_vm4, %v2753_v20  ;;  %vm6873_vm4 = vcmp.eq.s32.totalorder %v3988_v8, %v6828_v22  ;;  %v3459_v13 = vsel %vm6875_vm13, 1.0, %v5760_v54  ;;  %v3491_v22 = vsel %vm6876_vm6, 1.0, %v5760_v54 }
 0x69b   :  { %2867 = vst.msk [vmem:[#allocation3 + $0x140] sm:$0x7f] %vm2765_vm8, %v2768_v44 }
 0x69d   :  { %3646 = vmatmul.msk.f32.vlgmr.msra.gmra.mxu1 %vm2258_vm10, %v2879_v1  ;;  %v2794_v51 = vpop.permute.xlu1 %2793  ;;  %v2824_v33 = vpop.permute.xlu0 %2823 }
 0x69e   :  { %3226 = vmatmul.f32.gmra.mxu0 %v2902_v60  ;;  %2799 = vst.msk [vmem:[#allocation3 + $0x168] sm:$0x1f] %vm2791_vm11, %v2794_v51 }
 0x69f   :  { %2814 = vst.msk [vmem:[#allocation3 + $0x168] sm:$0xf] %vm2806_vm12, %v2809_v36  ;;  %v2918_v7 = vld [vmem:[#allocation3 + $0x160] sm:$0xff] }
 0x6a0   :  { %2829 = vst.msk [vmem:[#allocation3 + $0x168] sm:$0x7] %vm2821_vm7, %v2824_v33  ;;  %3153 = vmatmul.f32.gmra.mxu2 %v2918_v7 }
 0x6a1   :  { %3185 = vmatmul.f32.gmra.mxu3 %v2901_v63 }
 0x6a2   :  { %v2914_v34 = vld [vmem:[#allocation3 + $0x140] sm:$0xff] }
 0x6a5   :  { %3647 = vmatmul.msk.f32.gmra.mxu1 %vm2258_vm10, %v2885_v41  ;;  %v2850_v46 = vpop.permute.xlu1 %2849 }
 0x6a6   :  { %3229 = vmatmul.f32.gmra.mxu0 %v2908_v28  ;;  %2855 = vst.msk [vmem:[#allocation3 + $0x170] sm:$0x1] %vm2847_vm2, %v2850_v46 }
 0x6a7   :  { %v2919_v56 = vld [vmem:[#allocation3 + $0x168] sm:$0xff] }
 0x6a8   :  { %3652 = vmatmul.msk.f32.vlgmr.msra.gmra.mxu2 %vm2258_vm10, %v2915_v4 }
 0x6a9   :  { %3188 = vmatmul.f32.gmra.mxu3 %v2907_v26 }
 0x6ad   :  { %3648 = vmatmul.msk.f32.gmra.mxu1 %vm2258_vm10, %v2891_v55  ;;  %v2920_v42 = vld [vmem:[#allocation3 + $0x170] sm:$0xff] }
 0x6ae   :  { %3232 = vmatmul.f32.gmra.mxu0 %v2914_v34 }
 0x6b0   :  { %3653 = vmatmul.msk.f32.gmra.mxu2 %vm2258_vm10, %v2921_v30 }
 0x6b1   :  { %3191 = vmatmul.f32.gmra.mxu3 %v2913_v59 }
 0x6b2   :  { %v3051_v6 = vpop.f32.mrf.mxu3 }
 0x6b3   :  { %v3052_v27 = vadd.f32 %v6606_v50, %v3051_v6 }
 0x6b4   :  { %v3092_v11 = vpop.f32.mrf.mxu1 }
 0x6b5   :  { %3649 = vmatmul.msk.f32.gmra.mxu1 %vm2258_vm10, %v2897_v0  ;;  %v3093_v38 = vadd.f32 %v3092_v11, %v3052_v27 }
 0x6b6   :  { %3235 = vmatmul.f32.gmra.mxu0 %v2920_v42 }
 0x6b9   :  { %3194 = vmatmul.f32.gmra.mxu3 %v2919_v56 }
 0x6bd   :  { %3650 = vmatmul.msk.f32.gmra.mxu1 %vm2258_vm10, %v2903_v15 }
 0x6c5   :  { %3651 = vmatmul.msk.f32.gmra.mxu1 %vm2258_vm10, %v2909_v2  ;;  %vm6869_vm10 = vcmp.eq.s32.totalorder %v3988_v8, %v3991_v9  ;;  %v3455_v9 = vsel %vm6871_vm1, 1.0, %v5760_v54 }
 0x6cb   :  { %v3054_v23 = vpop.f32.mrf.mxu3 }
 0x6cc   :  { %v3133_v61 = vpop.f32.mrf.mxu2  ;;  %v3055_v14 = vadd.f32 %v6606_v50, %v3054_v23 }
 0x6cd   :  { %v3134_v32 = vadd.f32 %v3133_v61, %v3093_v38 }
 0x6cf   :  { %v3215_v20 = vpop.f32.mrf.mxu0 }
 0x6d3   :  { %v3057_v29 = vpop.f32.mrf.mxu3 }
 0x6d4   :  { %v3058_v39 = vadd.f32 %v6606_v50, %v3057_v29  ;;  %v3136_v18 = vpop.f32.mrf.mxu2 }
 0x6d8   :  { %v6621_v60 = vpop.f32.mrf.mxu0 }
 0x6dc   :  { %v3060_v24 = vpop.f32.mrf.mxu3 }
 0x6dd   :  { %v3061_v10 = vadd.f32 %v6606_v50, %v3060_v24  ;;  %v3139_v12 = vpop.f32.mrf.mxu2 }
 0x6df   :  { %v3095_v31 = vpop.f32.mrf.mxu1 }
 0x6e0   :  { %v3096_v49 = vadd.f32 %v3095_v31, %v3055_v14 }
 0x6e2   :  { %v6617_v35 = vadd.f32 %v3136_v18, %v3096_v49 }
 0x6e4   :  { %v3063_v40 = vpop.f32.mrf.mxu3 }
 0x6e5   :  { %v3064_v62 = vadd.f32 %v6606_v50, %v3063_v40 }
 0x6e7   :  { %v3098_v16 = vpop.f32.mrf.mxu1 }
 0x6e8   :  { %v6615_v21 = vadd.f32 %v3098_v16, %v3058_v39 }
 0x6ec   :  { %v3066_v19 = vpop.f32.mrf.mxu3 }
 0x6ed   :  { %v3067_v29 = vadd.f32 %v6606_v50, %v3066_v19 }
 0x6ef   :  { %v3101_v5 = vpop.f32.mrf.mxu1 }
 0x6f0   :  { %v3102_v53 = vadd.f32 %v3101_v5, %v3061_v10 }
 0x6f4   :  { %v3069_v17 = vpop.f32.mrf.mxu3 }
 0x6f5   :  { %v3070_v2 = vadd.f32 %v6606_v50, %v3069_v17 }
 0x6f7   :  { %v3104_v25 = vpop.f32.mrf.mxu1 }
 0x6f8   :  { %v3105_v3 = vadd.f32 %v3104_v25, %v3064_v62 }
 0x6fc   :  { %v3072_v44 = vpop.f32.mrf.mxu3 }
 0x6fd   :  { %v3073_v61 = vadd.f32 %v6606_v50, %v3072_v44  ;;  %v3140_v50 = vadd.f32 %v3139_v12, %v6615_v21 }
 0x700   :  { %v3221_v63 = vpop.f32.mrf.mxu0 }
 0x702   :  { %v3107_v43 = vpop.f32.mrf.mxu1 }
 0x703   :  { %v3142_v58 = vpop.f32.mrf.mxu2  ;;  %v3108_v49 = vadd.f32 %v3107_v43, %v3067_v29 }
 0x704   :  { %v3174_v57 = vpop.f32.mrf.mxu3 }
 0x705   :  { %v3175_v1 = vadd.f32 %v3174_v57, %v3134_v32 }
 0x707   :  { %v6623_v51 = vadd.f32 %v3215_v20, %v3175_v1  ;;  %v3143_v1 = vadd.f32 %v3142_v58, %v3102_v53 }
 0x70a   :  { %v3110_v36 = vpop.f32.mrf.mxu1 }
 0x70b   :  { %v3145_v7 = vpop.f32.mrf.mxu2  ;;  %v3111_v32 = vadd.f32 %v3110_v36, %v3070_v2 }
 0x70c   :  { %v3177_v33 = vpop.f32.mrf.mxu3  ;;  %v3146_v25 = vadd.f32 %v3145_v7, %v3105_v3 }
 0x70d   :  { %v3178_v3 = vadd.f32 %v3177_v33, %v6617_v35  ;;  %v3453_v35 = vsel %vm6869_vm10, 1.0, %v5760_v54  ;;  %v3485_v33 = vsel %vm6870_vm9, 1.0, %v5760_v54 }
 0x70f   :  { %v3219_v21 = vadd.f32 %v6621_v60, %v3178_v3  ;;  %v3457_v60 = vsel %vm6873_vm4, 1.0, %v5760_v54 }
 0x712   :  { %v3113_v41 = vpop.f32.mrf.mxu1 }
 0x713   :  { %v3224_v46 = vpop.f32.mrf.mxu0  ;;  %v3148_v26 = vpop.f32.mrf.mxu2  ;;  %v3114_v24 = vadd.f32 %v3113_v41, %v3073_v61 }
 0x714   :  { %v3180_v28 = vpop.f32.mrf.mxu3  ;;  %v3149_v18 = vadd.f32 %v3148_v26, %v3108_v49 }
 0x71a   :  { %v6625_v4 = vpop.f32.mrf.mxu1 }
 0x71b   :  { %v3227_v34 = vpop.f32.mrf.mxu0  ;;  %v3151_v30 = vpop.f32.mrf.mxu2 }
 0x71c   :  { %v3183_v55 = vpop.f32.mrf.mxu3  ;;  %v3152_v14 = vadd.f32 %v3151_v30, %v3111_v32 }
 0x71d   :  { %v3184_v41 = vadd.f32 %v3183_v55, %v3143_v1 }
 0x71f   :  { %v3225_v7 = vadd.f32 %v3224_v46, %v3184_v41 }
 0x722   :  { %v3259_v59 = vpop.f32.mrf.mxu1 }
 0x723   :  { %v3230_v6 = vpop.f32.mrf.mxu0  ;;  %v3154_v11 = vpop.f32.mrf.mxu2 }
 0x724   :  { %v3186_v0 = vpop.f32.mrf.mxu3  ;;  %v3155_v40 = vadd.f32 %v3154_v11, %v3114_v24  ;;  %v3181_v11 = vadd.f32 %v3180_v28, %v3140_v50  ;;  %v3260_v28 = vadd.f32 %v3259_v59, %v3219_v21 }
 0x725   :  { %v3187_v44 = vadd.f32 %v3186_v0, %v3146_v25 }
 0x726   :  { %v3222_v53 = vadd.f32 %v3221_v63, %v3181_v11  ;;  %v3257_v63 = vadd.f32 %v6625_v4, %v6623_v51 }
 0x727   :  { %v3228_v26 = vadd.f32 %v3227_v34, %v3187_v44 }
 0x72a   :  { %v3262_v27 = vpop.f32.mrf.mxu1 }
 0x72b   :  { %v3233_v56 = vpop.f32.mrf.mxu0  ;;  %v3274_v23 = vpop.f32.mrf.mxu2  ;;  %v3263_v12 = vadd.f32 %v3262_v27, %v3222_v53 }
 0x72c   :  { %v3189_v38 = vpop.f32.mrf.mxu3 }
 0x72d   :  { %v3190_v20 = vadd.f32 %v3189_v38, %v3149_v18 }
 0x72f   :  { %v3231_v30 = vadd.f32 %v3230_v6, %v3190_v20 }
 0x732   :  { %v3265_v42 = vpop.f32.mrf.mxu1 }
 0x733   :  { %v3236_v5 = vpop.f32.mrf.mxu0  ;;  %v3277_v62 = vpop.f32.mrf.mxu2  ;;  %v3266_v58 = vadd.f32 %v3265_v42, %v3225_v7 }
 0x734   :  { %v3192_v15 = vpop.f32.mrf.mxu3 }
 0x735   :  { %v3193_v39 = vadd.f32 %v3192_v15, %v3152_v14 }
 0x737   :  { %v3234_v17 = vadd.f32 %v3233_v56, %v3193_v39 }
 0x739   :  { %v3275_v43 = vadd.f32 %v3274_v23, %v3234_v17 }
 0x73a   :  { %v3268_v31 = vpop.f32.mrf.mxu1 }
 0x73b   :  { %v3269_v38 = vadd.f32 %v3268_v31, %v3228_v26 }
 0x73c   :  { %v3195_v16 = vpop.f32.mrf.mxu3 }
 0x73d   :  { %v3196_v10 = vadd.f32 %v3195_v16, %v3155_v40 }
 0x73f   :  { %v3237_v57 = vadd.f32 %v3236_v5, %v3196_v10 }
 0x741   :  { %v3278_v36 = vadd.f32 %v3277_v62, %v3237_v57 }
 0x742   :  { %v3271_v19 = vpop.f32.mrf.mxu1 }
 0x743   :  { %3301 = vmatpush.msrb.mxu2 %v3278_v36  ;;  %3342 = vmatpush.msra.mxu3 %v3278_v36  ;;  %v3272_v15 = vadd.f32 %v3271_v19, %v3231_v30 }
 0x745   :  { %3302 = vmatpush.msrb.mxu2 %v3275_v43  ;;  %3343 = vmatpush.msra.mxu3 %v3275_v43 }
 0x747   :  { %3303 = vmatpush.msrb.mxu2 %v3272_v15  ;;  %3344 = vmatpush.msra.mxu3 %v3272_v15 }
 0x749   :  { %3304 = vmatpush.msrb.mxu2 %v3269_v38  ;;  %3345 = vmatpush.msra.mxu3 %v3269_v38 }
 0x74b   :  { %3305 = vmatpush.msrb.mxu2 %v3266_v58  ;;  %3346 = vmatpush.msra.mxu3 %v3266_v58 }
 0x74d   :  { %3306 = vmatpush.msrb.mxu2 %v3263_v12  ;;  %3347 = vmatpush.msra.mxu3 %v3263_v12 }
 0x74f   :  { %3307 = vmatpush.msrb.mxu2 %v3260_v28  ;;  %3348 = vmatpush.msra.mxu3 %v3260_v28  ;;  %v3367_v28 = vld [vmem:[%s6705_s9] sm:$0x1]  ;;  %s3441_s9 = sshll.u32 %s6707_s11, 4  ;;  %s3442_s9 = int_to_ptr.hbm [resolvable:$true] %s3441_s9 }
 0x751   :  { %3308 = vmatpush.msrb.mxu2 %v3257_v63  ;;  %3349 = vmatpush.msra.mxu3 %v3257_v63 }
 0x752   :  { %3654 = vmatmul.msk.f32.vlgmr.msrb.gmra.mxu2 %vm3280_vm15, %v3453_v35  ;;  %3658 = vmatmul.msk.f32.vlgmr.msra.gmra.mxu3 %vm3280_vm15, %v3485_v33 }
 0x75a   :  { %3655 = vmatmul.msk.f32.gmra.mxu2 %vm3280_vm15, %v3455_v9  ;;  %3659 = vmatmul.msk.f32.gmra.mxu3 %vm3280_vm15, %v3487_v52  ;;  %v3682_v52 = vld [vmem:[%s6706_s10] ss:$0 sm:$0xff]  ;;  %s3724_s10 = smov 128  }
 0x762   :  { %3656 = vmatmul.msk.f32.gmra.mxu2 %vm3280_vm15, %v3457_v60  ;;  %3660 = vmatmul.msk.f32.gmra.mxu3 %vm3280_vm15, %v3489_v45 }
 0x76a   :  { %3657 = vmatmul.msk.f32.gmra.mxu2 %vm3280_vm15, %v3459_v13  ;;  %3661 = vmatmul.msk.f32.gmra.mxu3 %vm3280_vm15, %v3491_v22 }
 0x7d5   :  { %v3310_v48 = vpop.f32.mrf.mxu2  ;;  %v3351_v51 = vpop.f32.mrf.mxu3 }
 0x7d6   :  { %v3363_v0 = vmax.f32 %v3310_v48, %v3351_v51 }
 0x7d8   :  { %v3369_v27 = vsel %vm3280_vm15, %v3363_v0, 0.0 }
 0x7dd   :  { %v3313_v46 = vpop.f32.mrf.mxu2  ;;  %v3354_v4 = vpop.f32.mrf.mxu3 }
 0x7de   :  { %v3364_v59 = vmax.f32 %v3313_v46, %v3354_v4 }
 0x7e0   :  { %v3370_v37 = vsel %vm3280_vm15, %v3364_v59, 0.0 }
 0x7e1   :  { %v3371_v47 = vadd.f32 %v3370_v37, %v3369_v27 }
 0x7e5   :  { %v3316_v55 = vpop.f32.mrf.mxu2  ;;  %v3357_v34 = vpop.f32.mrf.mxu3 }
 0x7e6   :  { %v3365_v6 = vmax.f32 %v3316_v55, %v3357_v34 }
 0x7e8   :  { %v3372_v8 = vsel %vm3280_vm15, %v3365_v6, 0.0 }
 0x7e9   :  { %v3373_v2 = vadd.f32 %v3372_v8, %v3371_v47 }
 0x7ed   :  { %v3319_v54 = vpop.f32.mrf.mxu2  ;;  %v3360_v42 = vpop.f32.mrf.mxu3 }
 0x7ee   :  { %v3366_v56 = vmax.f32 %v3319_v54, %v3360_v42 }
 0x7f0   :  { %v3374_v23 = vsel %vm3280_vm15, %v3366_v56, 0.0 }
 0x7f1   :  { %v3375_v61 = vadd.f32 %v3374_v23, %v3373_v2 }
 0x7f3   :  { %v3376_v32 = vrot.slane %v3375_v61, 4 }
 0x7f5   :  { %v3377_v29 = vadd.f32 %v3376_v32, %v3375_v61 }
 0x7f7   :  { %v3378_v24 = vrot.slane %v3377_v29, 2 }
 0x7f9   :  { %v3379_v14 = vadd.f32 %v3378_v24, %v3377_v29 }
 0x7fb   :  { %v3380_v31 = vrot.slane %v3379_v14, 1 }
 0x7fd   :  { %v3381_v49 = vadd.f32 %v3380_v31, %v3379_v14 }
 0x7ff   :  { %v3382_v40 = vmul.f32 0.03125, %v3381_v49 }
 0x801   :  { %v3383_v39 = vsub.f32 %v3363_v0, %v3382_v40  ;;  %v3384_v16 = vsub.f32 %v3364_v59, %v3382_v40  ;;  %v3385_v18 = vsub.f32 %v3365_v6, %v3382_v40  ;;  %v3386_v10 = vsub.f32 %v3366_v56, %v3382_v40 }
 0x803   :  { %v3387_v5 = vmul.f32 %v3383_v39, %v3383_v39  ;;  %v3388_v62 = vmul.f32 %v3384_v16, %v3384_v16  ;;  %v3389_v25 = vmul.f32 %v3385_v18, %v3385_v18  ;;  %v3390_v20 = vmul.f32 %v3386_v10, %v3386_v10 }
 0x805   :  { %v3391_v17 = vsel %vm3280_vm15, %v3387_v5, 0.0  ;;  %v3392_v57 = vsel %vm3280_vm15, %v3388_v62, 0.0  ;;  %v3394_v44 = vsel %vm3280_vm15, %v3389_v25, 0.0  ;;  %v3396_v50 = vsel %vm3280_vm15, %v3390_v20, 0.0 }
 0x806   :  { %v3393_v1 = vadd.f32 %v3392_v57, %v3391_v17 }
 0x808   :  { %v3395_v36 = vadd.f32 %v3394_v44, %v3393_v1 }
 0x80a   :  { %v3397_v19 = vadd.f32 %v3396_v50, %v3395_v36 }
 0x80c   :  { %v3398_v41 = vrot.slane %v3397_v19, 4 }
 0x80e   :  { %v3399_v30 = vadd.f32 %v3398_v41, %v3397_v19 }
 0x810   :  { %v3400_v43 = vrot.slane %v3399_v30, 2 }
 0x812   :  { %v3401_v11 = vadd.f32 %v3400_v43, %v3399_v30 }
 0x814   :  { %v3402_v26 = vrot.slane %v3401_v11, 1 }
 0x816   :  { %v3403_v15 = vadd.f32 %v3402_v26, %v3401_v11 }
 0x818   :  { %v3404_v3 = vmul.f32 0.03125, %v3403_v15 }
 0x81a   :  { %v3405_v7 = vadd.f32 1e-05, %v3404_v3 }
 0x81c   :  { %3685 = vrsqrt.f32 %v3405_v7  ;;  %vm3412_vm5 = vweird.f32 %v3405_v7 }
 0x822   :  { %v3686_v38 = vpop.eup %3685 }
 0x823   :  { %v3407_v53 = vmul.f32 %v3686_v38, %v3405_v7  ;;  %vm3413_vm14 = vweird.f32 %v3686_v38 }
 0x824   :  { %vm3414_vm8 = vmor %vm3412_vm5, %vm3413_vm14 }
 0x825   :  { %v3408_v58 = vmul.f32 %v3686_v38, %v3407_v53 }
 0x827   :  { %v3409_v21 = vmul.f32 0.5, %v3408_v58 }
 0x829   :  { %v3410_v12 = vsub.f32 1.5, %v3409_v21 }
 0x82b   :  { %v3411_v35 = vmul.f32 %v3686_v38, %v3410_v12 }
 0x82d   :  { %v3415_v33 = vsel %vm3414_vm8, %v3686_v38, %v3411_v35 }
 0x82e   :  { %v3416_v63 = vmul.f32 %v3415_v33, %v3367_v28 }
 0x830   :  { %v3418_v9 = vperm.slane %v3416_v63, 0 }
 0x832   :  { %v3420_v60 = vmul.f32 %v3418_v9, %v3383_v39  ;;  %v3421_v45 = vmul.f32 %v3418_v9, %v3384_v16  ;;  %v3422_v13 = vmul.f32 %v3418_v9, %v3385_v18  ;;  %v3423_v22 = vmul.f32 %v3418_v9, %v3386_v10 }
 0x834   :  { %v3427_v48 = vadd.f32 %v3682_v52, %v3420_v60  ;;  %v3428_v51 = vadd.f32 %v3682_v52, %v3421_v45  ;;  %v3430_v46 = vadd.f32 %v3682_v52, %v3423_v22  ;;  %v3429_v4 = vadd.f32 %v3682_v52, %v3422_v13 }
 0x836   :  { %3434 = vst.msk [vmem:[#allocation4 + $0x18] sm:$0xff] %vm3280_vm15, %v3430_v46 }
 0x837   :  { %3431 = vst.msk [vmem:[#allocation4] sm:$0xff] %vm3280_vm15, %v3427_v48 }
 0x838   :  { %3432 = vst.msk [vmem:[#allocation4 + $0x8] sm:$0xff] %vm3280_vm15, %v3428_v51 }
 0x839   :  { %3433 = vst.msk [vmem:[#allocation4 + $0x10] sm:$0xff] %vm3280_vm15, %v3429_v4 }
 0x83a   :  { %3447 = dma.vmem_to_hbm [thread:$0]  %s3440_s27, 512, %s3442_s9, [#allocation5], %s3724_s10, %s3724_s10, %s3725_s14  }
 0x83b   :  { %3712 = dma.done.wait [#allocation5], 512  }
 0x83c   :  { %3713 = vsyncadd [#allocation5], 4294966784 }
 0x83d   :  { %3452 = vsyncpa [#allocation5], 1 }

</bundles_post_ra>
